<compile_context>
chip_gen: v7x
topology: tpu7x:2x2x1
jax: 0.10.0
libtpu: 0.0.40
codegen_flags: <defaults>
</compile_context>

<pallas_src>
import functools

import jax
import jax.numpy as jnp
from jax.experimental import pallas as pl
from jax.experimental.pallas import tpu as pltpu

INPUT_RESOLUTION = 56
HIDDEN_SIZES = [336, 336, 336, 336, 336]
NUM_OF_CLASSES = 36

IN_FEATURES = INPUT_RESOLUTION * INPUT_RESOLUTION   # 3136
HIDDEN = HIDDEN_SIZES[0]                             # 336 (all hidden layers equal)
HIDDEN_PADDED = 384                                  # 3 x 128 lanes (dense MXU tiles)
PADDED_CLASSES = 128                                 # lane-dense output width


def _round_up(x, m):
    return (x + m - 1) // m * m


def mlp_kernel(x_ref, w1_ref, b1_ref, wh_ref, bh_ref, w6_ref, b6_ref, out_ref):
    """One batch tile of the full forward pass.

    x_ref:  (TILE_B, 3136) bf16         (streamed per grid step)
    w1_ref: (3136, 384)    bf16         (VMEM-resident across steps)
    b1_ref: (1, 384)       f32
    wh_ref: (4, 384, 384)  bf16         (the 4 identical hidden layers, stacked)
    bh_ref: (4, 1, 384)    f32
    w6_ref: (384, 128)     bf16         (classes zero-padded 36 -> 128)
    b6_ref: (1, 128)       f32
    out_ref:(TILE_B, 128)  f32
    """

    def linear_f32(h_bf16, w_bf16, b_f32):
        # bf16 MXU inputs, f32 accumulation; bias-add stays in f32.
        return jnp.dot(h_bf16, w_bf16, preferred_element_type=jnp.float32) + b_f32

    # Layer 1 (x already bf16 — no per-step cast); keep h bf16 between layers.
    h = jnp.maximum(linear_f32(x_ref[...], w1_ref[...], b1_ref[...]),
                    0.0).astype(jnp.bfloat16)
    for k in range(4):  # short static unroll over the stacked hidden layers
        h = jnp.maximum(linear_f32(h, wh_ref[k], bh_ref[k]),
                        0.0).astype(jnp.bfloat16)
    out_ref[...] = linear_f32(h, w6_ref[...], b6_ref[...])


@functools.partial(jax.jit, static_argnames=("tile_b",))
def _forward_padded(x_padded, w1, b1, wh, bh, w6, b6, *, tile_b):
    padded_batch = x_padded.shape[0]
    grid = (padded_batch // tile_b,)
    return pl.pallas_call(
        mlp_kernel,
        out_shape=jax.ShapeDtypeStruct((padded_batch, PADDED_CLASSES), jnp.float32),
        grid=grid,
        in_specs=[
            pl.BlockSpec((tile_b, IN_FEATURES), lambda i: (i, 0)),   # x tile (bf16 stream)
            pl.BlockSpec(w1.shape, lambda i: (0, 0)),                # weights: constant
            pl.BlockSpec(b1.shape, lambda i: (0, 0)),                #   index_map ->
            pl.BlockSpec(wh.shape, lambda i: (0, 0, 0)),             #   VMEM-resident
            pl.BlockSpec(bh.shape, lambda i: (0, 0, 0)),
            pl.BlockSpec(w6.shape, lambda i: (0, 0)),
            pl.BlockSpec(b6.shape, lambda i: (0, 0)),
        ],
        out_specs=pl.BlockSpec((tile_b, PADDED_CLASSES), lambda i: (i, 0)),
        compiler_params=pltpu.CompilerParams(
            dimension_semantics=("parallel",),   # shard batch tiles over v7x's 2 TCs
            vmem_limit_bytes=48 << 20,           # ~15 MiB footprint @ tile_b=512 + headroom
        ),
    )(x_padded, w1, b1, wh, bh, w6, b6)


def neural_net_forward(x, packed_params, tile_b=512):
    """x: [batch, 3136] f32 -> logits [batch, 36] f32."""
    batch = x.shape[0]
    w1, b1, wh, bh, w6, b6 = packed_params

    # Halve the HBM activation stream: cast once in the wrapper, stream bf16.
    x = x.astype(jnp.bfloat16)

    # bf16 sublane packing: keep batch tiles a multiple of 16 rows, and clamp
    # so tiny batches don't pad to 512 rows.
    tile_b = min(tile_b, _round_up(batch, 16))
    # Give the grid >= 2 steps when possible so v7x's 2nd TensorCore gets work.
    if tile_b > 16 and _round_up(batch, tile_b) == tile_b:
        tile_b = _round_up(tile_b // 2, 16)

    padded_batch = _round_up(batch, tile_b)
    if padded_batch != batch:
        x = jnp.pad(x, ((0, padded_batch - batch), (0, 0)))

    out = _forward_padded(x, w1, b1, wh, bh, w6, b6, tile_b=tile_b)
    return out[:batch, :NUM_OF_CLASSES]


def init_params(key):
    """Per-layer params mimicking PyTorch default nn.Linear init:
    U(-1/sqrt(fan_in), 1/sqrt(fan_in)). Weights stored transposed [in, out]
    in bf16, biases [1, out] in f32 (logical, un-padded sizes)."""
    dims = [IN_FEATURES] + HIDDEN_SIZES + [NUM_OF_CLASSES]
    layers = []
    for i in range(len(dims) - 1):
        fan_in, fan_out = dims[i], dims[i + 1]
        key, kw, kb = jax.random.split(key, 3)
        bound = 1.0 / jnp.sqrt(jnp.float32(fan_in))
        w_t = jax.random.uniform(kw, (fan_in, fan_out), jnp.float32,
                                 minval=-bound, maxval=bound).astype(jnp.bfloat16)
        b = jax.random.uniform(kb, (1, fan_out), jnp.float32,
                               minval=-bound, maxval=bound)
        layers.append((w_t, b))
    return layers


def pack_params(layers):
    """Pack per-layer params into the kernel's argument layout.

    Hidden width zero-padded 336 -> 384 and classes 36 -> 128: padded hidden
    units have zero weight columns/rows and zero bias, so they stay exactly 0
    through ReLU and contribute nothing downstream."""
    w1, b1 = layers[0]
    w1p = jnp.zeros((IN_FEATURES, HIDDEN_PADDED), jnp.bfloat16).at[:, :HIDDEN].set(w1)
    b1p = jnp.zeros((1, HIDDEN_PADDED), jnp.float32).at[:, :HIDDEN].set(b1)

    whp = jnp.zeros((4, HIDDEN_PADDED, HIDDEN_PADDED), jnp.bfloat16)
    bhp = jnp.zeros((4, 1, HIDDEN_PADDED), jnp.float32)
    for k in range(1, 5):
        whp = whp.at[k - 1, :HIDDEN, :HIDDEN].set(layers[k][0])
        bhp = bhp.at[k - 1, :, :HIDDEN].set(layers[k][1])

    w6, b6 = layers[5]
    w6p = jnp.zeros((HIDDEN_PADDED, PADDED_CLASSES),
                    jnp.bfloat16).at[:HIDDEN, :NUM_OF_CLASSES].set(w6)
    b6p = jnp.zeros((1, PADDED_CLASSES), jnp.float32).at[:, :NUM_OF_CLASSES].set(b6)
    return (w1p, b1p, whp, bhp, w6p, b6p)


def reference_forward(x, layers):
    """Pure-JAX reference with the same mixed-precision recipe
    (bf16 matmul inputs, f32 accumulation, f32 bias-add/ReLU)."""
    h = x
    for i, (w, b) in enumerate(layers):
        h = jnp.dot(h.astype(jnp.bfloat16), w,
                    preferred_element_type=jnp.float32) + b
        if i < len(layers) - 1:
            h = jnp.maximum(h, 0.0)
    return h


if __name__ == "__main__":
    key = jax.random.PRNGKey(0)
    key, kx = jax.random.split(key)

    batch = 8
    x = jax.random.normal(kx, (batch, IN_FEATURES), jnp.float32)

    layers = init_params(key)
    packed = pack_params(layers)

    out = neural_net_forward(x, packed)
    out = jax.block_until_ready(out)

    ref = reference_forward(x, layers)
    assert out.shape == (batch, NUM_OF_CLASSES), out.shape
    max_err = float(jnp.max(jnp.abs(out - ref)))
    assert jnp.allclose(out, ref, atol=1e-2, rtol=1e-2), max_err

    print("KERNEL_OK")
</pallas_src>

<mosaic_0001>
module attributes {stable_mosaic.version = 11 : i64} {
  func.func @mlp_kernel(%arg0: i32, %arg1: memref<16x3136xbf16, #tpu.memory_space<vmem>>, %arg2: memref<3136x384xbf16, #tpu.memory_space<vmem>>, %arg3: memref<1x384xf32, #tpu.memory_space<vmem>>, %arg4: memref<4x384x384xbf16, #tpu.memory_space<vmem>>, %arg5: memref<4x1x384xf32, #tpu.memory_space<vmem>>, %arg6: memref<384x128xbf16, #tpu.memory_space<vmem>>, %arg7: memref<1x128xf32, #tpu.memory_space<vmem>>, %arg8: memref<16x128xf32, #tpu.memory_space<vmem>>) attributes {dimension_semantics = [#tpu.dimension_semantics<parallel>], iteration_bounds = array<i64: 1>, scalar_prefetch = 0 : i64, scratch_operands = 0 : i64, tpu.core_type = #tpu.core_type<tc>, window_params = [{transform_indices = @transform_0, window_bounds = array<i64: 16, 3136>}, {pipeline_mode = #tpu.pipeline_mode<synchronous>, transform_indices = @transform_1, window_bounds = array<i64: 3136, 384>}, {pipeline_mode = #tpu.pipeline_mode<synchronous>, transform_indices = @transform_2, window_bounds = array<i64: 1, 384>}, {pipeline_mode = #tpu.pipeline_mode<synchronous>, transform_indices = @transform_3, window_bounds = array<i64: 4, 384, 384>}, {pipeline_mode = #tpu.pipeline_mode<synchronous>, transform_indices = @transform_4, window_bounds = array<i64: 4, 1, 384>}, {pipeline_mode = #tpu.pipeline_mode<synchronous>, transform_indices = @transform_5, window_bounds = array<i64: 384, 128>}, {pipeline_mode = #tpu.pipeline_mode<synchronous>, transform_indices = @transform_6, window_bounds = array<i64: 1, 128>}, {transform_indices = @transform_7, window_bounds = array<i64: 16, 128>}]} {
    %c0 = arith.constant 0 : index
    %c0_0 = arith.constant 0 : index
    %0 = vector.load %arg1[%c0, %c0_0] : memref<16x3136xbf16, #tpu.memory_space<vmem>>, vector<16x3136xbf16>
    %c0_1 = arith.constant 0 : index
    %c0_2 = arith.constant 0 : index
    %1 = vector.load %arg2[%c0_1, %c0_2] : memref<3136x384xbf16, #tpu.memory_space<vmem>>, vector<3136x384xbf16>
    %c0_3 = arith.constant 0 : index
    %c0_4 = arith.constant 0 : index
    %2 = vector.load %arg3[%c0_3, %c0_4] : memref<1x384xf32, #tpu.memory_space<vmem>>, vector<1x384xf32>
    %cst = arith.constant dense<0.000000e+00> : vector<16x384xf32>
    %3 = tpu.matmul %0, %1, %cst {dimension_numbers = #tpu.dot_dimension_numbers<[1], [0], [0], [1], [0, 0, 1, 1], [], []>} : vector<16x3136xbf16>, vector<3136x384xbf16>, vector<16x384xf32> -> vector<16x384xf32>
    %4 = vector.broadcast %2 : vector<1x384xf32> to vector<16x384xf32>
    %5 = arith.addf %3, %4 : vector<16x384xf32>
    %cst_5 = arith.constant 0.000000e+00 : f32
    %6 = vector.broadcast %cst_5 : f32 to vector<16x384xf32>
    %7 = arith.maximumf %5, %6 : vector<16x384xf32>
    %8 = arith.truncf %7 : vector<16x384xf32> to vector<16x384xbf16>
    %c0_6 = arith.constant 0 : index
    %c0_7 = arith.constant 0 : index
    %c0_8 = arith.constant 0 : index
    %9 = vector.load %arg4[%c0_6, %c0_7, %c0_8] : memref<4x384x384xbf16, #tpu.memory_space<vmem>>, vector<1x384x384xbf16>
    %10 = vector.shape_cast %9 : vector<1x384x384xbf16> to vector<384x384xbf16>
    %c0_9 = arith.constant 0 : index
    %c0_10 = arith.constant 0 : index
    %c0_11 = arith.constant 0 : index
    %11 = vector.load %arg5[%c0_9, %c0_10, %c0_11] : memref<4x1x384xf32, #tpu.memory_space<vmem>>, vector<1x1x384xf32>
    %12 = vector.shape_cast %11 : vector<1x1x384xf32> to vector<1x384xf32>
    %cst_12 = arith.constant dense<0.000000e+00> : vector<16x384xf32>
    %13 = tpu.matmul %8, %10, %cst_12 {dimension_numbers = #tpu.dot_dimension_numbers<[1], [0], [0], [1], [0, 0, 1, 1], [], []>} : vector<16x384xbf16>, vector<384x384xbf16>, vector<16x384xf32> -> vector<16x384xf32>
    %14 = vector.broadcast %12 : vector<1x384xf32> to vector<16x384xf32>
    %15 = arith.addf %13, %14 : vector<16x384xf32>
    %cst_13 = arith.constant 0.000000e+00 : f32
    %16 = vector.broadcast %cst_13 : f32 to vector<16x384xf32>
    %17 = arith.maximumf %15, %16 : vector<16x384xf32>
    %18 = arith.truncf %17 : vector<16x384xf32> to vector<16x384xbf16>
    %c1 = arith.constant 1 : index
    %c0_14 = arith.constant 0 : index
    %c0_15 = arith.constant 0 : index
    %19 = vector.load %arg4[%c1, %c0_14, %c0_15] : memref<4x384x384xbf16, #tpu.memory_space<vmem>>, vector<1x384x384xbf16>
    %20 = vector.shape_cast %19 : vector<1x384x384xbf16> to vector<384x384xbf16>
    %c1_16 = arith.constant 1 : index
    %c0_17 = arith.constant 0 : index
    %c0_18 = arith.constant 0 : index
    %21 = vector.load %arg5[%c1_16, %c0_17, %c0_18] : memref<4x1x384xf32, #tpu.memory_space<vmem>>, vector<1x1x384xf32>
    %22 = vector.shape_cast %21 : vector<1x1x384xf32> to vector<1x384xf32>
    %cst_19 = arith.constant dense<0.000000e+00> : vector<16x384xf32>
    %23 = tpu.matmul %18, %20, %cst_19 {dimension_numbers = #tpu.dot_dimension_numbers<[1], [0], [0], [1], [0, 0, 1, 1], [], []>} : vector<16x384xbf16>, vector<384x384xbf16>, vector<16x384xf32> -> vector<16x384xf32>
    %24 = vector.broadcast %22 : vector<1x384xf32> to vector<16x384xf32>
    %25 = arith.addf %23, %24 : vector<16x384xf32>
    %cst_20 = arith.constant 0.000000e+00 : f32
    %26 = vector.broadcast %cst_20 : f32 to vector<16x384xf32>
    %27 = arith.maximumf %25, %26 : vector<16x384xf32>
    %28 = arith.truncf %27 : vector<16x384xf32> to vector<16x384xbf16>
    %c2 = arith.constant 2 : index
    %c0_21 = arith.constant 0 : index
    %c0_22 = arith.constant 0 : index
    %29 = vector.load %arg4[%c2, %c0_21, %c0_22] : memref<4x384x384xbf16, #tpu.memory_space<vmem>>, vector<1x384x384xbf16>
    %30 = vector.shape_cast %29 : vector<1x384x384xbf16> to vector<384x384xbf16>
    %c2_23 = arith.constant 2 : index
    %c0_24 = arith.constant 0 : index
    %c0_25 = arith.constant 0 : index
    %31 = vector.load %arg5[%c2_23, %c0_24, %c0_25] : memref<4x1x384xf32, #tpu.memory_space<vmem>>, vector<1x1x384xf32>
    %32 = vector.shape_cast %31 : vector<1x1x384xf32> to vector<1x384xf32>
    %cst_26 = arith.constant dense<0.000000e+00> : vector<16x384xf32>
    %33 = tpu.matmul %28, %30, %cst_26 {dimension_numbers = #tpu.dot_dimension_numbers<[1], [0], [0], [1], [0, 0, 1, 1], [], []>} : vector<16x384xbf16>, vector<384x384xbf16>, vector<16x384xf32> -> vector<16x384xf32>
    %34 = vector.broadcast %32 : vector<1x384xf32> to vector<16x384xf32>
    %35 = arith.addf %33, %34 : vector<16x384xf32>
    %cst_27 = arith.constant 0.000000e+00 : f32
    %36 = vector.broadcast %cst_27 : f32 to vector<16x384xf32>
    %37 = arith.maximumf %35, %36 : vector<16x384xf32>
    %38 = arith.truncf %37 : vector<16x384xf32> to vector<16x384xbf16>
    %c3 = arith.constant 3 : index
    %c0_28 = arith.constant 0 : index
    %c0_29 = arith.constant 0 : index
    %39 = vector.load %arg4[%c3, %c0_28, %c0_29] : memref<4x384x384xbf16, #tpu.memory_space<vmem>>, vector<1x384x384xbf16>
    %40 = vector.shape_cast %39 : vector<1x384x384xbf16> to vector<384x384xbf16>
    %c3_30 = arith.constant 3 : index
    %c0_31 = arith.constant 0 : index
    %c0_32 = arith.constant 0 : index
    %41 = vector.load %arg5[%c3_30, %c0_31, %c0_32] : memref<4x1x384xf32, #tpu.memory_space<vmem>>, vector<1x1x384xf32>
    %42 = vector.shape_cast %41 : vector<1x1x384xf32> to vector<1x384xf32>
    %cst_33 = arith.constant dense<0.000000e+00> : vector<16x384xf32>
    %43 = tpu.matmul %38, %40, %cst_33 {dimension_numbers = #tpu.dot_dimension_numbers<[1], [0], [0], [1], [0, 0, 1, 1], [], []>} : vector<16x384xbf16>, vector<384x384xbf16>, vector<16x384xf32> -> vector<16x384xf32>
    %44 = vector.broadcast %42 : vector<1x384xf32> to vector<16x384xf32>
    %45 = arith.addf %43, %44 : vector<16x384xf32>
    %cst_34 = arith.constant 0.000000e+00 : f32
    %46 = vector.broadcast %cst_34 : f32 to vector<16x384xf32>
    %47 = arith.maximumf %45, %46 : vector<16x384xf32>
    %48 = arith.truncf %47 : vector<16x384xf32> to vector<16x384xbf16>
    %c0_35 = arith.constant 0 : index
    %c0_36 = arith.constant 0 : index
    %49 = vector.load %arg6[%c0_35, %c0_36] : memref<384x128xbf16, #tpu.memory_space<vmem>>, vector<384x128xbf16>
    %c0_37 = arith.constant 0 : index
    %c0_38 = arith.constant 0 : index
    %50 = vector.load %arg7[%c0_37, %c0_38] : memref<1x128xf32, #tpu.memory_space<vmem>>, vector<1x128xf32>
    %cst_39 = arith.constant dense<0.000000e+00> : vector<16x128xf32>
    %51 = tpu.matmul %48, %49, %cst_39 {dimension_numbers = #tpu.dot_dimension_numbers<[1], [0], [0], [1], [0, 0, 1, 1], [], []>} : vector<16x384xbf16>, vector<384x128xbf16>, vector<16x128xf32> -> vector<16x128xf32>
    %52 = vector.broadcast %50 : vector<1x128xf32> to vector<16x128xf32>
    %53 = arith.addf %51, %52 : vector<16x128xf32>
    %c0_40 = arith.constant 0 : index
    %c0_41 = arith.constant 0 : index
    %54 = vector.load %arg8[%c0_40, %c0_41] : memref<16x128xf32, #tpu.memory_space<vmem>>, vector<16x128xf32>
    tpu.vector_store %arg8[%c0_40, %c0_41], %53 {strides = array<i32>} : memref<16x128xf32, #tpu.memory_space<vmem>>, vector<16x128xf32>,
    return
  }
  func.func @transform_0(%arg0: i32) -> (i32, i32) {
    %c0_i32 = arith.constant 0 : i32
    %c0_i32_0 = arith.constant 0 : i32
    return %arg0, %c0_i32 : i32, i32
  }
  func.func @transform_1(%arg0: i32) -> (i32, i32) {
    %c0_i32 = arith.constant 0 : i32
    %c0_i32_0 = arith.constant 0 : i32
    %c0_i32_1 = arith.constant 0 : i32
    return %c0_i32, %c0_i32_0 : i32, i32
  }
  func.func @transform_2(%arg0: i32) -> (i32, i32) {
    %c0_i32 = arith.constant 0 : i32
    %c0_i32_0 = arith.constant 0 : i32
    %c0_i32_1 = arith.constant 0 : i32
    return %c0_i32, %c0_i32_0 : i32, i32
  }
  func.func @transform_3(%arg0: i32) -> (i32, i32, i32) {
    %c0_i32 = arith.constant 0 : i32
    %c0_i32_0 = arith.constant 0 : i32
    %c0_i32_1 = arith.constant 0 : i32
    %c0_i32_2 = arith.constant 0 : i32
    return %c0_i32, %c0_i32_0, %c0_i32_1 : i32, i32, i32
  }
  func.func @transform_4(%arg0: i32) -> (i32, i32, i32) {
    %c0_i32 = arith.constant 0 : i32
    %c0_i32_0 = arith.constant 0 : i32
    %c0_i32_1 = arith.constant 0 : i32
    %c0_i32_2 = arith.constant 0 : i32
    return %c0_i32, %c0_i32_0, %c0_i32_1 : i32, i32, i32
  }
  func.func @transform_5(%arg0: i32) -> (i32, i32) {
    %c0_i32 = arith.constant 0 : i32
    %c0_i32_0 = arith.constant 0 : i32
    %c0_i32_1 = arith.constant 0 : i32
    return %c0_i32, %c0_i32_0 : i32, i32
  }
  func.func @transform_6(%arg0: i32) -> (i32, i32) {
    %c0_i32 = arith.constant 0 : i32
    %c0_i32_0 = arith.constant 0 : i32
    %c0_i32_1 = arith.constant 0 : i32
    return %c0_i32, %c0_i32_0 : i32, i32
  }
  func.func @transform_7(%arg0: i32) -> (i32, i32) {
    %c0_i32 = arith.constant 0 : i32
    %c0_i32_0 = arith.constant 0 : i32
    return %arg0, %c0_i32 : i32, i32
  }
}

</mosaic_0001>

<bundles_post_ra>
// kernel: _forward_padded.1
= control target key start
LH: loop header
LB: loop body
LE: loop exit
PB: predicated region body
PF: predicated region fallthrough
CT: control target
= control target key end

     0   :  { %12 = vsyncpa [#allocation3], 0  ;;  %s11617_s0 = inlined_call_operand.hbm [shape: bf16[16,3136], index: 0, kind: input, shape index: {}]   ;;  %s11618_s1 = inlined_call_operand.hbm [shape: bf16[3136,384], index: 1, kind: input, shape index: {}]   ;;  %s11619_s2 = inlined_call_operand.hbm [shape: f32[1,384], index: 2, kind: input, shape index: {}]   ;;  %s11620_s3 = inlined_call_operand.hbm [shape: bf16[4,384,384], index: 3, kind: input, shape index: {}]   ;;  %s11621_s4 = inlined_call_operand.hbm [shape: f32[4,1,384], index: 4, kind: input, shape index: {}]   ;;  %s11622_s5 = inlined_call_operand.hbm [shape: bf16[384,128], index: 5, kind: input, shape index: {}]   ;;  %s11623_s6 = inlined_call_operand.hbm [shape: f32[1,128], index: 6, kind: input, shape index: {}]   ;;  %s11624_s7 = inlined_call_operand.hbm [shape: f32[16,128], index: 7, kind: output, shape index: {}]  }
   0x1   :  { %13 = vsyncpa [#allocation6], 0 }
   0x2   :  { %14 = vsyncpa [#allocation9], 0 }
   0x3   :  { %15 = vsyncpa [#allocation12], 0 }
   0x4   :  { %16 = vsyncpa [#allocation4], 0  ;;  %s11318_s24 = smov [#allocation5]   ;;  %s11132_s28 = scalar_lea.hbm %s11618_s1, 75264 }
   0x5   :  { %s34_s25 = sshll.u32 %s11318_s24, 4  ;;  %p11133_p0 = scmp.ne.s32.totalorder %s11618_s1, %s11132_s28  ;;  %s35_s25 = int_to_ptr.vmem [resolvable:$true] %s34_s25 }
   0x6   :  { %p11136_p1 = scmp.lt.u32.totalorder %s11132_s28, %s11618_s1 }
   0x8   :  { %p11138_p2 = pnand %p11136_p1, %p11133_p0 }
   0xa   :  { %11141 = shalt.err (!%p11138_p2)
}
   0xb   :  { %s11142_s10 = scalar_lea.vmem %s35_s25, 75264  ;;  %p11147_p4 = scmp.lt.s32.totalorder %s35_s25, %s35_s25 }
   0xc   :  { %p11143_p3 = scmp.ne.s32.totalorder %s35_s25, %s11142_s10  ;;  %p11148_p5 = scmp.lt.s32.totalorder %s11142_s10, %s11142_s10 }
   0xe   :  { %p11149_p6 = por %p11148_p5, %p11147_p4 }
  0x10   :  { %p11150_p7 = pnand %p11149_p6, %p11143_p3 }
  0x12   :  { %11153 = shalt.err (!%p11150_p7)
}
  0x13   :  { %s11319_s11 = smov 192   ;;  %s11320_s12 = smov 12  }
  0x14   :  { %40 = dma.hbm_to_vmem [thread:$0]  %s11618_s1, 75264, %s35_s25, [#allocation6], %s11319_s11, %s11319_s11, %s11320_s12  }
  0x15   :  { %s11321_s15 = smov [#allocation8]   ;;  %s11322_s17 = smov [#allocation11]  }
  0x16   :  { %s56_s16 = sshll.u32 %s11321_s15, 4  ;;  %s80_s18 = sshll.u32 %s11322_s17, 4  ;;  %s57_s16 = int_to_ptr.vmem [resolvable:$true] %s56_s16  ;;  %s81_s18 = int_to_ptr.vmem [resolvable:$true] %s80_s18 }
  0x17   :  { %s11154_s21 = scalar_lea.hbm %s11620_s3, 36864 }
  0x18   :  { %p11155_p8 = scmp.ne.s32.totalorder %s11620_s3, %s11154_s21  ;;  %p11158_p9 = scmp.lt.u32.totalorder %s11154_s21, %s11620_s3 }
  0x1a   :  { %p11160_p10 = pnand %p11158_p9, %p11155_p8 }
  0x1c   :  { %11163 = shalt.err (!%p11160_p10)
}
  0x1d   :  { %s11164_s1 = scalar_lea.vmem %s57_s16, 36864  ;;  %p11169_p12 = scmp.lt.s32.totalorder %s57_s16, %s57_s16 }
  0x1e   :  { %p11165_p11 = scmp.ne.s32.totalorder %s57_s16, %s11164_s1  ;;  %p11170_p13 = scmp.lt.s32.totalorder %s11164_s1, %s11164_s1 }
  0x20   :  { %p11171_p0 = por %p11170_p13, %p11169_p12 }
  0x22   :  { %p11172_p1 = pnand %p11171_p0, %p11165_p11 }
  0x24   :  { %11175 = shalt.err (!%p11172_p1)
}
  0x25   :  { %62 = dma.hbm_to_vmem [thread:$0]  %s11620_s3, 36864, %s57_s16, [#allocation9], %s11319_s11, %s11319_s11, %s11320_s12  }
  0x26   :  { %s11176_s30 = scalar_lea.hbm %s11622_s5, 3072 }
  0x27   :  { %p11177_p2 = scmp.ne.s32.totalorder %s11622_s5, %s11176_s30  ;;  %p11180_p3 = scmp.lt.u32.totalorder %s11176_s30, %s11622_s5 }
  0x29   :  { %p11182_p4 = pnand %p11180_p3, %p11177_p2 }
  0x2b   :  { %11185 = shalt.err (!%p11182_p4)
}
  0x2c   :  { %s11186_s14 = scalar_lea.vmem %s81_s18, 3072  ;;  %p11191_p6 = scmp.lt.s32.totalorder %s81_s18, %s81_s18 }
  0x2d   :  { %p11187_p5 = scmp.ne.s32.totalorder %s81_s18, %s11186_s14  ;;  %p11192_p7 = scmp.lt.s32.totalorder %s11186_s14, %s11186_s14 }
  0x2f   :  { %p11193_p8 = por %p11192_p7, %p11191_p6 }
  0x31   :  { %p11194_p9 = pnand %p11193_p8, %p11187_p5 }
  0x33   :  { %11197 = shalt.err (!%p11194_p9)
}
  0x34   :  { %s11323_s3 = smov 64   ;;  %s11324_s11 = smov 4  }
  0x35   :  { %86 = dma.hbm_to_vmem [thread:$0]  %s11622_s5, 3072, %s81_s18, [#allocation12], %s11323_s3, %s11323_s3, %s11324_s11  }
  0x36   :  { %s11325_s16 = smov [#allocation2]   ;;  %s11198_s21 = scalar_lea.hbm %s11617_s0, 3200 }
  0x37   :  { %s22_s17 = sshll.u32 %s11325_s16, 4  ;;  %p11199_p10 = scmp.ne.s32.totalorder %s11617_s0, %s11198_s21  ;;  %s23_s17 = int_to_ptr.vmem [resolvable:$true] %s22_s17 }
  0x38   :  { %p11202_p11 = scmp.lt.u32.totalorder %s11198_s21, %s11617_s0 }
  0x3a   :  { %p11204_p12 = pnand %p11202_p11, %p11199_p10 }
  0x3c   :  { %11207 = shalt.err (!%p11204_p12)
}
  0x3d   :  { %s11208_s1 = scalar_lea.vmem %s23_s17, 3200  ;;  %p11213_p0 = scmp.lt.s32.totalorder %s23_s17, %s23_s17 }
  0x3e   :  { %p11209_p13 = scmp.ne.s32.totalorder %s23_s17, %s11208_s1  ;;  %p11214_p1 = scmp.lt.s32.totalorder %s11208_s1, %s11208_s1 }
  0x40   :  { %p11215_p2 = por %p11214_p1, %p11213_p0 }
  0x42   :  { %p11216_p3 = pnand %p11215_p2, %p11209_p13 }
  0x44   :  { %11219 = shalt.err (!%p11216_p3)
}
  0x45   :  { %s11326_s5 = smov 1600   ;;  %s11327_s18 = smov 100  }
  0x46   :  { %28 = dma.hbm_to_vmem [thread:$0]  %s11617_s0, 3200, %s23_s17, [#allocation3], %s11326_s5, %s11326_s5, %s11327_s18  }
  0x47   :  { %s11328_s28 = smov [#allocation7]   ;;  %s11329_s30 = smov [#allocation10]  }
  0x48   :  { %s47_s29 = sshll.u32 %s11328_s28, 4  ;;  %s68_s8 = sshll.u32 %s11329_s30, 4  ;;  %s48_s29 = int_to_ptr.vmem [resolvable:$true] %s47_s29  ;;  %s11427_s8 = int_to_ptr.vmem [resolvable:$true] %s68_s8 }
  0x49   :  { %s11220_s13 = scalar_lea.hbm %s11619_s2, 48 }
  0x4a   :  { %p11221_p4 = scmp.ne.s32.totalorder %s11619_s2, %s11220_s13  ;;  %p11224_p5 = scmp.lt.u32.totalorder %s11220_s13, %s11619_s2 }
  0x4c   :  { %p11226_p6 = pnand %p11224_p5, %p11221_p4 }
  0x4e   :  { %11229 = shalt.err (!%p11226_p6)
}
  0x4f   :  { %s11230_s0 = scalar_lea.vmem %s48_s29, 48  ;;  %s11234_s15 = scalar_lea.vmem %s48_s29, 64 }
  0x50   :  { %p11231_p7 = scmp.ne.s32.totalorder %s48_s29, %s11230_s0  ;;  %p11235_p8 = scmp.lt.s32.totalorder %s48_s29, %s48_s29 }
  0x51   :  { %p11236_p9 = scmp.lt.s32.totalorder %s11234_s15, %s11230_s0 }
  0x53   :  { %p11237_p10 = por %p11236_p9, %p11235_p8 }
  0x55   :  { %p11238_p11 = pnand %p11237_p10, %p11231_p7 }
  0x57   :  { %11241 = shalt.err (!%p11238_p11)
}
  0x58   :  { %50 = dma.hbm_to_vmem [thread:$0]  %s11619_s2, 48, %s48_s29, [#allocation6]  }
  0x59   :  { %s11242_s21 = scalar_lea.hbm %s11621_s4, 192 }
  0x5a   :  { %p11243_p12 = scmp.ne.s32.totalorder %s11621_s4, %s11242_s21  ;;  %p11246_p13 = scmp.lt.u32.totalorder %s11242_s21, %s11621_s4 }
  0x5c   :  { %p11248_p0 = pnand %p11246_p13, %p11243_p12 }
  0x5e   :  { %11251 = shalt.err (!%p11248_p0)
}
  0x5f   :  { %s11252_s1 = scalar_lea.vmem %s11427_s8, 192  ;;  %p11257_p2 = scmp.lt.s32.totalorder %s11427_s8, %s11427_s8 }
  0x60   :  { %p11253_p1 = scmp.ne.s32.totalorder %s11427_s8, %s11252_s1  ;;  %p11258_p3 = scmp.lt.s32.totalorder %s11252_s1, %s11252_s1 }
  0x62   :  { %p11259_p4 = por %p11258_p3, %p11257_p2 }
  0x64   :  { %p11260_p5 = pnand %p11259_p4, %p11253_p1 }
  0x66   :  { %11263 = shalt.err (!%p11260_p5)
}
  0x67   :  { %s11330_s2 = smov 48   ;;  %s11331_s5 = smov 3  }
  0x68   :  { %74 = dma.hbm_to_vmem [thread:$0]  %s11621_s4, 192, %s11427_s8, [#allocation9], %s11330_s2, %s11330_s2, %s11331_s5  }
  0x69   :  { %s11332_s27 = smov [#allocation13]   ;;  %s11264_s9 = scalar_lea.hbm %s11623_s6, 16 }
  0x6a   :  { %s93_s28 = sshll.u32 %s11332_s27, 4  ;;  %p11265_p6 = scmp.ne.s32.totalorder %s11623_s6, %s11264_s9  ;;  %s94_s28 = int_to_ptr.vmem [resolvable:$true] %s93_s28 }
  0x6b   :  { %p11268_p7 = scmp.lt.u32.totalorder %s11264_s9, %s11623_s6 }
  0x6d   :  { %p11270_p8 = pnand %p11268_p7, %p11265_p6 }
  0x6f   :  { %11273 = shalt.err (!%p11270_p8)
}
  0x70   :  { %s11274_s11 = scalar_lea.vmem %s94_s28, 16  ;;  %s11278_s4 = scalar_lea.vmem %s94_s28, 32 }
  0x71   :  { %p11275_p9 = scmp.ne.s32.totalorder %s94_s28, %s11274_s11  ;;  %p11279_p10 = scmp.lt.s32.totalorder %s94_s28, %s94_s28 }
  0x72   :  { %p11280_p11 = scmp.lt.s32.totalorder %s11278_s4, %s11274_s11 }
  0x74   :  { %p11281_p12 = por %p11280_p11, %p11279_p10 }
  0x76   :  { %p11282_p13 = pnand %p11281_p12, %p11275_p9 }
  0x78   :  { %11285 = shalt.err (!%p11282_p13)
}
  0x79   :  { %96 = dma.hbm_to_vmem [thread:$0]  %s11623_s6, 16, %s94_s28, [#allocation12]  }
  0x7a   :  { %11308 = dma.done.wait [#allocation3], 3200  }
  0x7b   :  { %11309 = vsyncadd [#allocation3], 4294964096 }
  0x7c   :  { %11310 = dma.done.wait [#allocation6], 75312  }
  0x7d   :  { %11311 = vsyncadd [#allocation6], 4294891984 }
  0x7e   :  { %11312 = dma.done.wait [#allocation9], 37056  }
  0x7f   :  { %11313 = vsyncadd [#allocation9], 4294930240 }
  0x80   :  { %11314 = dma.done.wait [#allocation12], 3088  }
  0x81   :  { %11315 = vsyncadd [#allocation12], 4294964208  ;;  %v9886_v0 = vld [vmem:[#allocation5 + $0x4] ss:$12 sps:$4 sm:$0xff]   ;;  %v9888_v1 = vld [vmem:[#allocation5] ss:$12 sps:$4 sm:$0xff]  }
  0x82   :  { %4211 = vmatprep.subr.bf16.mxu0 %v9886_v0  ;;  %v9889_v2 = vld [vmem:[#allocation5 + $0x1c] ss:$12 sps:$4 sm:$0xff]   ;;  %v9891_v3 = vld [vmem:[#allocation5 + $0x18] ss:$12 sps:$4 sm:$0xff]   ;;  %v9892_v4 = vld [vmem:[#allocation5 + $0x34] ss:$12 sps:$4 sm:$0xff]  }
  0x83   :  { %4212 = vmatpush1.bf16.msra.mxu0 %v9888_v1  ;;  %v9894_v5 = vld [vmem:[#allocation5 + $0x30] ss:$12 sps:$4 sm:$0xff]   ;;  %v9895_v6 = vld [vmem:[#allocation5 + $0x4c] ss:$12 sps:$4 sm:$0xff]   ;;  %v9897_v7 = vld [vmem:[#allocation5 + $0x48] ss:$12 sps:$4 sm:$0xff]  }
  0x84   :  { %4213 = vmatprep.subr.bf16.mxu0 %v9889_v2  ;;  %v9898_v8 = vld [vmem:[#allocation5 + $0x64] ss:$12 sps:$4 sm:$0xff]   ;;  %v9900_v9 = vld [vmem:[#allocation5 + $0x60] ss:$12 sps:$4 sm:$0xff]   ;;  %v9901_v10 = vld [vmem:[#allocation5 + $0x7c] ss:$12 sps:$4 sm:$0xff]  }
  0x85   :  { %v9903_v11 = vld [vmem:[#allocation5 + $0x78] ss:$12 sps:$4 sm:$0xff]   ;;  %v9904_v12 = vld [vmem:[#allocation5 + $0x94] ss:$12 sps:$4 sm:$0xff]   ;;  %v9906_v14 = vld [vmem:[#allocation5 + $0x90] ss:$12 sps:$4 sm:$0xff]  }
  0x86   :  { %v9936_v13 = vld [vmem:[#allocation2 + $0x4] ss:$100 sps:$4 sm:$0xff]   ;;  %v9907_v15 = vld [vmem:[#allocation5 + $0xac] ss:$12 sps:$4 sm:$0xff]   ;;  %v9909_v16 = vld [vmem:[#allocation5 + $0xa8] ss:$12 sps:$4 sm:$0xff]  }
  0x87   :  { %4214 = vmatpush1.bf16.msra.mxu0 %v9891_v3  ;;  %4243 = vmatprep.mubr.bf16.mxu0 %v9936_v13  ;;  %v9946_v17 = vld [vmem:[#allocation5 + $0xc8] ss:$12 sps:$4 sm:$0xff]   ;;  %v9910_v18 = vld [vmem:[#allocation5 + $0xc4] ss:$12 sps:$4 sm:$0xff]   ;;  %v9951_v20 = vld [vmem:[#allocation5 + $0xe0] ss:$12 sps:$4 sm:$0xff]  }
  0x88   :  { %4215 = vmatprep.subr.bf16.mxu0 %v9892_v4  ;;  %4802 = vmatprep.mubr.bf16.mxu1 %v9936_v13  ;;  %v9950_v19 = vld [vmem:[#allocation5 + $0x8] ss:$12 sps:$4 sm:$0xff]   ;;  %v9912_v21 = vld [vmem:[#allocation5 + $0xc0] ss:$12 sps:$4 sm:$0xff]   ;;  %v9956_v24 = vld [vmem:[#allocation5 + $0xf8] ss:$12 sps:$4 sm:$0xff]  }
  0x89   :  { %9245 = vmatprep.subr.bf16.mxu1 %v9946_v17  ;;  %v9913_v22 = vld [vmem:[#allocation5 + $0xdc] ss:$12 sps:$4 sm:$0xff]   ;;  %v9955_v23 = vld [vmem:[#allocation5 + $0x20] ss:$12 sps:$4 sm:$0xff]   ;;  %v9915_v25 = vld [vmem:[#allocation5 + $0xd8] ss:$12 sps:$4 sm:$0xff]  }
  0x8a   :  { %9246 = vmatpush3.bf16.msra.mxu1 %v9950_v19  ;;  %v9916_v26 = vld [vmem:[#allocation5 + $0xf4] ss:$12 sps:$4 sm:$0xff]   ;;  %v9960_v27 = vld [vmem:[#allocation5 + $0x38] ss:$12 sps:$4 sm:$0xff]   ;;  %v9961_v28 = vld [vmem:[#allocation5 + $0x110] ss:$12 sps:$4 sm:$0xff]  }
  0x8b   :  { %4216 = vmatpush1.bf16.msra.mxu0 %v9894_v5  ;;  %9247 = vmatprep.subr.bf16.mxu1 %v9951_v20  ;;  %v9918_v29 = vld [vmem:[#allocation5 + $0xf0] ss:$12 sps:$4 sm:$0xff]   ;;  %v9919_v30 = vld [vmem:[#allocation5 + $0x10c] ss:$12 sps:$4 sm:$0xff]   ;;  %v9966_v32 = vld [vmem:[#allocation5 + $0x128] ss:$12 sps:$4 sm:$0xff]  }
  0x8c   :  { %4217 = vmatprep.subr.bf16.mxu0 %v9895_v6  ;;  %v9965_v31 = vld [vmem:[#allocation5 + $0x50] ss:$12 sps:$4 sm:$0xff]   ;;  %v9921_v33 = vld [vmem:[#allocation5 + $0x108] ss:$12 sps:$4 sm:$0xff]   ;;  %v9971_v36 = vld [vmem:[#allocation5 + $0x140] ss:$12 sps:$4 sm:$0xff]  }
  0x8d   :  { %v9922_v34 = vld [vmem:[#allocation5 + $0x124] ss:$12 sps:$4 sm:$0xff]   ;;  %v9970_v35 = vld [vmem:[#allocation5 + $0x68] ss:$12 sps:$4 sm:$0xff]   ;;  %v9924_v37 = vld [vmem:[#allocation5 + $0x120] ss:$12 sps:$4 sm:$0xff]  }
  0x8e   :  { %9248 = vmatpush3.bf16.msra.mxu1 %v9955_v23  ;;  %v9975_v38 = vld [vmem:[#allocation5 + $0x80] ss:$12 sps:$4 sm:$0xff]   ;;  %v9925_v39 = vld [vmem:[#allocation5 + $0x13c] ss:$12 sps:$4 sm:$0xff]   ;;  %v9976_v40 = vld [vmem:[#allocation5 + $0x158] ss:$12 sps:$4 sm:$0xff]  }
  0x8f   :  { %4218 = vmatpush1.bf16.msra.mxu0 %v9897_v7  ;;  %9249 = vmatprep.subr.bf16.mxu1 %v9956_v24  ;;  %v9927_v41 = vld [vmem:[#allocation5 + $0x138] ss:$12 sps:$4 sm:$0xff]   ;;  %v9928_v42 = vld [vmem:[#allocation5 + $0x154] ss:$12 sps:$4 sm:$0xff]   ;;  %v9981_v44 = vld [vmem:[#allocation5 + $0x170] ss:$12 sps:$4 sm:$0xff]  }
  0x90   :  { %4219 = vmatprep.subr.bf16.mxu0 %v9898_v8  ;;  %v9980_v43 = vld [vmem:[#allocation5 + $0x98] ss:$12 sps:$4 sm:$0xff]   ;;  %v9930_v45 = vld [vmem:[#allocation5 + $0x150] ss:$12 sps:$4 sm:$0xff]   ;;  %v9986_v48 = vld [vmem:[#allocation5 + $0x248] ss:$12 sps:$4 sm:$0xff]  }
  0x91   :  { %v9931_v46 = vld [vmem:[#allocation5 + $0x16c] ss:$12 sps:$4 sm:$0xff]   ;;  %v9985_v47 = vld [vmem:[#allocation5 + $0xb0] ss:$12 sps:$4 sm:$0xff]   ;;  %v9933_v49 = vld [vmem:[#allocation5 + $0x168] ss:$12 sps:$4 sm:$0xff]  }
  0x92   :  { %9250 = vmatpush3.bf16.msra.mxu1 %v9960_v27  ;;  %v9934_v50 = vld [vmem:[#allocation2] ss:$100 sps:$4 sm:$0xff]   ;;  %v9939_v51 = vld [vmem:[#allocation5 + $0x184] ss:$12 sps:$4 sm:$0xff]   ;;  %v9990_v52 = vld [vmem:[#allocation5 + $0x188] ss:$12 sps:$4 sm:$0xff]  }
  0x93   :  { %4220 = vmatpush1.bf16.msra.mxu0 %v9900_v9  ;;  %9251 = vmatprep.subr.bf16.mxu1 %v9961_v28  ;;  %v9991_v53 = vld [vmem:[#allocation5 + $0x260] ss:$12 sps:$4 sm:$0xff]   ;;  %v9942_v55 = vld [vmem:[#allocation5 + $0x19c] ss:$12 sps:$4 sm:$0xff]   ;;  %v9996_v57 = vld [vmem:[#allocation5 + $0x278] ss:$12 sps:$4 sm:$0xff]  }
  0x94   :  { %4221 = vmatprep.subr.bf16.mxu0 %v9901_v10  ;;  %v9937_v54 = vld [vmem:[#allocation5 + $0x180] ss:$12 sps:$4 sm:$0xff]   ;;  %v9940_v58 = vld [vmem:[#allocation5 + $0x198] ss:$12 sps:$4 sm:$0xff]   ;;  %v10001_v61 = vld [vmem:[#allocation5 + $0x290] ss:$12 sps:$4 sm:$0xff]  }
  0x95   :  { %v9995_v56 = vld [vmem:[#allocation5 + $0x1a0] ss:$12 sps:$4 sm:$0xff]   ;;  %v10000_v59 = vld [vmem:[#allocation5 + $0x1b8] ss:$12 sps:$4 sm:$0xff]   ;;  %v9943_v62 = vld [vmem:[#allocation5 + $0x1b0] ss:$12 sps:$4 sm:$0xff]  }
  0x96   :  { %9252 = vmatpush3.bf16.msra.mxu1 %v9965_v31  ;;  %v9945_v60 = vld [vmem:[#allocation5 + $0x1b4] ss:$12 sps:$4 sm:$0xff]   ;;  %v9949_v63 = vld [vmem:[#allocation5 + $0x1cc] ss:$12 sps:$4 sm:$0xff]   ;;  %v10005_v0 = vld [vmem:[#allocation5 + $0x1d0] ss:$12 sps:$4 sm:$0xff]  }
  0x97   :  { %4222 = vmatpush1.bf16.msra.mxu0 %v9903_v11  ;;  %9253 = vmatprep.subr.bf16.mxu1 %v9966_v32  ;;  %v10006_v1 = vld [vmem:[#allocation5 + $0x2a8] ss:$12 sps:$4 sm:$0xff]   ;;  %v9954_v5 = vld [vmem:[#allocation5 + $0x1e4] ss:$12 sps:$4 sm:$0xff]   ;;  %v10011_v6 = vld [vmem:[#allocation5 + $0x2c0] ss:$12 sps:$4 sm:$0xff]  }
  0x98   :  { %4223 = vmatprep.subr.bf16.mxu0 %v9904_v12  ;;  %v10014_v2 = vld [vmem:[#allocation2 + $0xc] ss:$100 sps:$4 sm:$0xff]   ;;  %v9952_v7 = vld [vmem:[#allocation5 + $0x1e0] ss:$12 sps:$4 sm:$0xff]   ;;  %v10028_v17 = vld [vmem:[#allocation5 + $0x230] ss:$12 sps:$4 sm:$0xff]  }
  0x99   :  { %v9947_v3 = vld [vmem:[#allocation5 + $0x1c8] ss:$12 sps:$4 sm:$0xff]   ;;  %v10018_v9 = vld [vmem:[#allocation5 + $0x200] ss:$12 sps:$4 sm:$0xff]   ;;  %v10019_v10 = vld [vmem:[#allocation5 + $0x2d8] ss:$12 sps:$4 sm:$0xff]  }
  0x9a   :  { %9254 = vmatpush3.bf16.msra.mxu1 %v9970_v35  ;;  %v10010_v4 = vld [vmem:[#allocation5 + $0x1e8] ss:$12 sps:$4 sm:$0xff]   ;;  %v9957_v11 = vld [vmem:[#allocation5 + $0x1f8] ss:$12 sps:$4 sm:$0xff]   ;;  %v10034_v23 = vld [vmem:[#allocation5 + $0x3e0] ss:$12 sps:$4 sm:$0xff]  }
  0x9b   :  { %4224 = vmatpush1.bf16.msra.mxu0 %v9906_v14  ;;  %9255 = vmatprep.subr.bf16.mxu1 %v9971_v36  ;;  %v9959_v8 = vld [vmem:[#allocation5 + $0x1fc] ss:$12 sps:$4 sm:$0xff]   ;;  %v9964_v12 = vld [vmem:[#allocation5 + $0x214] ss:$12 sps:$4 sm:$0xff]   ;;  %v10023_v13 = vld [vmem:[#allocation5 + $0x218] ss:$12 sps:$4 sm:$0xff]  }
  0x9c   :  { %4225 = vmatprep.subr.bf16.mxu0 %v9907_v15  ;;  %v10024_v14 = vld [vmem:[#allocation5 + $0x2f0] ss:$12 sps:$4 sm:$0xff]   ;;  %v9967_v19 = vld [vmem:[#allocation5 + $0x228] ss:$12 sps:$4 sm:$0xff]   ;;  %v9972_v24 = vld [vmem:[#allocation5 + $0x240] ss:$12 sps:$4 sm:$0xff]  }
  0x9d   :  { %v9962_v15 = vld [vmem:[#allocation5 + $0x210] ss:$12 sps:$4 sm:$0xff]   ;;  %v10039_v27 = vld [vmem:[#allocation5 + $0x3f8] ss:$12 sps:$4 sm:$0xff]   ;;  %v10049_v35 = vld [vmem:[#allocation5 + $0x428] ss:$12 sps:$4 sm:$0xff]  }
  0x9e   :  { %9256 = vmatpush3.bf16.msra.mxu1 %v9975_v38  ;;  %v9974_v20 = vld [vmem:[#allocation5 + $0x244] ss:$12 sps:$4 sm:$0xff]   ;;  %v9987_v36 = vld [vmem:[#allocation5 + $0x288] ss:$12 sps:$4 sm:$0xff]   ;;  %vm11334_vm0 = vmmov 0   ;;  %vm4207_vm1 = vcmask 523264  }
  0x9f   :  { %4226 = vmatpush1.bf16.msra.mxu0 %v9909_v16  ;;  %9257 = vmatprep.subr.bf16.mxu1 %v9976_v40  ;;  %v9969_v16 = vld [vmem:[#allocation5 + $0x22c] ss:$12 sps:$4 sm:$0xff]   ;;  %v10044_v31 = vld [vmem:[#allocation5 + $0x410] ss:$12 sps:$4 sm:$0xff]   ;;  %v10053_v38 = vld [vmem:[#allocation5 + $0x368] ss:$12 sps:$4 sm:$0xff]  }
  0xa0   :  { %4227 = vmatprep.subr.bf16.mxu0 %v9910_v18  ;;  %v10029_v18 = vld [vmem:[#allocation5 + $0x3c8] ss:$12 sps:$4 sm:$0xff]   ;;  %v9977_v28 = vld [vmem:[#allocation5 + $0x258] ss:$12 sps:$4 sm:$0xff]   ;;  %v9982_v32 = vld [vmem:[#allocation5 + $0x270] ss:$12 sps:$4 sm:$0xff]  }
  0xa1   :  { %v10071_v40 = vld [vmem:[#allocation2 + $0x14] ss:$100 sps:$4 sm:$0xff]   ;;  %s11336_s6 = smov [#allocation14]  }
  0xa2   :  { %9258 = vmatpush3.bf16.msra.mxu1 %v9980_v43  ;;  %v10058_v43 = vld [vmem:[#allocation5 + $0x380] ss:$12 sps:$4 sm:$0xff]   ;;  %s8302_s0 = sshll.u32 %s11336_s6, 4  ;;  %s8303_s0 = int_to_ptr.vmem [resolvable:$true] %s8302_s0 }
  0xa3   :  { %4228 = vmatpush1.bf16.msra.mxu0 %v9912_v21  ;;  %9259 = vmatprep.subr.bf16.mxu1 %v9981_v44  ;;  %v11470_v21 = vld [vmem:[#allocation2 + $0x8] ss:$100 sps:$4 sm:$0xff]   ;;  %s11286_s15 = scalar_lea.vmem %s8303_s0, 256  ;;  %p11291_p1 = scmp.lt.s32.totalorder %s8303_s0, %s8303_s0 }
  0xa4   :  { %4229 = vmatprep.subr.bf16.mxu0 %v9913_v22  ;;  %v10033_v22 = vld [vmem:[#allocation5 + $0x308] ss:$12 sps:$4 sm:$0xff]   ;;  %v10059_v44 = vld [vmem:[#allocation5 + $0x458] ss:$12 sps:$4 sm:$0xff]   ;;  %p11287_p0 = scmp.ne.s32.totalorder %s8303_s0, %s11286_s15  ;;  %p11292_p2 = scmp.lt.s32.totalorder %s11286_s15, %s11286_s15 }
  0xa6   :  { %9260 = vmatpush3.bf16.msra.mxu1 %v9985_v47  ;;  %v10063_v47 = vld [vmem:[#allocation5 + $0x398] ss:$12 sps:$4 sm:$0xff]   ;;  %p11293_p3 = por %p11292_p2, %p11291_p1 }
  0xa7   :  { %4230 = vmatpush1.bf16.msra.mxu0 %v9915_v25  ;;  %9267 = vmatprep.subr.bf16.mxu1 %v9986_v48  ;;  %v10038_v25 = vld [vmem:[#allocation5 + $0x320] ss:$12 sps:$4 sm:$0xff]   ;;  %v10064_v48 = vld [vmem:[#allocation5 + $0x470] ss:$12 sps:$4 sm:$0xff]  }
  0xa8   :  { %4231 = vmatprep.subr.bf16.mxu0 %v9916_v26  ;;  %v9979_v26 = vld [vmem:[#allocation5 + $0x25c] ss:$12 sps:$4 sm:$0xff]   ;;  %p11294_p4 = pnand %p11293_p3, %p11287_p0 }
  0xa9   :  { %4803 = vmatmul.mubr.bf16.vlgmr.msra.gmra.mrb[0].mxu1 %v9934_v50 }
  0xaa   :  { %9268 = vmatpush3.bf16.msra.mxu1 %v9990_v52  ;;  %4843 = vmatprep.mubr.bf16.mxu1 %v10014_v2  ;;  %v10072_v52 = vld [vmem:[#allocation5 + $0x548] ss:$12 sps:$4 sm:$0xff]  }
  0xab   :  { %4232 = vmatpush1.bf16.msra.mxu0 %v9918_v29  ;;  %9269 = vmatprep.subr.bf16.mxu1 %v9991_v53  ;;  %v9984_v29 = vld [vmem:[#allocation5 + $0x274] ss:$12 sps:$4 sm:$0xff]  }
  0xac   :  { %4233 = vmatprep.subr.bf16.mxu0 %v9919_v30  ;;  %v10043_v30 = vld [vmem:[#allocation5 + $0x338] ss:$12 sps:$4 sm:$0xff]   ;;  %v10007_v53 = vld [vmem:[#allocation5 + $0x2e8] ss:$12 sps:$4 sm:$0xff]  }
  0xae   :  { %9270 = vmatpush3.bf16.msra.mxu1 %v9995_v56  ;;  %v10017_v56 = vld [vmem:[#allocation5 + $0x304] ss:$12 sps:$4 sm:$0xff]  }
  0xaf   :  { %4234 = vmatpush1.bf16.msra.mxu0 %v9921_v33  ;;  %9271 = vmatprep.subr.bf16.mxu1 %v9996_v57  ;;  %v9989_v33 = vld [vmem:[#allocation5 + $0x28c] ss:$12 sps:$4 sm:$0xff]  }
  0xb0   :  { %4235 = vmatprep.subr.bf16.mxu0 %v9922_v34  ;;  %v10048_v34 = vld [vmem:[#allocation5 + $0x350] ss:$12 sps:$4 sm:$0xff]   ;;  %v10077_v57 = vld [vmem:[#allocation5 + $0x560] ss:$12 sps:$4 sm:$0xff]  }
  0xb2   :  { %9272 = vmatpush3.bf16.msra.mxu1 %v10000_v59  ;;  %v10022_v59 = vld [vmem:[#allocation5 + $0x31c] ss:$12 sps:$4 sm:$0xff]  }
  0xb3   :  { %4236 = vmatpush1.bf16.msra.mxu0 %v9924_v37  ;;  %9273 = vmatprep.subr.bf16.mxu1 %v10001_v61  ;;  %v9994_v37 = vld [vmem:[#allocation5 + $0x2a4] ss:$12 sps:$4 sm:$0xff]  }
  0xb4   :  { %4237 = vmatprep.subr.bf16.mxu0 %v9925_v39  ;;  %v10054_v39 = vld [vmem:[#allocation5 + $0x440] ss:$12 sps:$4 sm:$0xff]   ;;  %v10082_v61 = vld [vmem:[#allocation5 + $0x578] ss:$12 sps:$4 sm:$0xff]  }
  0xb6   :  { %9274 = vmatpush3.bf16.msra.mxu1 %v10005_v0  ;;  %v10086_v0 = vld [vmem:[#allocation5 + $0x4b8] ss:$12 sps:$4 sm:$0xff]  }
  0xb7   :  { %4238 = vmatpush1.bf16.msra.mxu0 %v9927_v41  ;;  %9275 = vmatprep.subr.bf16.mxu1 %v10006_v1  ;;  %v9992_v41 = vld [vmem:[#allocation5 + $0x2a0] ss:$12 sps:$4 sm:$0xff]   ;;  %v10087_v1 = vld [vmem:[#allocation5 + $0x590] ss:$12 sps:$4 sm:$0xff]  }
  0xb8   :  { %4239 = vmatprep.subr.bf16.mxu0 %v9928_v42  ;;  %v9999_v42 = vld [vmem:[#allocation5 + $0x2bc] ss:$12 sps:$4 sm:$0xff]  }
  0xba   :  { %9276 = vmatpush3.bf16.msra.mxu1 %v10010_v4  ;;  %v10091_v4 = vld [vmem:[#allocation5 + $0x4d0] ss:$12 sps:$4 sm:$0xff]  }
  0xbb   :  { %4240 = vmatpush1.bf16.msra.mxu0 %v9930_v45  ;;  %9277 = vmatprep.subr.bf16.mxu1 %v10011_v6  ;;  %v9997_v45 = vld [vmem:[#allocation5 + $0x2b8] ss:$12 sps:$4 sm:$0xff]  }
  0xbc   :  { %4241 = vmatprep.subr.bf16.mxu0 %v9931_v46  ;;  %v10004_v46 = vld [vmem:[#allocation5 + $0x2d4] ss:$12 sps:$4 sm:$0xff]  }
  0xbd   :  { %v11477_v6 = vld [vmem:[#allocation2 + $0x1c] ss:$100 sps:$4 sm:$0xff]  }
  0xbe   :  { %9278 = vmatpush3.bf16.msra.mxu1 %v10018_v9  ;;  %v10096_v9 = vld [vmem:[#allocation5 + $0x4e8] ss:$12 sps:$4 sm:$0xff]  }
  0xbf   :  { %4242 = vmatpush1.bf16.msra.mxu0 %v9933_v49  ;;  %9279 = vmatprep.subr.bf16.mxu1 %v10019_v10  ;;  %v10002_v49 = vld [vmem:[#allocation5 + $0x2d0] ss:$12 sps:$4 sm:$0xff]   ;;  %v10097_v10 = vld [vmem:[#allocation5 + $0x5c0] ss:$12 sps:$4 sm:$0xff]  }
  0xc0   :  { %4254 = vmatprep.subr.bf16.mxu0 %v9939_v51  ;;  %v10068_v51 = vld [vmem:[#allocation5 + $0x3b0] ss:$12 sps:$4 sm:$0xff]  }
  0xc2   :  { %4244 = vmatmul.mubr.bf16.vlgmr.msra.gmra.mrb[0].mxu0 %v9934_v50  ;;  %9280 = vmatpush3.bf16.msra.mxu1 %v10023_v13  ;;  %v10009_v50 = vld [vmem:[#allocation5 + $0x2ec] ss:$12 sps:$4 sm:$0xff]  }
  0xc3   :  { %4255 = vmatpush1.bf16.msra.mxu0 %v9937_v54  ;;  %4286 = vmatprep.mubr.bf16.mxu0 %v10014_v2  ;;  %v11473_v54 = vld [vmem:[#allocation2 + $0x10] ss:$100 sps:$4 sm:$0xff]   ;;  %v10025_v2 = vld [vmem:[#allocation5 + $0x330] ss:$12 sps:$4 sm:$0xff]  }
  0xc4   :  { %4256 = vmatprep.subr.bf16.mxu0 %v9942_v55  ;;  %9281 = vmatprep.subr.bf16.mxu1 %v10024_v14  ;;  %v10076_v55 = vld [vmem:[#allocation5 + $0x488] ss:$12 sps:$4 sm:$0xff]   ;;  %v10101_v13 = vld [vmem:[#allocation5 + $0x500] ss:$12 sps:$4 sm:$0xff]   ;;  %v10102_v14 = vld [vmem:[#allocation5 + $0x5d8] ss:$12 sps:$4 sm:$0xff]  }
  0xc6   :  { %9282 = vmatpush3.bf16.msra.mxu1 %v10028_v17  ;;  %v10106_v17 = vld [vmem:[#allocation5 + $0x518] ss:$12 sps:$4 sm:$0xff]  }
  0xc7   :  { %4257 = vmatpush1.bf16.msra.mxu0 %v9940_v58  ;;  %9289 = vmatprep.subr.bf16.mxu1 %v10029_v18  ;;  %v10015_v58 = vld [vmem:[#allocation5 + $0x300] ss:$12 sps:$4 sm:$0xff]   ;;  %v10107_v18 = vld [vmem:[#allocation5 + $0x5f0] ss:$12 sps:$4 sm:$0xff]  }
  0xc8   :  { %4258 = vmatprep.subr.bf16.mxu0 %v9945_v60  ;;  %v10081_v60 = vld [vmem:[#allocation5 + $0x4a0] ss:$12 sps:$4 sm:$0xff]  }
  0xc9   :  { %4844 = vmatmul.mubr.bf16.vlgmr.msra.gmra.mrb[4].mxu1 %v11470_v21 }
  0xca   :  { %9290 = vmatpush3.bf16.msra.mxu1 %v10033_v22  ;;  %4884 = vmatprep.mubr.bf16.mxu1 %v10071_v40  ;;  %v10115_v22 = vld [vmem:[#allocation5 + $0x6c8] ss:$12 sps:$4 sm:$0xff]  }
  0xcb   :  { %4259 = vmatpush1.bf16.msra.mxu0 %v9943_v62  ;;  %9291 = vmatprep.subr.bf16.mxu1 %v10034_v23  ;;  %v10020_v62 = vld [vmem:[#allocation5 + $0x318] ss:$12 sps:$4 sm:$0xff]   ;;  %v10050_v23 = vld [vmem:[#allocation5 + $0x3a8] ss:$12 sps:$4 sm:$0xff]  }
  0xcc   :  { %4260 = vmatprep.subr.bf16.mxu0 %v9949_v63  ;;  %v10027_v63 = vld [vmem:[#allocation5 + $0x334] ss:$12 sps:$4 sm:$0xff]  }
  0xce   :  { %9292 = vmatpush3.bf16.msra.mxu1 %v10038_v25  ;;  %v11480_v25 = vld [vmem:[#allocation2 + $0x18] ss:$100 sps:$4 sm:$0xff]  }
  0xcf   :  { %4261 = vmatpush1.bf16.msra.mxu0 %v9947_v3  ;;  %9293 = vmatprep.subr.bf16.mxu1 %v10039_v27  ;;  %v10032_v3 = vld [vmem:[#allocation5 + $0x34c] ss:$12 sps:$4 sm:$0xff]  }
  0xd0   :  { %4262 = vmatprep.subr.bf16.mxu0 %v9954_v5  ;;  %v10092_v5 = vld [vmem:[#allocation5 + $0x5a8] ss:$12 sps:$4 sm:$0xff]   ;;  %v10120_v27 = vld [vmem:[#allocation5 + $0x6e0] ss:$12 sps:$4 sm:$0xff]  }
  0xd2   :  { %9294 = vmatpush3.bf16.msra.mxu1 %v10043_v30  ;;  %v10124_v30 = vld [vmem:[#allocation5 + $0x620] ss:$12 sps:$4 sm:$0xff]  }
  0xd3   :  { %4263 = vmatpush1.bf16.msra.mxu0 %v9952_v7  ;;  %9295 = vmatprep.subr.bf16.mxu1 %v10044_v31  ;;  %v10030_v7 = vld [vmem:[#allocation5 + $0x348] ss:$12 sps:$4 sm:$0xff]   ;;  %v10125_v31 = vld [vmem:[#allocation5 + $0x6f8] ss:$12 sps:$4 sm:$0xff]  }
  0xd4   :  { %4264 = vmatprep.subr.bf16.mxu0 %v9959_v8  ;;  %v10037_v8 = vld [vmem:[#allocation5 + $0x364] ss:$12 sps:$4 sm:$0xff]  }
  0xd6   :  { %9296 = vmatpush3.bf16.msra.mxu1 %v10048_v34  ;;  %v10129_v34 = vld [vmem:[#allocation5 + $0x638] ss:$12 sps:$4 sm:$0xff]  }
  0xd7   :  { %4265 = vmatpush1.bf16.msra.mxu0 %v9957_v11  ;;  %9297 = vmatprep.subr.bf16.mxu1 %v10049_v35  ;;  %v10035_v11 = vld [vmem:[#allocation5 + $0x360] ss:$12 sps:$4 sm:$0xff]   ;;  %v10130_v35 = vld [vmem:[#allocation5 + $0x710] ss:$12 sps:$4 sm:$0xff]  }
  0xd8   :  { %4266 = vmatprep.subr.bf16.mxu0 %v9964_v12  ;;  %v10042_v12 = vld [vmem:[#allocation5 + $0x37c] ss:$12 sps:$4 sm:$0xff]  }
  0xda   :  { %9298 = vmatpush3.bf16.msra.mxu1 %v10053_v38  ;;  %v10075_v38 = vld [vmem:[#allocation5 + $0x40c] ss:$12 sps:$4 sm:$0xff]  }
  0xdb   :  { %4267 = vmatpush1.bf16.msra.mxu0 %v9962_v15  ;;  %9299 = vmatprep.subr.bf16.mxu1 %v10054_v39  ;;  %v10040_v15 = vld [vmem:[#allocation5 + $0x378] ss:$12 sps:$4 sm:$0xff]   ;;  %v10134_v39 = vld [vmem:[#allocation5 + $0x650] ss:$12 sps:$4 sm:$0xff]  }
  0xdc   :  { %4268 = vmatprep.subr.bf16.mxu0 %v9969_v16  ;;  %v10047_v16 = vld [vmem:[#allocation5 + $0x394] ss:$12 sps:$4 sm:$0xff]  }
  0xde   :  { %9300 = vmatpush3.bf16.msra.mxu1 %v10058_v43  ;;  %v10139_v43 = vld [vmem:[#allocation5 + $0x668] ss:$12 sps:$4 sm:$0xff]  }
  0xdf   :  { %4269 = vmatpush1.bf16.msra.mxu0 %v9967_v19  ;;  %9301 = vmatprep.subr.bf16.mxu1 %v10059_v44  ;;  %v10045_v19 = vld [vmem:[#allocation5 + $0x390] ss:$12 sps:$4 sm:$0xff]   ;;  %v10140_v44 = vld [vmem:[#allocation5 + $0x740] ss:$12 sps:$4 sm:$0xff]  }
  0xe0   :  { %4270 = vmatprep.subr.bf16.mxu0 %v9974_v20  ;;  %v10111_v20 = vld [vmem:[#allocation5 + $0x530] ss:$12 sps:$4 sm:$0xff]  }
  0xe2   :  { %9302 = vmatpush3.bf16.msra.mxu1 %v10063_v47  ;;  %v10144_v47 = vld [vmem:[#allocation5 + $0x680] ss:$12 sps:$4 sm:$0xff]  }
  0xe3   :  { %4271 = vmatpush1.bf16.msra.mxu0 %v9972_v24  ;;  %9303 = vmatprep.subr.bf16.mxu1 %v10064_v48  ;;  %v10057_v24 = vld [vmem:[#allocation5 + $0x3c4] ss:$12 sps:$4 sm:$0xff]  }
  0xe4   :  { %4272 = vmatprep.subr.bf16.mxu0 %v9979_v26  ;;  %v10119_v26 = vld [vmem:[#allocation5 + $0x608] ss:$12 sps:$4 sm:$0xff]   ;;  %v10145_v48 = vld [vmem:[#allocation5 + $0x758] ss:$12 sps:$4 sm:$0xff]  }
  0xe6   :  { %9304 = vmatpush3.bf16.msra.mxu1 %v10068_v51  ;;  %v10090_v51 = vld [vmem:[#allocation5 + $0x454] ss:$12 sps:$4 sm:$0xff]  }
  0xe7   :  { %4273 = vmatpush1.bf16.msra.mxu0 %v9977_v28  ;;  %9311 = vmatprep.subr.bf16.mxu1 %v10072_v52  ;;  %v10055_v28 = vld [vmem:[#allocation5 + $0x3c0] ss:$12 sps:$4 sm:$0xff]   ;;  %v10150_v52 = vld [vmem:[#allocation5 + $0x770] ss:$12 sps:$4 sm:$0xff]  }
  0xe8   :  { %4274 = vmatprep.subr.bf16.mxu0 %v9984_v29  ;;  %v10062_v29 = vld [vmem:[#allocation5 + $0x3dc] ss:$12 sps:$4 sm:$0xff]  }
  0xe9   :  { %4885 = vmatmul.mubr.bf16.vlgmr.msra.gmra.mrb[8].mxu1 %v11473_v54 }
  0xea   :  { %9312 = vmatpush3.bf16.msra.mxu1 %v10076_v55  ;;  %4925 = vmatprep.mubr.bf16.mxu1 %v11477_v6  ;;  %v10095_v55 = vld [vmem:[#allocation5 + $0x46c] ss:$12 sps:$4 sm:$0xff]  }
  0xeb   :  { %4275 = vmatpush1.bf16.msra.mxu0 %v9982_v32  ;;  %9313 = vmatprep.subr.bf16.mxu1 %v10077_v57  ;;  %v10060_v32 = vld [vmem:[#allocation5 + $0x3d8] ss:$12 sps:$4 sm:$0xff]   ;;  %v10158_v57 = vld [vmem:[#allocation5 + $0x848] ss:$12 sps:$4 sm:$0xff]  }
  0xec   :  { %4276 = vmatprep.subr.bf16.mxu0 %v9989_v33  ;;  %v10067_v33 = vld [vmem:[#allocation5 + $0x3f4] ss:$12 sps:$4 sm:$0xff]  }
  0xee   :  { %9314 = vmatpush3.bf16.msra.mxu1 %v10081_v60  ;;  %v10100_v60 = vld [vmem:[#allocation5 + $0x484] ss:$12 sps:$4 sm:$0xff]  }
  0xef   :  { %4277 = vmatpush1.bf16.msra.mxu0 %v9987_v36  ;;  %9315 = vmatprep.subr.bf16.mxu1 %v10082_v61  ;;  %v11483_v36 = vld [vmem:[#allocation2 + $0x24] ss:$100 sps:$4 sm:$0xff]   ;;  %v10162_v61 = vld [vmem:[#allocation5 + $0x788] ss:$12 sps:$4 sm:$0xff]  }
  0xf0   :  { %4278 = vmatprep.subr.bf16.mxu0 %v9994_v37  ;;  %v10065_v37 = vld [vmem:[#allocation5 + $0x3f0] ss:$12 sps:$4 sm:$0xff]  }
  0xf2   :  { %9316 = vmatpush3.bf16.msra.mxu1 %v10086_v0  ;;  %v10105_v0 = vld [vmem:[#allocation5 + $0x49c] ss:$12 sps:$4 sm:$0xff]  }
  0xf3   :  { %4279 = vmatpush1.bf16.msra.mxu0 %v9992_v41  ;;  %9317 = vmatprep.subr.bf16.mxu1 %v10087_v1  ;;  %v10073_v41 = vld [vmem:[#allocation5 + $0x408] ss:$12 sps:$4 sm:$0xff]   ;;  %v10167_v1 = vld [vmem:[#allocation5 + $0x7a0] ss:$12 sps:$4 sm:$0xff]  }
  0xf4   :  { %4280 = vmatprep.subr.bf16.mxu0 %v9999_v42  ;;  %v10080_v42 = vld [vmem:[#allocation5 + $0x424] ss:$12 sps:$4 sm:$0xff]  }
  0xf6   :  { %9318 = vmatpush3.bf16.msra.mxu1 %v10091_v4  ;;  %v10103_v4 = vld [vmem:[#allocation5 + $0x498] ss:$12 sps:$4 sm:$0xff]  }
  0xf7   :  { %4281 = vmatpush1.bf16.msra.mxu0 %v9997_v45  ;;  %9319 = vmatprep.subr.bf16.mxu1 %v10092_v5  ;;  %v10078_v45 = vld [vmem:[#allocation5 + $0x420] ss:$12 sps:$4 sm:$0xff]  }
  0xf8   :  { %4282 = vmatprep.subr.bf16.mxu0 %v10004_v46  ;;  %v10085_v46 = vld [vmem:[#allocation5 + $0x43c] ss:$12 sps:$4 sm:$0xff]   ;;  %v10110_v5 = vld [vmem:[#allocation5 + $0x4b4] ss:$12 sps:$4 sm:$0xff]  }
  0xfa   :  { %9320 = vmatpush3.bf16.msra.mxu1 %v10096_v9  ;;  %v10108_v9 = vld [vmem:[#allocation5 + $0x4b0] ss:$12 sps:$4 sm:$0xff]  }
  0xfb   :  { %4283 = vmatpush1.bf16.msra.mxu0 %v10002_v49  ;;  %9321 = vmatprep.subr.bf16.mxu1 %v10097_v10  ;;  %v10083_v49 = vld [vmem:[#allocation5 + $0x438] ss:$12 sps:$4 sm:$0xff]  }
  0xfc   :  { %4284 = vmatprep.subr.bf16.mxu0 %v10009_v50  ;;  %v10149_v50 = vld [vmem:[#allocation5 + $0x698] ss:$12 sps:$4 sm:$0xff]  }
  0xfd   :  { %v10118_v10 = vld [vmem:[#allocation5 + $0x4cc] ss:$12 sps:$4 sm:$0xff]  }
  0xfe   :  { %9322 = vmatpush3.bf16.msra.mxu1 %v10101_v13  ;;  %v10123_v13 = vld [vmem:[#allocation5 + $0x4e4] ss:$12 sps:$4 sm:$0xff]  }
  0xff   :  { %4285 = vmatpush1.bf16.msra.mxu0 %v10007_v53  ;;  %9323 = vmatprep.subr.bf16.mxu1 %v10102_v14  ;;  %v10088_v53 = vld [vmem:[#allocation5 + $0x450] ss:$12 sps:$4 sm:$0xff]   ;;  %v10182_v14 = vld [vmem:[#allocation5 + $0x7e8] ss:$12 sps:$4 sm:$0xff]  }
 0x100   :  { %4297 = vmatprep.subr.bf16.mxu0 %v10017_v56  ;;  %v10154_v56 = vld [vmem:[#allocation5 + $0x6b0] ss:$12 sps:$4 sm:$0xff]  }
 0x102   :  { %4287 = vmatmul.mubr.bf16.vlgmr.msra.gmra.mrb[0].mxu0 %v11470_v21  ;;  %9324 = vmatpush3.bf16.msra.mxu1 %v10106_v17  ;;  %v10052_v21 = vld [vmem:[#allocation5 + $0x3ac] ss:$12 sps:$4 sm:$0xff]   ;;  %v10128_v17 = vld [vmem:[#allocation5 + $0x4fc] ss:$12 sps:$4 sm:$0xff]  }
 0x103   :  { %4298 = vmatpush1.bf16.msra.mxu0 %v10015_v58  ;;  %4329 = vmatprep.mubr.bf16.mxu0 %v10071_v40  ;;  %v10135_v40 = vld [vmem:[#allocation5 + $0x728] ss:$12 sps:$4 sm:$0xff]  }
 0x104   :  { %4299 = vmatprep.subr.bf16.mxu0 %v10022_v59  ;;  %9325 = vmatprep.subr.bf16.mxu1 %v10107_v18  ;;  %v10093_v58 = vld [vmem:[#allocation5 + $0x468] ss:$12 sps:$4 sm:$0xff]   ;;  %v10155_v59 = vld [vmem:[#allocation2 + $0x20] ss:$100 sps:$4 sm:$0xff]  }
 0x105   :  { %v10188_v18 = vld [vmem:[#allocation5 + $0x8d8] ss:$12 sps:$4 sm:$0xff]  }
 0x106   :  { %9326 = vmatpush3.bf16.msra.mxu1 %v10111_v20  ;;  %v10133_v20 = vld [vmem:[#allocation5 + $0x514] ss:$12 sps:$4 sm:$0xff]  }
 0x107   :  { %4300 = vmatpush1.bf16.msra.mxu0 %v10020_v62  ;;  %9333 = vmatprep.subr.bf16.mxu1 %v10115_v22  ;;  %v10163_v62 = vld [vmem:[#allocation5 + $0x860] ss:$12 sps:$4 sm:$0xff]   ;;  %v10193_v22 = vld [vmem:[#allocation5 + $0x8f0] ss:$12 sps:$4 sm:$0xff]  }
 0x108   :  { %4301 = vmatprep.subr.bf16.mxu0 %v10027_v63  ;;  %v10098_v63 = vld [vmem:[#allocation5 + $0x480] ss:$12 sps:$4 sm:$0xff]  }
 0x109   :  { %4926 = vmatmul.mubr.bf16.vlgmr.msra.gmra.mrb[12].mxu1 %v11480_v25 }
 0x10a   :  { %9334 = vmatpush3.bf16.msra.mxu1 %v10119_v26  ;;  %4966 = vmatprep.mubr.bf16.mxu1 %v11483_v36  ;;  %v10197_v26 = vld [vmem:[#allocation5 + $0x830] ss:$12 sps:$4 sm:$0xff]  }
 0x10b   :  { %4302 = vmatpush1.bf16.msra.mxu0 %v10025_v2  ;;  %9335 = vmatprep.subr.bf16.mxu1 %v10120_v27  ;;  %v10168_v2 = vld [vmem:[#allocation5 + $0x878] ss:$12 sps:$4 sm:$0xff]   ;;  %v10201_v27 = vld [vmem:[#allocation5 + $0x9c8] ss:$12 sps:$4 sm:$0xff]  }
 0x10c   :  { %4303 = vmatprep.subr.bf16.mxu0 %v10032_v3  ;;  %v10200_v3 = vld [vmem:[#allocation2 + $0x2c] ss:$100 sps:$4 sm:$0xff]  }
 0x10e   :  { %9336 = vmatpush3.bf16.msra.mxu1 %v10124_v30  ;;  %v10198_v30 = vld [vmem:[#allocation2 + $0x28] ss:$100 sps:$4 sm:$0xff]  }
 0x10f   :  { %4304 = vmatpush1.bf16.msra.mxu0 %v10030_v7  ;;  %9337 = vmatprep.subr.bf16.mxu1 %v10125_v31  ;;  %v10172_v7 = vld [vmem:[#allocation5 + $0x7b8] ss:$12 sps:$4 sm:$0xff]   ;;  %v10205_v31 = vld [vmem:[#allocation5 + $0x908] ss:$12 sps:$4 sm:$0xff]  }
 0x110   :  { %4305 = vmatprep.subr.bf16.mxu0 %v10037_v8  ;;  %v10173_v8 = vld [vmem:[#allocation5 + $0x890] ss:$12 sps:$4 sm:$0xff]  }
 0x112   :  { %9338 = vmatpush3.bf16.msra.mxu1 %v10129_v34  ;;  %v10141_v34 = vld [vmem:[#allocation5 + $0x540] ss:$12 sps:$4 sm:$0xff]  }
 0x113   :  { %4306 = vmatpush1.bf16.msra.mxu0 %v10035_v11  ;;  %9339 = vmatprep.subr.bf16.mxu1 %v10130_v35  ;;  %v10177_v11 = vld [vmem:[#allocation5 + $0x7d0] ss:$12 sps:$4 sm:$0xff]  }
 0x114   :  { %4307 = vmatprep.subr.bf16.mxu0 %v10042_v12  ;;  %v10178_v12 = vld [vmem:[#allocation5 + $0x8a8] ss:$12 sps:$4 sm:$0xff]  }
 0x115   :  { %v10148_v35 = vld [vmem:[#allocation5 + $0x55c] ss:$12 sps:$4 sm:$0xff]  }
 0x116   :  { %9340 = vmatpush3.bf16.msra.mxu1 %v10134_v39  ;;  %v10146_v39 = vld [vmem:[#allocation5 + $0x558] ss:$12 sps:$4 sm:$0xff]  }
 0x117   :  { %4308 = vmatpush1.bf16.msra.mxu0 %v10040_v15  ;;  %9341 = vmatprep.subr.bf16.mxu1 %v10135_v40  ;;  %v10183_v15 = vld [vmem:[#allocation5 + $0x8c0] ss:$12 sps:$4 sm:$0xff]  }
 0x118   :  { %4309 = vmatprep.subr.bf16.mxu0 %v10047_v16  ;;  %v10121_v16 = vld [vmem:[#allocation5 + $0x4e0] ss:$12 sps:$4 sm:$0xff]  }
 0x119   :  { %v10153_v40 = vld [vmem:[#allocation5 + $0x574] ss:$12 sps:$4 sm:$0xff]  }
 0x11a   :  { %9342 = vmatpush3.bf16.msra.mxu1 %v10139_v43  ;;  %v10151_v43 = vld [vmem:[#allocation5 + $0x570] ss:$12 sps:$4 sm:$0xff]  }
 0x11b   :  { %4310 = vmatpush1.bf16.msra.mxu0 %v10045_v19  ;;  %9343 = vmatprep.subr.bf16.mxu1 %v10140_v44  ;;  %v10126_v19 = vld [vmem:[#allocation5 + $0x4f8] ss:$12 sps:$4 sm:$0xff]  }
 0x11c   :  { %4311 = vmatprep.subr.bf16.mxu0 %v10052_v21  ;;  %v10192_v21 = vld [vmem:[#allocation5 + $0x818] ss:$12 sps:$4 sm:$0xff]  }
 0x11d   :  { %v10161_v44 = vld [vmem:[#allocation5 + $0x58c] ss:$12 sps:$4 sm:$0xff]  }
 0x11e   :  { %9344 = vmatpush3.bf16.msra.mxu1 %v10144_v47  ;;  %v10159_v47 = vld [vmem:[#allocation5 + $0x588] ss:$12 sps:$4 sm:$0xff]  }
 0x11f   :  { %4312 = vmatpush1.bf16.msra.mxu0 %v10050_v23  ;;  %9345 = vmatprep.subr.bf16.mxu1 %v10145_v48  ;;  %v10131_v23 = vld [vmem:[#allocation5 + $0x510] ss:$12 sps:$4 sm:$0xff]   ;;  %v10225_v48 = vld [vmem:[#allocation5 + $0x968] ss:$12 sps:$4 sm:$0xff]  }
 0x120   :  { %4313 = vmatprep.subr.bf16.mxu0 %v10057_v24  ;;  %v10138_v24 = vld [vmem:[#allocation5 + $0x52c] ss:$12 sps:$4 sm:$0xff]  }
 0x122   :  { %9346 = vmatpush3.bf16.msra.mxu1 %v10149_v50  ;;  %v10226_v50 = vld [vmem:[#allocation5 + $0xa40] ss:$12 sps:$4 sm:$0xff]  }
 0x123   :  { %4314 = vmatpush1.bf16.msra.mxu0 %v10055_v28  ;;  %9347 = vmatprep.subr.bf16.mxu1 %v10150_v52  ;;  %v10136_v28 = vld [vmem:[#allocation5 + $0x528] ss:$12 sps:$4 sm:$0xff]  }
 0x124   :  { %4315 = vmatprep.subr.bf16.mxu0 %v10062_v29  ;;  %v10143_v29 = vld [vmem:[#allocation5 + $0x544] ss:$12 sps:$4 sm:$0xff]   ;;  %v10171_v52 = vld [vmem:[#allocation5 + $0x5bc] ss:$12 sps:$4 sm:$0xff]  }
 0x126   :  { %9348 = vmatpush3.bf16.msra.mxu1 %v10154_v56  ;;  %v10169_v56 = vld [vmem:[#allocation5 + $0x5b8] ss:$12 sps:$4 sm:$0xff]  }
 0x127   :  { %4316 = vmatpush1.bf16.msra.mxu0 %v10060_v32  ;;  %9355 = vmatprep.subr.bf16.mxu1 %v10158_v57  ;;  %v10206_v32 = vld [vmem:[#allocation5 + $0x9e0] ss:$12 sps:$4 sm:$0xff]  }
 0x128   :  { %4317 = vmatprep.subr.bf16.mxu0 %v10067_v33  ;;  %v10243_v33 = vld [vmem:[#allocation2 + $0x34] ss:$100 sps:$4 sm:$0xff]   ;;  %v10176_v57 = vld [vmem:[#allocation5 + $0x5d4] ss:$12 sps:$4 sm:$0xff]  }
 0x129   :  { %4967 = vmatmul.mubr.bf16.vlgmr.msra.gmra.mrb[16].mxu1 %v10155_v59  ;;  %v10236_v59 = vld [vmem:[#allocation5 + $0xa70] ss:$12 sps:$4 sm:$0xff]  }
 0x12a   :  { %9356 = vmatpush3.bf16.msra.mxu1 %v10162_v61  ;;  %5007 = vmatprep.mubr.bf16.mxu1 %v10200_v3  ;;  %v10181_v61 = vld [vmem:[#allocation5 + $0x5ec] ss:$12 sps:$4 sm:$0xff]   ;;  %v10248_v3 = vld [vmem:[#allocation5 + $0xa88] ss:$12 sps:$4 sm:$0xff]  }
 0x12b   :  { %4318 = vmatpush1.bf16.msra.mxu0 %v10065_v37  ;;  %9357 = vmatprep.subr.bf16.mxu1 %v10163_v62  ;;  %v10210_v37 = vld [vmem:[#allocation5 + $0x920] ss:$12 sps:$4 sm:$0xff]   ;;  %v10240_v62 = vld [vmem:[#allocation5 + $0x9b0] ss:$12 sps:$4 sm:$0xff]  }
 0x12c   :  { %4319 = vmatprep.subr.bf16.mxu0 %v10075_v38  ;;  %v10211_v38 = vld [vmem:[#allocation5 + $0x9f8] ss:$12 sps:$4 sm:$0xff]  }
 0x12e   :  { %9358 = vmatpush3.bf16.msra.mxu1 %v10167_v1  ;;  %v10241_v1 = vld [vmem:[#allocation2 + $0x30] ss:$100 sps:$4 sm:$0xff]  }
 0x12f   :  { %4320 = vmatpush1.bf16.msra.mxu0 %v10073_v41  ;;  %9359 = vmatprep.subr.bf16.mxu1 %v10168_v2  ;;  %v10215_v41 = vld [vmem:[#allocation5 + $0x938] ss:$12 sps:$4 sm:$0xff]  }
 0x130   :  { %4321 = vmatprep.subr.bf16.mxu0 %v10080_v42  ;;  %v10216_v42 = vld [vmem:[#allocation5 + $0xa10] ss:$12 sps:$4 sm:$0xff]  }
 0x131   :  { %v10186_v2 = vld [vmem:[#allocation5 + $0x604] ss:$12 sps:$4 sm:$0xff]  }
 0x132   :  { %9360 = vmatpush3.bf16.msra.mxu1 %v10172_v7  ;;  %v10184_v7 = vld [vmem:[#allocation5 + $0x600] ss:$12 sps:$4 sm:$0xff]  }
 0x133   :  { %4322 = vmatpush1.bf16.msra.mxu0 %v10078_v45  ;;  %9361 = vmatprep.subr.bf16.mxu1 %v10173_v8  ;;  %v10220_v45 = vld [vmem:[#allocation5 + $0x950] ss:$12 sps:$4 sm:$0xff]  }
 0x134   :  { %4323 = vmatprep.subr.bf16.mxu0 %v10085_v46  ;;  %v10221_v46 = vld [vmem:[#allocation5 + $0xa28] ss:$12 sps:$4 sm:$0xff]  }
 0x135   :  { %v10191_v8 = vld [vmem:[#allocation5 + $0x61c] ss:$12 sps:$4 sm:$0xff]  }
 0x136   :  { %9362 = vmatpush3.bf16.msra.mxu1 %v10177_v11  ;;  %v10189_v11 = vld [vmem:[#allocation5 + $0x618] ss:$12 sps:$4 sm:$0xff]  }
 0x137   :  { %4324 = vmatpush1.bf16.msra.mxu0 %v10083_v49  ;;  %9363 = vmatprep.subr.bf16.mxu1 %v10178_v12  ;;  %v10166_v49 = vld [vmem:[#allocation5 + $0x5a4] ss:$12 sps:$4 sm:$0xff]   ;;  %v10196_v12 = vld [vmem:[#allocation5 + $0x634] ss:$12 sps:$4 sm:$0xff]  }
 0x138   :  { %4325 = vmatprep.subr.bf16.mxu0 %v10090_v51  ;;  %v10164_v51 = vld [vmem:[#allocation5 + $0x5a0] ss:$12 sps:$4 sm:$0xff]  }
 0x13a   :  { %9364 = vmatpush3.bf16.msra.mxu1 %v10182_v14  ;;  %v10194_v14 = vld [vmem:[#allocation5 + $0x630] ss:$12 sps:$4 sm:$0xff]  }
 0x13b   :  { %4326 = vmatpush1.bf16.msra.mxu0 %v10088_v53  ;;  %9365 = vmatprep.subr.bf16.mxu1 %v10183_v15  ;;  %v10230_v53 = vld [vmem:[#allocation5 + $0x980] ss:$12 sps:$4 sm:$0xff]   ;;  %v10263_v15 = vld [vmem:[#allocation5 + $0xad0] ss:$12 sps:$4 sm:$0xff]  }
 0x13c   :  { %4327 = vmatprep.subr.bf16.mxu0 %v10095_v55  ;;  %v10231_v55 = vld [vmem:[#allocation5 + $0xa58] ss:$12 sps:$4 sm:$0xff]  }
 0x13f   :  { %4328 = vmatpush1.bf16.msra.mxu0 %v10093_v58  ;;  %v10235_v58 = vld [vmem:[#allocation5 + $0x998] ss:$12 sps:$4 sm:$0xff]  }
 0x140   :  { %4340 = vmatprep.subr.bf16.mxu0 %v10100_v60  ;;  %v10174_v60 = vld [vmem:[#allocation5 + $0x5d0] ss:$12 sps:$4 sm:$0xff]  }
 0x142   :  { %4330 = vmatmul.mubr.bf16.vlgmr.msra.gmra.mrb[0].mxu0 %v11473_v54  ;;  %v10116_v54 = vld [vmem:[#allocation5 + $0x4c8] ss:$12 sps:$4 sm:$0xff]  }
 0x143   :  { %4341 = vmatpush1.bf16.msra.mxu0 %v10098_v63  ;;  %4372 = vmatprep.mubr.bf16.mxu0 %v11477_v6  ;;  %v10187_v6 = vld [vmem:[#allocation5 + $0x800] ss:$12 sps:$4 sm:$0xff]   ;;  %v10244_v63 = vld [vmem:[#allocation5 + $0xb48] ss:$12 sps:$4 sm:$0xff]  }
 0x144   :  { %4342 = vmatprep.subr.bf16.mxu0 %v10105_v0  ;;  %9366 = vmatpush3.bf16.msra.mxu1 %v10187_v6  ;;  %v10179_v0 = vld [vmem:[#allocation5 + $0x5e8] ss:$12 sps:$4 sm:$0xff]  }
 0x145   :  { %9367 = vmatprep.subr.bf16.mxu1 %v10188_v18  ;;  %v10264_v6 = vld [vmem:[#allocation5 + $0xba8] ss:$12 sps:$4 sm:$0xff]   ;;  %v10209_v18 = vld [vmem:[#allocation5 + $0x664] ss:$12 sps:$4 sm:$0xff]  }
 0x147   :  { %4343 = vmatpush1.bf16.msra.mxu0 %v10103_v4  ;;  %v10249_v4 = vld [vmem:[#allocation5 + $0xb60] ss:$12 sps:$4 sm:$0xff]  }
 0x148   :  { %4344 = vmatprep.subr.bf16.mxu0 %v10110_v5  ;;  %9368 = vmatpush3.bf16.msra.mxu1 %v10192_v21  ;;  %v10286_v5 = vld [vmem:[#allocation2 + $0x3c] ss:$100 sps:$4 sm:$0xff]   ;;  %v10214_v21 = vld [vmem:[#allocation5 + $0x67c] ss:$12 sps:$4 sm:$0xff]  }
 0x149   :  { %9369 = vmatprep.subr.bf16.mxu1 %v10193_v22  ;;  %v10274_v22 = vld [vmem:[#allocation5 + $0xbd8] ss:$12 sps:$4 sm:$0xff]  }
 0x14b   :  { %4345 = vmatpush1.bf16.msra.mxu0 %v10108_v9  ;;  %v10253_v9 = vld [vmem:[#allocation5 + $0xaa0] ss:$12 sps:$4 sm:$0xff]  }
 0x14c   :  { %4346 = vmatprep.subr.bf16.mxu0 %v10118_v10  ;;  %9370 = vmatpush3.bf16.msra.mxu1 %v10197_v26  ;;  %v10254_v10 = vld [vmem:[#allocation5 + $0xb78] ss:$12 sps:$4 sm:$0xff]  }
 0x14d   :  { %9377 = vmatprep.subr.bf16.mxu1 %v10201_v27  ;;  %v10278_v26 = vld [vmem:[#allocation5 + $0xb18] ss:$12 sps:$4 sm:$0xff]   ;;  %v10279_v27 = vld [vmem:[#allocation5 + $0xbf0] ss:$12 sps:$4 sm:$0xff]  }
 0x14f   :  { %4347 = vmatpush1.bf16.msra.mxu0 %v10116_v54  ;;  %5008 = vmatmul.mubr.bf16.vlgmr.msra.gmra.mrb[20].mxu1 %v10198_v30  ;;  %v10258_v54 = vld [vmem:[#allocation5 + $0xab8] ss:$12 sps:$4 sm:$0xff]   ;;  %v10283_v30 = vld [vmem:[#allocation5 + $0xb30] ss:$12 sps:$4 sm:$0xff]  }
 0x150   :  { %4348 = vmatprep.subr.bf16.mxu0 %v10123_v13  ;;  %9378 = vmatpush3.bf16.msra.mxu1 %v10205_v31  ;;  %v10259_v13 = vld [vmem:[#allocation5 + $0xb90] ss:$12 sps:$4 sm:$0xff]   ;;  %v10287_v31 = vld [vmem:[#allocation5 + $0xcc8] ss:$12 sps:$4 sm:$0xff]  }
 0x151   :  { %9379 = vmatprep.subr.bf16.mxu1 %v10206_v32  ;;  %5048 = vmatprep.mubr.bf16.mxu1 %v10243_v33  ;;  %v10222_v32 = vld [vmem:[#allocation5 + $0x6a8] ss:$12 sps:$4 sm:$0xff]   ;;  %v10229_v33 = vld [vmem:[#allocation5 + $0x6c4] ss:$12 sps:$4 sm:$0xff]  }
 0x153   :  { %4349 = vmatpush1.bf16.msra.mxu0 %v10121_v16  ;;  %v10204_v16 = vld [vmem:[#allocation5 + $0x64c] ss:$12 sps:$4 sm:$0xff]  }
 0x154   :  { %4350 = vmatprep.subr.bf16.mxu0 %v10128_v17  ;;  %9380 = vmatpush3.bf16.msra.mxu1 %v10210_v37  ;;  %v10202_v17 = vld [vmem:[#allocation5 + $0x648] ss:$12 sps:$4 sm:$0xff]   ;;  %v10292_v37 = vld [vmem:[#allocation5 + $0xce0] ss:$12 sps:$4 sm:$0xff]  }
 0x155   :  { %9381 = vmatprep.subr.bf16.mxu1 %v10211_v38  ;;  %v10227_v38 = vld [vmem:[#allocation5 + $0x6c0] ss:$12 sps:$4 sm:$0xff]  }
 0x157   :  { %4351 = vmatpush1.bf16.msra.mxu0 %v10126_v19  ;;  %v10269_v19 = vld [vmem:[#allocation5 + $0xbc0] ss:$12 sps:$4 sm:$0xff]  }
 0x158   :  { %4352 = vmatprep.subr.bf16.mxu0 %v10133_v20  ;;  %9382 = vmatpush3.bf16.msra.mxu1 %v10215_v41  ;;  %v10207_v20 = vld [vmem:[#allocation5 + $0x660] ss:$12 sps:$4 sm:$0xff]  }
 0x159   :  { %9383 = vmatprep.subr.bf16.mxu1 %v10216_v42  ;;  %v10296_v41 = vld [vmem:[#allocation5 + $0xc20] ss:$12 sps:$4 sm:$0xff]   ;;  %v10297_v42 = vld [vmem:[#allocation5 + $0xcf8] ss:$12 sps:$4 sm:$0xff]  }
 0x15b   :  { %4353 = vmatpush1.bf16.msra.mxu0 %v10131_v23  ;;  %v10212_v23 = vld [vmem:[#allocation5 + $0x678] ss:$12 sps:$4 sm:$0xff]  }
 0x15c   :  { %4354 = vmatprep.subr.bf16.mxu0 %v10138_v24  ;;  %9384 = vmatpush3.bf16.msra.mxu1 %v10220_v45  ;;  %v10219_v24 = vld [vmem:[#allocation5 + $0x694] ss:$12 sps:$4 sm:$0xff]  }
 0x15d   :  { %9385 = vmatprep.subr.bf16.mxu1 %v10221_v46  ;;  %v10239_v45 = vld [vmem:[#allocation5 + $0x6f4] ss:$12 sps:$4 sm:$0xff]   ;;  %v10302_v46 = vld [vmem:[#allocation5 + $0xd10] ss:$12 sps:$4 sm:$0xff]  }
 0x15f   :  { %4355 = vmatpush1.bf16.msra.mxu0 %v10136_v28  ;;  %v10217_v28 = vld [vmem:[#allocation5 + $0x690] ss:$12 sps:$4 sm:$0xff]  }
 0x160   :  { %4356 = vmatprep.subr.bf16.mxu0 %v10143_v29  ;;  %9386 = vmatpush3.bf16.msra.mxu1 %v10225_v48  ;;  %v10224_v29 = vld [vmem:[#allocation5 + $0x6ac] ss:$12 sps:$4 sm:$0xff]  }
 0x161   :  { %9387 = vmatprep.subr.bf16.mxu1 %v10226_v50  ;;  %v10247_v48 = vld [vmem:[#allocation5 + $0x70c] ss:$12 sps:$4 sm:$0xff]   ;;  %v10307_v50 = vld [vmem:[#allocation5 + $0xd28] ss:$12 sps:$4 sm:$0xff]  }
 0x163   :  { %4357 = vmatpush1.bf16.msra.mxu0 %v10141_v34  ;;  %v10284_v34 = vld [vmem:[#allocation2 + $0x38] ss:$100 sps:$4 sm:$0xff]  }
 0x164   :  { %4358 = vmatprep.subr.bf16.mxu0 %v10148_v35  ;;  %9388 = vmatpush3.bf16.msra.mxu1 %v10230_v53  ;;  %v10291_v35 = vld [vmem:[#allocation5 + $0xc08] ss:$12 sps:$4 sm:$0xff]  }
 0x165   :  { %9389 = vmatprep.subr.bf16.mxu1 %v10231_v55  ;;  %v10311_v53 = vld [vmem:[#allocation5 + $0xc68] ss:$12 sps:$4 sm:$0xff]   ;;  %v10312_v55 = vld [vmem:[#allocation5 + $0xd40] ss:$12 sps:$4 sm:$0xff]  }
 0x167   :  { %4359 = vmatpush1.bf16.msra.mxu0 %v10146_v39  ;;  %v10329_v39 = vld [vmem:[#allocation2 + $0x44] ss:$100 sps:$4 sm:$0xff]  }
 0x168   :  { %4360 = vmatprep.subr.bf16.mxu0 %v10153_v40  ;;  %9390 = vmatpush3.bf16.msra.mxu1 %v10235_v58  ;;  %v10234_v40 = vld [vmem:[#allocation5 + $0x6dc] ss:$12 sps:$4 sm:$0xff]   ;;  %v10316_v58 = vld [vmem:[#allocation5 + $0xc80] ss:$12 sps:$4 sm:$0xff]  }
 0x169   :  { %9391 = vmatprep.subr.bf16.mxu1 %v10236_v59  ;;  %v10317_v59 = vld [vmem:[#allocation5 + $0xd58] ss:$12 sps:$4 sm:$0xff]  }
 0x16b   :  { %4361 = vmatpush1.bf16.msra.mxu0 %v10151_v43  ;;  %v10232_v43 = vld [vmem:[#allocation5 + $0x6d8] ss:$12 sps:$4 sm:$0xff]  }
 0x16c   :  { %4362 = vmatprep.subr.bf16.mxu0 %v10161_v44  ;;  %9392 = vmatpush3.bf16.msra.mxu1 %v10240_v62  ;;  %v10301_v44 = vld [vmem:[#allocation5 + $0xc38] ss:$12 sps:$4 sm:$0xff]  }
 0x16d   :  { %9399 = vmatprep.subr.bf16.mxu1 %v10244_v63  ;;  %v10321_v62 = vld [vmem:[#allocation5 + $0xc98] ss:$12 sps:$4 sm:$0xff]   ;;  %v10322_v63 = vld [vmem:[#allocation5 + $0xd70] ss:$12 sps:$4 sm:$0xff]  }
 0x16f   :  { %4363 = vmatpush1.bf16.msra.mxu0 %v10159_v47  ;;  %5049 = vmatmul.mubr.bf16.vlgmr.msra.gmra.mrb[24].mxu1 %v10241_v1  ;;  %v10237_v47 = vld [vmem:[#allocation5 + $0x6f0] ss:$12 sps:$4 sm:$0xff]   ;;  %v10267_v1 = vld [vmem:[#allocation5 + $0x76c] ss:$12 sps:$4 sm:$0xff]  }
 0x170   :  { %4364 = vmatprep.subr.bf16.mxu0 %v10166_v49  ;;  %9400 = vmatpush3.bf16.msra.mxu1 %v10248_v3  ;;  %v10306_v49 = vld [vmem:[#allocation5 + $0xc50] ss:$12 sps:$4 sm:$0xff]   ;;  %v10330_v3 = vld [vmem:[#allocation5 + $0xe48] ss:$12 sps:$4 sm:$0xff]  }
 0x171   :  { %9401 = vmatprep.subr.bf16.mxu1 %v10249_v4  ;;  %5089 = vmatprep.mubr.bf16.mxu1 %v10286_v5  ;;  %v10265_v4 = vld [vmem:[#allocation5 + $0x768] ss:$12 sps:$4 sm:$0xff]   ;;  %v10272_v5 = vld [vmem:[#allocation5 + $0x784] ss:$12 sps:$4 sm:$0xff]  }
 0x173   :  { %4365 = vmatpush1.bf16.msra.mxu0 %v10164_v51  ;;  %v10245_v51 = vld [vmem:[#allocation5 + $0x708] ss:$12 sps:$4 sm:$0xff]  }
 0x174   :  { %4366 = vmatprep.subr.bf16.mxu0 %v10171_v52  ;;  %9402 = vmatpush3.bf16.msra.mxu1 %v10253_v9  ;;  %v10252_v52 = vld [vmem:[#allocation5 + $0x724] ss:$12 sps:$4 sm:$0xff]   ;;  %v10335_v9 = vld [vmem:[#allocation5 + $0xe60] ss:$12 sps:$4 sm:$0xff]  }
 0x175   :  { %9403 = vmatprep.subr.bf16.mxu1 %v10254_v10  ;;  %v10372_v10 = vld [vmem:[#allocation2 + $0x4c] ss:$100 sps:$4 sm:$0xff]  }
 0x177   :  { %4367 = vmatpush1.bf16.msra.mxu0 %v10169_v56  ;;  %v10250_v56 = vld [vmem:[#allocation5 + $0x720] ss:$12 sps:$4 sm:$0xff]  }
 0x178   :  { %4368 = vmatprep.subr.bf16.mxu0 %v10176_v57  ;;  %9404 = vmatpush3.bf16.msra.mxu1 %v10258_v54  ;;  %v10257_v57 = vld [vmem:[#allocation5 + $0x73c] ss:$12 sps:$4 sm:$0xff]  }
 0x179   :  { %9405 = vmatprep.subr.bf16.mxu1 %v10259_v13  ;;  %v10277_v54 = vld [vmem:[#allocation5 + $0x79c] ss:$12 sps:$4 sm:$0xff]   ;;  %v10340_v13 = vld [vmem:[#allocation5 + $0xe78] ss:$12 sps:$4 sm:$0xff]  }
 0x17b   :  { %4369 = vmatpush1.bf16.msra.mxu0 %v10174_v60  ;;  %v10255_v60 = vld [vmem:[#allocation5 + $0x738] ss:$12 sps:$4 sm:$0xff]  }
 0x17c   :  { %4370 = vmatprep.subr.bf16.mxu0 %v10181_v61  ;;  %9406 = vmatpush3.bf16.msra.mxu1 %v10263_v15  ;;  %v10262_v61 = vld [vmem:[#allocation5 + $0x754] ss:$12 sps:$4 sm:$0xff]   ;;  %v11115_v15 = vld [vmem:[#allocation2 + $0x20] ss:$100 sps:$4 sm:$0xff]  }
 0x17d   :  { %9407 = vmatprep.subr.bf16.mxu1 %v10264_v6  ;;  %v10344_v6 = vld [vmem:[#allocation5 + $0xdb8] ss:$12 sps:$4 sm:$0xff]  }
 0x17f   :  { %4371 = vmatpush1.bf16.msra.mxu0 %v10179_v0  ;;  %v10260_v0 = vld [vmem:[#allocation5 + $0x750] ss:$12 sps:$4 sm:$0xff]  }
 0x180   :  { %4383 = vmatprep.subr.bf16.mxu0 %v10186_v2  ;;  %v10326_v2 = vld [vmem:[#allocation5 + $0xcb0] ss:$12 sps:$4 sm:$0xff]  }
 0x182   :  { %4373 = vmatmul.mubr.bf16.vlgmr.msra.gmra.mrb[0].mxu0 %v11480_v25  ;;  %v10268_v25 = vld [vmem:[#allocation5 + $0xae8] ss:$12 sps:$4 sm:$0xff]  }
 0x183   :  { %4384 = vmatpush1.bf16.msra.mxu0 %v10184_v7  ;;  %4415 = vmatprep.mubr.bf16.mxu0 %v11483_v36  ;;  %v10273_v36 = vld [vmem:[#allocation5 + $0xb00] ss:$12 sps:$4 sm:$0xff]   ;;  %v10327_v7 = vld [vmem:[#allocation2 + $0x40] ss:$100 sps:$4 sm:$0xff]  }
 0x184   :  { %4385 = vmatprep.subr.bf16.mxu0 %v10191_v8  ;;  %9408 = vmatpush3.bf16.msra.mxu1 %v10268_v25  ;;  %v10334_v8 = vld [vmem:[#allocation5 + $0xd88] ss:$12 sps:$4 sm:$0xff]   ;;  %v10280_v25 = vld [vmem:[#allocation5 + $0x7b0] ss:$12 sps:$4 sm:$0xff]  }
 0x185   :  { %9409 = vmatprep.subr.bf16.mxu1 %v10269_v19  ;;  %v10290_v19 = vld [vmem:[#allocation5 + $0x7cc] ss:$12 sps:$4 sm:$0xff]  }
 0x187   :  { %4386 = vmatpush1.bf16.msra.mxu0 %v10189_v11  ;;  %v10270_v11 = vld [vmem:[#allocation5 + $0x780] ss:$12 sps:$4 sm:$0xff]  }
 0x188   :  { %4387 = vmatprep.subr.bf16.mxu0 %v10196_v12  ;;  %9410 = vmatpush3.bf16.msra.mxu1 %v10273_v36  ;;  %v10339_v12 = vld [vmem:[#allocation5 + $0xda0] ss:$12 sps:$4 sm:$0xff]   ;;  %v10288_v36 = vld [vmem:[#allocation5 + $0x7c8] ss:$12 sps:$4 sm:$0xff]  }
 0x189   :  { %9411 = vmatprep.subr.bf16.mxu1 %v10274_v22  ;;  %v10295_v22 = vld [vmem:[#allocation5 + $0x7e4] ss:$12 sps:$4 sm:$0xff]  }
 0x18b   :  { %4388 = vmatpush1.bf16.msra.mxu0 %v10194_v14  ;;  %v10275_v14 = vld [vmem:[#allocation5 + $0x798] ss:$12 sps:$4 sm:$0xff]  }
 0x18c   :  { %4389 = vmatprep.subr.bf16.mxu0 %v10204_v16  ;;  %9412 = vmatpush3.bf16.msra.mxu1 %v10278_v26  ;;  %v10282_v16 = vld [vmem:[#allocation5 + $0x7b4] ss:$12 sps:$4 sm:$0xff]  }
 0x18d   :  { %9413 = vmatprep.subr.bf16.mxu1 %v10279_v27  ;;  %v10293_v26 = vld [vmem:[#allocation5 + $0x7e0] ss:$12 sps:$4 sm:$0xff]   ;;  %v10300_v27 = vld [vmem:[#allocation5 + $0x7fc] ss:$12 sps:$4 sm:$0xff]  }
 0x18f   :  { %4390 = vmatpush1.bf16.msra.mxu0 %v10202_v17  ;;  %v10345_v17 = vld [vmem:[#allocation5 + $0xe90] ss:$12 sps:$4 sm:$0xff]  }
 0x190   :  { %4391 = vmatprep.subr.bf16.mxu0 %v10209_v18  ;;  %9414 = vmatpush3.bf16.msra.mxu1 %v10283_v30  ;;  %v11116_v18 = vld [vmem:[#allocation2 + $0x2c] ss:$100 sps:$4 sm:$0xff]  }
 0x191   :  { %9421 = vmatprep.subr.bf16.mxu1 %v10287_v31  ;;  %v10298_v30 = vld [vmem:[#allocation5 + $0x7f8] ss:$12 sps:$4 sm:$0xff]   ;;  %v10305_v31 = vld [vmem:[#allocation5 + $0x814] ss:$12 sps:$4 sm:$0xff]  }
 0x193   :  { %4392 = vmatpush1.bf16.msra.mxu0 %v10207_v20  ;;  %5090 = vmatmul.mubr.bf16.vlgmr.msra.gmra.mrb[28].mxu1 %v10284_v34  ;;  %v10349_v20 = vld [vmem:[#allocation5 + $0xdd0] ss:$12 sps:$4 sm:$0xff]  }
 0x194   :  { %4393 = vmatprep.subr.bf16.mxu0 %v10214_v21  ;;  %9422 = vmatpush3.bf16.msra.mxu1 %v10291_v35  ;;  %v10350_v21 = vld [vmem:[#allocation5 + $0xea8] ss:$12 sps:$4 sm:$0xff]   ;;  %v10303_v34 = vld [vmem:[#allocation5 + $0x810] ss:$12 sps:$4 sm:$0xff]   ;;  %v10310_v35 = vld [vmem:[#allocation5 + $0x82c] ss:$12 sps:$4 sm:$0xff]  }
 0x195   :  { %9423 = vmatprep.subr.bf16.mxu1 %v10292_v37  ;;  %5130 = vmatprep.mubr.bf16.mxu1 %v10329_v39  ;;  %v10369_v37 = vld [vmem:[#allocation5 + $0xe30] ss:$12 sps:$4 sm:$0xff]   ;;  %v10308_v39 = vld [vmem:[#allocation5 + $0x828] ss:$12 sps:$4 sm:$0xff]  }
 0x197   :  { %4394 = vmatpush1.bf16.msra.mxu0 %v10212_v23  ;;  %v10354_v23 = vld [vmem:[#allocation5 + $0xde8] ss:$12 sps:$4 sm:$0xff]  }
 0x198   :  { %4395 = vmatprep.subr.bf16.mxu0 %v10219_v24  ;;  %9424 = vmatpush3.bf16.msra.mxu1 %v10296_v41  ;;  %v10355_v24 = vld [vmem:[#allocation5 + $0xec0] ss:$12 sps:$4 sm:$0xff]   ;;  %v10377_v41 = vld [vmem:[#allocation5 + $0xf08] ss:$12 sps:$4 sm:$0xff]  }
 0x199   :  { %9425 = vmatprep.subr.bf16.mxu1 %v10297_v42  ;;  %v10315_v42 = vld [vmem:[#allocation5 + $0x844] ss:$12 sps:$4 sm:$0xff]  }
 0x19b   :  { %4396 = vmatpush1.bf16.msra.mxu0 %v10217_v28  ;;  %v10359_v28 = vld [vmem:[#allocation5 + $0xe00] ss:$12 sps:$4 sm:$0xff]  }
 0x19c   :  { %4397 = vmatprep.subr.bf16.mxu0 %v10224_v29  ;;  %9426 = vmatpush3.bf16.msra.mxu1 %v10301_v44  ;;  %v10360_v29 = vld [vmem:[#allocation5 + $0xed8] ss:$12 sps:$4 sm:$0xff]   ;;  %v10313_v44 = vld [vmem:[#allocation5 + $0x840] ss:$12 sps:$4 sm:$0xff]  }
 0x19d   :  { %9427 = vmatprep.subr.bf16.mxu1 %v10302_v46  ;;  %v10320_v46 = vld [vmem:[#allocation5 + $0x85c] ss:$12 sps:$4 sm:$0xff]  }
 0x19f   :  { %4398 = vmatpush1.bf16.msra.mxu0 %v10222_v32  ;;  %v10364_v32 = vld [vmem:[#allocation5 + $0xe18] ss:$12 sps:$4 sm:$0xff]  }
 0x1a0   :  { %4399 = vmatprep.subr.bf16.mxu0 %v10229_v33  ;;  %9428 = vmatpush3.bf16.msra.mxu1 %v10306_v49  ;;  %v10365_v33 = vld [vmem:[#allocation5 + $0xef0] ss:$12 sps:$4 sm:$0xff]   ;;  %v10318_v49 = vld [vmem:[#allocation5 + $0x858] ss:$12 sps:$4 sm:$0xff]  }
 0x1a1   :  { %9429 = vmatprep.subr.bf16.mxu1 %v10307_v50  ;;  %v10325_v50 = vld [vmem:[#allocation5 + $0x874] ss:$12 sps:$4 sm:$0xff]  }
 0x1a3   :  { %4400 = vmatpush1.bf16.msra.mxu0 %v10227_v38  ;;  %v10373_v38 = vld [vmem:[#allocation5 + $0xfc8] ss:$12 sps:$4 sm:$0xff]  }
 0x1a4   :  { %4401 = vmatprep.subr.bf16.mxu0 %v10234_v40  ;;  %9430 = vmatpush3.bf16.msra.mxu1 %v10311_v53  ;;  %v10370_v40 = vld [vmem:[#allocation2 + $0x48] ss:$100 sps:$4 sm:$0xff]   ;;  %v10323_v53 = vld [vmem:[#allocation5 + $0x870] ss:$12 sps:$4 sm:$0xff]  }
 0x1a5   :  { %9431 = vmatprep.subr.bf16.mxu1 %v10312_v55  ;;  %v10333_v55 = vld [vmem:[#allocation5 + $0x88c] ss:$12 sps:$4 sm:$0xff]  }
 0x1a7   :  { %4402 = vmatpush1.bf16.msra.mxu0 %v10232_v43  ;;  %v10378_v43 = vld [vmem:[#allocation5 + $0xfe0] ss:$12 sps:$4 sm:$0xff]  }
 0x1a8   :  { %4403 = vmatprep.subr.bf16.mxu0 %v10239_v45  ;;  %9432 = vmatpush3.bf16.msra.mxu1 %v10316_v58  ;;  %v10415_v45 = vld [vmem:[#allocation2 + $0x54] ss:$100 sps:$4 sm:$0xff]   ;;  %v10331_v58 = vld [vmem:[#allocation5 + $0x888] ss:$12 sps:$4 sm:$0xff]  }
 0x1a9   :  { %9433 = vmatprep.subr.bf16.mxu1 %v10317_v59  ;;  %v10397_v59 = vld [vmem:[#allocation5 + $0xf68] ss:$12 sps:$4 sm:$0xff]  }
 0x1ab   :  { %4404 = vmatpush1.bf16.msra.mxu0 %v10237_v47  ;;  %v10382_v47 = vld [vmem:[#allocation5 + $0xf20] ss:$12 sps:$4 sm:$0xff]  }
 0x1ac   :  { %4405 = vmatprep.subr.bf16.mxu0 %v10247_v48  ;;  %9434 = vmatpush3.bf16.msra.mxu1 %v10321_v62  ;;  %v10383_v48 = vld [vmem:[#allocation5 + $0xff8] ss:$12 sps:$4 sm:$0xff]   ;;  %v10336_v62 = vld [vmem:[#allocation5 + $0x8a0] ss:$12 sps:$4 sm:$0xff]  }
 0x1ad   :  { %9435 = vmatprep.subr.bf16.mxu1 %v10322_v63  ;;  %v10343_v63 = vld [vmem:[#allocation5 + $0x8bc] ss:$12 sps:$4 sm:$0xff]  }
 0x1af   :  { %4406 = vmatpush1.bf16.msra.mxu0 %v10245_v51  ;;  %v10387_v51 = vld [vmem:[#allocation5 + $0xf38] ss:$12 sps:$4 sm:$0xff]  }
 0x1b0   :  { %4407 = vmatprep.subr.bf16.mxu0 %v10252_v52  ;;  %9436 = vmatpush3.bf16.msra.mxu1 %v10326_v2  ;;  %v10388_v52 = vld [vmem:[#allocation5 + $0x1010] ss:$12 sps:$4 sm:$0xff]   ;;  %v10341_v2 = vld [vmem:[#allocation5 + $0x8b8] ss:$12 sps:$4 sm:$0xff]  }
 0x1b1   :  { %9443 = vmatprep.subr.bf16.mxu1 %v10330_v3  ;;  %v10407_v3 = vld [vmem:[#allocation5 + $0xf98] ss:$12 sps:$4 sm:$0xff]  }
 0x1b3   :  { %4408 = vmatpush1.bf16.msra.mxu0 %v10250_v56  ;;  %5131 = vmatmul.mubr.bf16.vlgmr.msra.gmra.mrb[32].mxu1 %v10327_v7  ;;  %v10392_v56 = vld [vmem:[#allocation5 + $0xf50] ss:$12 sps:$4 sm:$0xff]  }
 0x1b4   :  { %4409 = vmatprep.subr.bf16.mxu0 %v10257_v57  ;;  %9444 = vmatpush3.bf16.msra.mxu1 %v10334_v8  ;;  %v10393_v57 = vld [vmem:[#allocation5 + $0x1028] ss:$12 sps:$4 sm:$0xff]   ;;  %v10346_v7 = vld [vmem:[#allocation5 + $0x8d0] ss:$12 sps:$4 sm:$0xff]  }
 0x1b5   :  { %9445 = vmatprep.subr.bf16.mxu1 %v10335_v9  ;;  %5171 = vmatprep.mubr.bf16.mxu1 %v10372_v10  ;;  %v10412_v8 = vld [vmem:[#allocation5 + $0xfb0] ss:$12 sps:$4 sm:$0xff]   ;;  %v10353_v9 = vld [vmem:[#allocation5 + $0x8ec] ss:$12 sps:$4 sm:$0xff]   ;;  %v10416_v10 = vld [vmem:[#allocation5 + $0x1148] ss:$12 sps:$4 sm:$0xff]  }
 0x1b7   :  { %4410 = vmatpush1.bf16.msra.mxu0 %v10255_v60  ;;  %v10338_v60 = vld [vmem:[#allocation5 + $0x8a4] ss:$12 sps:$4 sm:$0xff]  }
 0x1b8   :  { %4411 = vmatprep.subr.bf16.mxu0 %v10262_v61  ;;  %9446 = vmatpush3.bf16.msra.mxu1 %v10339_v12  ;;  %v10398_v61 = vld [vmem:[#allocation5 + $0x1040] ss:$12 sps:$4 sm:$0xff]   ;;  %v10351_v12 = vld [vmem:[#allocation5 + $0x8e8] ss:$12 sps:$4 sm:$0xff]  }
 0x1b9   :  { %9447 = vmatprep.subr.bf16.mxu1 %v10340_v13  ;;  %v10358_v13 = vld [vmem:[#allocation5 + $0x904] ss:$12 sps:$4 sm:$0xff]  }
 0x1bb   :  { %4412 = vmatpush1.bf16.msra.mxu0 %v10260_v0  ;;  %v10402_v0 = vld [vmem:[#allocation5 + $0xf80] ss:$12 sps:$4 sm:$0xff]  }
 0x1bc   :  { %4413 = vmatprep.subr.bf16.mxu0 %v10267_v1  ;;  %9448 = vmatpush3.bf16.msra.mxu1 %v10344_v6  ;;  %v10403_v1 = vld [vmem:[#allocation5 + $0x1058] ss:$12 sps:$4 sm:$0xff]   ;;  %v10425_v6 = vld [vmem:[#allocation5 + $0x10a0] ss:$12 sps:$4 sm:$0xff]  }
 0x1bd   :  { %9449 = vmatprep.subr.bf16.mxu1 %v10345_v17  ;;  %v10363_v17 = vld [vmem:[#allocation5 + $0x91c] ss:$12 sps:$4 sm:$0xff]  }
 0x1bf   :  { %4414 = vmatpush1.bf16.msra.mxu0 %v10265_v4  ;;  %v10348_v4 = vld [vmem:[#allocation5 + $0x8d4] ss:$12 sps:$4 sm:$0xff]  }
 0x1c0   :  { %4426 = vmatprep.subr.bf16.mxu0 %v10272_v5  ;;  %9450 = vmatpush3.bf16.msra.mxu1 %v10349_v20  ;;  %v10408_v5 = vld [vmem:[#allocation5 + $0x1070] ss:$12 sps:$4 sm:$0xff]   ;;  %v10368_v20 = vld [vmem:[#allocation5 + $0x934] ss:$12 sps:$4 sm:$0xff]  }
 0x1c1   :  { %9451 = vmatprep.subr.bf16.mxu1 %v10350_v21  ;;  %v10430_v21 = vld [vmem:[#allocation5 + $0x10b8] ss:$12 sps:$4 sm:$0xff]  }
 0x1c2   :  { %4416 = vmatmul.mubr.bf16.vlgmr.msra.gmra.mrb[0].mxu0 %v11115_v15  ;;  %v10458_v15 = vld [vmem:[#allocation2 + $0x5c] ss:$100 sps:$4 sm:$0xff]  }
 0x1c3   :  { %4427 = vmatpush1.bf16.msra.mxu0 %v10270_v11  ;;  %4458 = vmatprep.mubr.bf16.mxu0 %v11116_v18  ;;  %v10413_v11 = vld [vmem:[#allocation2 + $0x50] ss:$100 sps:$4 sm:$0xff]   ;;  %v10426_v18 = vld [vmem:[#allocation5 + $0x1178] ss:$12 sps:$4 sm:$0xff]  }
 0x1c4   :  { %4428 = vmatprep.subr.bf16.mxu0 %v10277_v54  ;;  %9452 = vmatpush3.bf16.msra.mxu1 %v10354_v23  ;;  %v10420_v54 = vld [vmem:[#allocation5 + $0x1088] ss:$12 sps:$4 sm:$0xff]   ;;  %v11118_v23 = vld [vmem:[#allocation2 + $0x34] ss:$100 sps:$4 sm:$0xff]  }
 0x1c5   :  { %9453 = vmatprep.subr.bf16.mxu1 %v10355_v24  ;;  %v10376_v24 = vld [vmem:[#allocation5 + $0x94c] ss:$12 sps:$4 sm:$0xff]  }
 0x1c7   :  { %4429 = vmatpush1.bf16.msra.mxu0 %v10275_v14  ;;  %v10421_v14 = vld [vmem:[#allocation5 + $0x1160] ss:$12 sps:$4 sm:$0xff]  }
 0x1c8   :  { %4430 = vmatprep.subr.bf16.mxu0 %v10282_v16  ;;  %9454 = vmatpush3.bf16.msra.mxu1 %v10359_v28  ;;  %v10356_v16 = vld [vmem:[#allocation5 + $0x900] ss:$12 sps:$4 sm:$0xff]   ;;  %v10374_v28 = vld [vmem:[#allocation5 + $0x948] ss:$12 sps:$4 sm:$0xff]  }
 0x1c9   :  { %9455 = vmatprep.subr.bf16.mxu1 %v10360_v29  ;;  %v10381_v29 = vld [vmem:[#allocation5 + $0x964] ss:$12 sps:$4 sm:$0xff]  }
 0x1cb   :  { %4431 = vmatpush1.bf16.msra.mxu0 %v10280_v25  ;;  %v10361_v25 = vld [vmem:[#allocation5 + $0x918] ss:$12 sps:$4 sm:$0xff]  }
 0x1cc   :  { %4432 = vmatprep.subr.bf16.mxu0 %v10290_v19  ;;  %9456 = vmatpush3.bf16.msra.mxu1 %v10364_v32  ;;  %v11117_v19 = vld [vmem:[#allocation2 + $0x28] ss:$100 sps:$4 sm:$0xff]  }
 0x1cd   :  { %9457 = vmatprep.subr.bf16.mxu1 %v10365_v33  ;;  %v10379_v32 = vld [vmem:[#allocation5 + $0x960] ss:$12 sps:$4 sm:$0xff]   ;;  %v10386_v33 = vld [vmem:[#allocation5 + $0x97c] ss:$12 sps:$4 sm:$0xff]  }
 0x1cf   :  { %4433 = vmatpush1.bf16.msra.mxu0 %v10288_v36  ;;  %v10431_v36 = vld [vmem:[#allocation5 + $0x1190] ss:$12 sps:$4 sm:$0xff]  }
 0x1d0   :  { %4434 = vmatprep.subr.bf16.mxu0 %v10295_v22  ;;  %9458 = vmatpush3.bf16.msra.mxu1 %v10369_v37  ;;  %v10366_v22 = vld [vmem:[#allocation5 + $0x930] ss:$12 sps:$4 sm:$0xff]   ;;  %v10384_v37 = vld [vmem:[#allocation5 + $0x978] ss:$12 sps:$4 sm:$0xff]  }
 0x1d1   :  { %9465 = vmatprep.subr.bf16.mxu1 %v10373_v38  ;;  %v10391_v38 = vld [vmem:[#allocation5 + $0x994] ss:$12 sps:$4 sm:$0xff]  }
 0x1d3   :  { %4435 = vmatpush1.bf16.msra.mxu0 %v10293_v26  ;;  %5172 = vmatmul.mubr.bf16.vlgmr.msra.gmra.mrb[36].mxu1 %v10370_v40  ;;  %v10435_v26 = vld [vmem:[#allocation5 + $0x10d0] ss:$12 sps:$4 sm:$0xff]  }
 0x1d4   :  { %4436 = vmatprep.subr.bf16.mxu0 %v10300_v27  ;;  %9466 = vmatpush3.bf16.msra.mxu1 %v10377_v41  ;;  %v10436_v27 = vld [vmem:[#allocation5 + $0x11a8] ss:$12 sps:$4 sm:$0xff]   ;;  %v10451_v40 = vld [vmem:[#allocation5 + $0x11f0] ss:$12 sps:$4 sm:$0xff]  }
 0x1d5   :  { %9467 = vmatprep.subr.bf16.mxu1 %v10378_v43  ;;  %5212 = vmatprep.mubr.bf16.mxu1 %v10415_v45  ;;  %v10389_v41 = vld [vmem:[#allocation5 + $0x990] ss:$12 sps:$4 sm:$0xff]   ;;  %v10394_v45 = vld [vmem:[#allocation5 + $0x9a8] ss:$12 sps:$4 sm:$0xff]  }
 0x1d6   :  { %v10455_v43 = vld [vmem:[#allocation5 + $0x1130] ss:$12 sps:$4 sm:$0xff]  }
 0x1d7   :  { %4437 = vmatpush1.bf16.msra.mxu0 %v10298_v30  ;;  %v10440_v30 = vld [vmem:[#allocation5 + $0x10e8] ss:$12 sps:$4 sm:$0xff]  }
 0x1d8   :  { %4438 = vmatprep.subr.bf16.mxu0 %v10305_v31  ;;  %9468 = vmatpush3.bf16.msra.mxu1 %v10382_v47  ;;  %v10441_v31 = vld [vmem:[#allocation5 + $0x11c0] ss:$12 sps:$4 sm:$0xff]   ;;  %v10462_v47 = vld [vmem:[#allocation5 + $0x1208] ss:$12 sps:$4 sm:$0xff]  }
 0x1d9   :  { %9469 = vmatprep.subr.bf16.mxu1 %v10383_v48  ;;  %v11333_v48 = vmov 0.0  }
 0x1db   :  { %4439 = vmatpush1.bf16.msra.mxu0 %v10303_v34  ;;  %v10445_v34 = vld [vmem:[#allocation5 + $0x1100] ss:$12 sps:$4 sm:$0xff]  }
 0x1dc   :  { %4440 = vmatprep.subr.bf16.mxu0 %v10310_v35  ;;  %9470 = vmatpush3.bf16.msra.mxu1 %v10387_v51  ;;  %v10446_v35 = vld [vmem:[#allocation5 + $0x11d8] ss:$12 sps:$4 sm:$0xff]   ;;  %v10466_v51 = vld [vmem:[#allocation5 + $0x1220] ss:$12 sps:$4 sm:$0xff]  }
 0x1dd   :  { %9471 = vmatprep.subr.bf16.mxu1 %v10388_v52  ;;  %v10404_v52 = vld [vmem:[#allocation5 + $0x9d8] ss:$12 sps:$4 sm:$0xff]  }
 0x1df   :  { %4441 = vmatpush1.bf16.msra.mxu0 %v10308_v39  ;;  %v10450_v39 = vld [vmem:[#allocation5 + $0x1118] ss:$12 sps:$4 sm:$0xff]  }
 0x1e0   :  { %4442 = vmatprep.subr.bf16.mxu0 %v10315_v42  ;;  %9472 = vmatpush3.bf16.msra.mxu1 %v10392_v56  ;;  %v10396_v42 = vld [vmem:[#allocation5 + $0x9ac] ss:$12 sps:$4 sm:$0xff]   ;;  %v10409_v56 = vld [vmem:[#allocation5 + $0x9f0] ss:$12 sps:$4 sm:$0xff]  }
 0x1e1   :  { %9473 = vmatprep.subr.bf16.mxu1 %v10393_v57  ;;  %v10419_v57 = vld [vmem:[#allocation5 + $0xa0c] ss:$12 sps:$4 sm:$0xff]  }
 0x1e3   :  { %4443 = vmatpush1.bf16.msra.mxu0 %v10313_v44  ;;  %v10456_v44 = vld [vmem:[#allocation2 + $0x58] ss:$100 sps:$4 sm:$0xff]  }
 0x1e4   :  { %4444 = vmatprep.subr.bf16.mxu0 %v10320_v46  ;;  %9474 = vmatpush3.bf16.msra.mxu1 %v10397_v59  ;;  %v10401_v46 = vld [vmem:[#allocation5 + $0x9c4] ss:$12 sps:$4 sm:$0xff]   ;;  %v10475_v59 = vld [vmem:[#allocation2 + $0x60] ss:$100 sps:$4 sm:$0xff]  }
 0x1e5   :  { %9475 = vmatprep.subr.bf16.mxu1 %v10398_v61  ;;  %v10424_v61 = vld [vmem:[#allocation5 + $0xa24] ss:$12 sps:$4 sm:$0xff]  }
 0x1e7   :  { %4445 = vmatpush1.bf16.msra.mxu0 %v10318_v49  ;;  %v10399_v49 = vld [vmem:[#allocation5 + $0x9c0] ss:$12 sps:$4 sm:$0xff]  }
 0x1e8   :  { %4446 = vmatprep.subr.bf16.mxu0 %v10325_v50  ;;  %9476 = vmatpush3.bf16.msra.mxu1 %v10402_v0  ;;  %v10406_v50 = vld [vmem:[#allocation5 + $0x9dc] ss:$12 sps:$4 sm:$0xff]   ;;  %v10427_v0 = vld [vmem:[#allocation5 + $0xa38] ss:$12 sps:$4 sm:$0xff]  }
 0x1e9   :  { %9477 = vmatprep.subr.bf16.mxu1 %v10403_v1  ;;  %v10434_v1 = vld [vmem:[#allocation5 + $0xa54] ss:$12 sps:$4 sm:$0xff]  }
 0x1eb   :  { %4447 = vmatpush1.bf16.msra.mxu0 %v10323_v53  ;;  %v10411_v53 = vld [vmem:[#allocation5 + $0x9f4] ss:$12 sps:$4 sm:$0xff]  }
 0x1ec   :  { %4448 = vmatprep.subr.bf16.mxu0 %v10333_v55  ;;  %9478 = vmatpush3.bf16.msra.mxu1 %v10407_v3  ;;  %v10470_v55 = vld [vmem:[#allocation5 + $0x1238] ss:$12 sps:$4 sm:$0xff]  }
 0x1ed   :  { %9479 = vmatprep.subr.bf16.mxu1 %v10408_v5  ;;  %v10439_v3 = vld [vmem:[#allocation5 + $0xa6c] ss:$12 sps:$4 sm:$0xff]   ;;  %v10444_v5 = vld [vmem:[#allocation5 + $0xa84] ss:$12 sps:$4 sm:$0xff]  }
 0x1ef   :  { %4449 = vmatpush1.bf16.msra.mxu0 %v10331_v58  ;;  %v10474_v58 = vld [vmem:[#allocation5 + $0x1250] ss:$12 sps:$4 sm:$0xff]  }
 0x1f0   :  { %4450 = vmatprep.subr.bf16.mxu0 %v10338_v60  ;;  %9480 = vmatpush3.bf16.msra.mxu1 %v10412_v8  ;;  %v10417_v60 = vld [vmem:[#allocation5 + $0xa08] ss:$12 sps:$4 sm:$0xff]  }
 0x1f1   :  { %9487 = vmatprep.subr.bf16.mxu1 %v10416_v10  ;;  %v10449_v8 = vld [vmem:[#allocation5 + $0xa9c] ss:$12 sps:$4 sm:$0xff]   ;;  %v10447_v10 = vld [vmem:[#allocation5 + $0xa98] ss:$12 sps:$4 sm:$0xff]  }
 0x1f3   :  { %4451 = vmatpush1.bf16.msra.mxu0 %v10336_v62  ;;  %5213 = vmatmul.mubr.bf16.vlgmr.msra.gmra.mrb[40].mxu1 %v10413_v11  ;;  %v10422_v62 = vld [vmem:[#allocation5 + $0xa20] ss:$12 sps:$4 sm:$0xff]  }
 0x1f4   :  { %4452 = vmatprep.subr.bf16.mxu0 %v10343_v63  ;;  %9488 = vmatpush3.bf16.msra.mxu1 %v10420_v54  ;;  %v10429_v63 = vld [vmem:[#allocation5 + $0xa3c] ss:$12 sps:$4 sm:$0xff]   ;;  %v10454_v11 = vld [vmem:[#allocation5 + $0xab4] ss:$12 sps:$4 sm:$0xff]  }
 0x1f5   :  { %9489 = vmatprep.subr.bf16.mxu1 %v10421_v14  ;;  %5253 = vmatprep.mubr.bf16.mxu1 %v10458_v15  ;;  %v10452_v54 = vld [vmem:[#allocation5 + $0xab0] ss:$12 sps:$4 sm:$0xff]   ;;  %v10459_v14 = vld [vmem:[#allocation5 + $0xac8] ss:$12 sps:$4 sm:$0xff]  }
 0x1f6   :  { %v10465_v15 = vld [vmem:[#allocation5 + $0xae4] ss:$12 sps:$4 sm:$0xff]  }
 0x1f7   :  { %4453 = vmatpush1.bf16.msra.mxu0 %v10341_v2  ;;  %v10432_v2 = vld [vmem:[#allocation5 + $0xa50] ss:$12 sps:$4 sm:$0xff]  }
 0x1f8   :  { %4454 = vmatprep.subr.bf16.mxu0 %v10348_v4  ;;  %9490 = vmatpush3.bf16.msra.mxu1 %v10425_v6  ;;  %v10437_v4 = vld [vmem:[#allocation5 + $0xa68] ss:$12 sps:$4 sm:$0xff]  }
 0x1f9   :  { %9491 = vmatprep.subr.bf16.mxu1 %v10426_v18  ;;  %v10469_v6 = vld [vmem:[#allocation5 + $0xafc] ss:$12 sps:$4 sm:$0xff]   ;;  %v10473_v18 = vld [vmem:[#allocation5 + $0xb14] ss:$12 sps:$4 sm:$0xff]  }
 0x1fb   :  { %4455 = vmatpush1.bf16.msra.mxu0 %v10346_v7  ;;  %v10442_v7 = vld [vmem:[#allocation5 + $0xa80] ss:$12 sps:$4 sm:$0xff]  }
 0x1fc   :  { %4456 = vmatprep.subr.bf16.mxu0 %v10353_v9  ;;  %9492 = vmatpush3.bf16.msra.mxu1 %v10430_v21  ;;  %v11119_v9 = vld [vmem:[#allocation2 + $0x30] ss:$100 sps:$4 sm:$0xff]   ;;  %v10481_v21 = vld [vmem:[#allocation5 + $0xb44] ss:$12 sps:$4 sm:$0xff]  }
 0x1fd   :  { %9493 = vmatprep.subr.bf16.mxu1 %v10431_v36  ;;  %v10479_v36 = vld [vmem:[#allocation5 + $0xb40] ss:$12 sps:$4 sm:$0xff]  }
 0x1ff   :  { %4457 = vmatpush1.bf16.msra.mxu0 %v10351_v12  ;;  %v11120_v12 = vld [vmem:[#allocation2 + $0x3c] ss:$100 sps:$4 sm:$0xff]  }
 0x200   :  { %4469 = vmatprep.subr.bf16.mxu0 %v10358_v13  ;;  %9494 = vmatpush3.bf16.msra.mxu1 %v10435_v26  ;;  %v10461_v13 = vld [vmem:[#allocation5 + $0xacc] ss:$12 sps:$4 sm:$0xff]   ;;  %v10485_v26 = vld [vmem:[#allocation5 + $0xb70] ss:$12 sps:$4 sm:$0xff]  }
 0x201   :  { %9495 = vmatprep.subr.bf16.mxu1 %v10436_v27  ;;  %v10490_v27 = vld [vmem:[#allocation5 + $0xb8c] ss:$12 sps:$4 sm:$0xff]  }
 0x202   :  { %4459 = vmatmul.mubr.bf16.vlgmr.msra.gmra.mrb[0].mxu0 %v11117_v19  ;;  %v10478_v19 = vld [vmem:[#allocation5 + $0xb2c] ss:$12 sps:$4 sm:$0xff]  }
 0x203   :  { %4470 = vmatpush1.bf16.msra.mxu0 %v10356_v16  ;;  %4501 = vmatprep.mubr.bf16.mxu0 %v11118_v23  ;;  %v10463_v16 = vld [vmem:[#allocation5 + $0xae0] ss:$12 sps:$4 sm:$0xff]   ;;  %v10482_v23 = vld [vmem:[#allocation5 + $0xb58] ss:$12 sps:$4 sm:$0xff]  }
 0x204   :  { %4471 = vmatprep.subr.bf16.mxu0 %v10363_v17  ;;  %9496 = vmatpush3.bf16.msra.mxu1 %v10440_v30  ;;  %v10467_v17 = vld [vmem:[#allocation5 + $0xaf8] ss:$12 sps:$4 sm:$0xff]   ;;  %v10491_v30 = vld [vmem:[#allocation5 + $0xba0] ss:$12 sps:$4 sm:$0xff]  }
 0x205   :  { %9497 = vmatprep.subr.bf16.mxu1 %v10441_v31  ;;  %v10496_v31 = vld [vmem:[#allocation5 + $0xbbc] ss:$12 sps:$4 sm:$0xff]  }
 0x207   :  { %4472 = vmatpush1.bf16.msra.mxu0 %v10361_v25  ;;  %v10471_v25 = vld [vmem:[#allocation5 + $0xb10] ss:$12 sps:$4 sm:$0xff]  }
 0x208   :  { %4473 = vmatprep.subr.bf16.mxu0 %v10368_v20  ;;  %9498 = vmatpush3.bf16.msra.mxu1 %v10445_v34  ;;  %v10476_v20 = vld [vmem:[#allocation5 + $0xb28] ss:$12 sps:$4 sm:$0xff]   ;;  %v10497_v34 = vld [vmem:[#allocation5 + $0xbd0] ss:$12 sps:$4 sm:$0xff]  }
 0x209   :  { %9499 = vmatprep.subr.bf16.mxu1 %v10446_v35  ;;  %v10502_v35 = vld [vmem:[#allocation5 + $0xbec] ss:$12 sps:$4 sm:$0xff]  }
 0x20b   :  { %4474 = vmatpush1.bf16.msra.mxu0 %v10366_v22  ;;  %v10484_v22 = vld [vmem:[#allocation5 + $0xb5c] ss:$12 sps:$4 sm:$0xff]  }
 0x20c   :  { %4475 = vmatprep.subr.bf16.mxu0 %v10376_v24  ;;  %9500 = vmatpush3.bf16.msra.mxu1 %v10450_v39  ;;  %v10487_v24 = vld [vmem:[#allocation5 + $0xb74] ss:$12 sps:$4 sm:$0xff]  }
 0x20d   :  { %9501 = vmatprep.subr.bf16.mxu1 %v10451_v40  ;;  %v10503_v39 = vld [vmem:[#allocation5 + $0xc00] ss:$12 sps:$4 sm:$0xff]   ;;  %v10508_v40 = vld [vmem:[#allocation5 + $0xc1c] ss:$12 sps:$4 sm:$0xff]  }
 0x20f   :  { %4476 = vmatpush1.bf16.msra.mxu0 %v10374_v28  ;;  %v10488_v28 = vld [vmem:[#allocation5 + $0xb88] ss:$12 sps:$4 sm:$0xff]  }
 0x210   :  { %4477 = vmatprep.subr.bf16.mxu0 %v10381_v29  ;;  %9502 = vmatpush3.bf16.msra.mxu1 %v10455_v43  ;;  %v10493_v29 = vld [vmem:[#allocation5 + $0xba4] ss:$12 sps:$4 sm:$0xff]   ;;  %v929_v43 = vld [vmem:[#allocation7] sm:$0x7] }
 0x211   :  { %9669 = vmatprep.subr.bf16.mxu1 %v11333_v48 }
 0x213   :  { %4478 = vmatpush1.bf16.msra.mxu0 %v10379_v32  ;;  %5254 = vmatmul.mubr.bf16.vlgmr.msra.gmra.mrb[44].mxu1 %v10456_v44  ;;  %v10494_v32 = vld [vmem:[#allocation5 + $0xbb8] ss:$12 sps:$4 sm:$0xff]  }
 0x214   :  { %4479 = vmatprep.subr.bf16.mxu0 %v10386_v33  ;;  %9670 = vmatpush3.bf16.msra.mxu1 %v10462_v47  ;;  %v10499_v33 = vld [vmem:[#allocation5 + $0xbd4] ss:$12 sps:$4 sm:$0xff]  }
 0x215   :  { %9671 = vmatprep.subr.bf16.mxu1 %v11333_v48  ;;  %9677 = vmatprep.mubr.msk.bf16.mxu1 %vm11334_vm0, %v11333_v48 }
 0x217   :  { %4480 = vmatpush1.bf16.msra.mxu0 %v10384_v37  ;;  %v10500_v37 = vld [vmem:[#allocation5 + $0xbe8] ss:$12 sps:$4 sm:$0xff]  }
 0x218   :  { %4481 = vmatprep.subr.bf16.mxu0 %v10391_v38  ;;  %9672 = vmatpush3.bf16.msra.mxu1 %v10466_v51  ;;  %v10505_v38 = vld [vmem:[#allocation5 + $0xc04] ss:$12 sps:$4 sm:$0xff]  }
 0x219   :  { %9673 = vmatprep.subr.bf16.mxu1 %v11333_v48  ;;  %v10506_v51 = vld [vmem:[#allocation5 + $0xc18] ss:$12 sps:$4 sm:$0xff]  }
 0x21b   :  { %4482 = vmatpush1.bf16.msra.mxu0 %v10389_v41  ;;  %v9261_v41 = vpop.f32.mrb[0].mxu1 }
 0x21c   :  { %4483 = vmatprep.subr.bf16.mxu0 %v10396_v42  ;;  %9674 = vmatpush3.bf16.msra.mxu1 %v10470_v55  ;;  %v931_v42 = vlaneseq  ;;  %v9262_v44 = vpop.f32.mrb[1].mxu1 }
 0x21d   :  { %9675 = vmatprep.subr.bf16.mxu1 %v11333_v48  ;;  %v9264_v47 = vpop.f32.mrb[2].mxu1 }
 0x21f   :  { %4484 = vmatpush1.bf16.msra.mxu0 %v10394_v45  ;;  %v11497_v45 = vshrl.u32 %v931_v42, 7 }
 0x220   :  { %4485 = vmatprep.subr.bf16.mxu0 %v10401_v46  ;;  %9676 = vmatpush3.bf16.msra.mxu1 %v10474_v58  ;;  %v9263_v46 = vadd.f32 %v9262_v44, %v9261_v41  ;;  %v10526_v41 = vld [vmem:[#allocation5 + $0xcac] ss:$12 sps:$4 sm:$0xff]  }
 0x221   :  { %v11500_v55 = vsub.s32 2, %v11497_v45 }
 0x223   :  { %4486 = vmatpush1.bf16.msra.mxu0 %v10399_v49  ;;  %9678 = vmatmul.mubr.msk.bf16.vlgmr.msra.gmra.mrb[48].mxu1 %vm4207_vm1, %v10475_v59  ;;  %v11121_v49 = vld [vmem:[#allocation2 + $0x38] ss:$100 sps:$4 sm:$0xff]   ;;  %v942_v59 = vrot.slane %v929_v43, %v11500_v55 }
 0x224   :  { %4487 = vmatprep.subr.bf16.mxu0 %v10406_v50  ;;  %v9265_v50 = vpop.f32.mrb[3].mxu1 }
 0x227   :  { %4488 = vmatpush1.bf16.msra.mxu0 %v10404_v52  ;;  %v10511_v52 = vld [vmem:[#allocation5 + $0xc34] ss:$12 sps:$4 sm:$0xff]  }
 0x228   :  { %4489 = vmatprep.subr.bf16.mxu0 %v10411_v53  ;;  %v11122_v53 = vld [vmem:[#allocation2 + $0x44] ss:$100 sps:$4 sm:$0xff]  }
 0x22b   :  { %4490 = vmatpush1.bf16.msra.mxu0 %v10409_v56  ;;  %v9266_v56 = vadd.f32 %v9265_v50, %v9264_v47 }
 0x22c   :  { %4491 = vmatprep.subr.bf16.mxu0 %v10419_v57  ;;  %v9283_v57 = vpop.f32.mrb[4].mxu1 }
 0x22d   :  { %v9284_v58 = vpop.f32.mrb[5].mxu1 }
 0x22f   :  { %4492 = vmatpush1.bf16.msra.mxu0 %v10417_v60  ;;  %v9285_v60 = vadd.f32 %v9284_v58, %v9283_v57 }
 0x230   :  { %4493 = vmatprep.subr.bf16.mxu0 %v10424_v61  ;;  %v9286_v61 = vpop.f32.mrb[6].mxu1 }
 0x233   :  { %4494 = vmatpush1.bf16.msra.mxu0 %v10422_v62  ;;  %v9287_v62 = vpop.f32.mrb[7].mxu1 }
 0x234   :  { %4495 = vmatprep.subr.bf16.mxu0 %v10429_v63  ;;  %v10509_v63 = vld [vmem:[#allocation5 + $0xc30] ss:$12 sps:$4 sm:$0xff]  }
 0x237   :  { %4496 = vmatpush1.bf16.msra.mxu0 %v10427_v0  ;;  %v10514_v0 = vld [vmem:[#allocation5 + $0xc4c] ss:$12 sps:$4 sm:$0xff]  }
 0x238   :  { %4497 = vmatprep.subr.bf16.mxu0 %v10434_v1  ;;  %v4805_v1 = vadd.f32 %v9263_v46, %v942_v59 }
 0x23b   :  { %4498 = vmatpush1.bf16.msra.mxu0 %v10432_v2  ;;  %v4808_v2 = vadd.f32 %v9266_v56, %v942_v59 }
 0x23c   :  { %4499 = vmatprep.subr.bf16.mxu0 %v10439_v3  ;;  %v9288_v3 = vadd.f32 %v9287_v62, %v9286_v61 }
 0x23f   :  { %4500 = vmatpush1.bf16.msra.mxu0 %v10437_v4  ;;  %v9305_v4 = vpop.f32.mrb[8].mxu1 }
 0x240   :  { %4512 = vmatprep.subr.bf16.mxu0 %v10444_v5  ;;  %v9306_v5 = vpop.f32.mrb[9].mxu1 }
 0x242   :  { %4502 = vmatmul.mubr.bf16.vlgmr.msra.gmra.mrb[0].mxu0 %v11119_v9  ;;  %v9307_v9 = vadd.f32 %v9306_v5, %v9305_v4 }
 0x243   :  { %4513 = vmatpush1.bf16.msra.mxu0 %v10442_v7  ;;  %4544 = vmatprep.mubr.bf16.mxu0 %v11120_v12  ;;  %v4846_v7 = vadd.f32 %v9285_v60, %v4805_v1  ;;  %v10512_v12 = vld [vmem:[#allocation5 + $0xc48] ss:$12 sps:$4 sm:$0xff]  }
 0x244   :  { %4514 = vmatprep.subr.bf16.mxu0 %v10449_v8  ;;  %v4849_v8 = vadd.f32 %v9288_v3, %v4808_v2  ;;  %v10532_v1 = vld [vmem:[#allocation5 + $0xcdc] ss:$12 sps:$4 sm:$0xff]  }
 0x247   :  { %4515 = vmatpush1.bf16.msra.mxu0 %v10447_v10  ;;  %v9308_v10 = vpop.f32.mrb[10].mxu1 }
 0x248   :  { %4516 = vmatprep.subr.bf16.mxu0 %v10454_v11  ;;  %v9309_v11 = vpop.f32.mrb[11].mxu1 }
 0x24b   :  { %4517 = vmatpush1.bf16.msra.mxu0 %v10452_v54  ;;  %v10517_v54 = vld [vmem:[#allocation5 + $0xc64] ss:$12 sps:$4 sm:$0xff]  }
 0x24c   :  { %4518 = vmatprep.subr.bf16.mxu0 %v10461_v13  ;;  %v4887_v13 = vadd.f32 %v9307_v9, %v4846_v7 }
 0x24f   :  { %4519 = vmatpush1.bf16.msra.mxu0 %v10459_v14  ;;  %v9310_v14 = vadd.f32 %v9309_v11, %v9308_v10  ;;  %v10530_v11 = vld [vmem:[#allocation5 + $0xcd8] ss:$12 sps:$4 sm:$0xff]  }
 0x250   :  { %4520 = vmatprep.subr.bf16.mxu0 %v10465_v15  ;;  %v9327_v15 = vpop.f32.mrb[12].mxu1 }
 0x253   :  { %4521 = vmatpush1.bf16.msra.mxu0 %v10463_v16  ;;  %v9328_v16 = vpop.f32.mrb[13].mxu1 }
 0x254   :  { %4522 = vmatprep.subr.bf16.mxu0 %v10469_v6  ;;  %v4890_v6 = vadd.f32 %v9310_v14, %v4849_v8 }
 0x257   :  { %4523 = vmatpush1.bf16.msra.mxu0 %v10467_v17  ;;  %v9329_v17 = vadd.f32 %v9328_v16, %v9327_v15  ;;  %v10533_v15 = vld [vmem:[#allocation5 + $0xcf0] ss:$12 sps:$4 sm:$0xff]   ;;  %v10538_v16 = vld [vmem:[#allocation5 + $0xd0c] ss:$12 sps:$4 sm:$0xff]  }
 0x258   :  { %4524 = vmatprep.subr.bf16.mxu0 %v10473_v18  ;;  %v9330_v18 = vpop.f32.mrb[14].mxu1 }
 0x25b   :  { %4525 = vmatpush1.bf16.msra.mxu0 %v10471_v25  ;;  %v9331_v25 = vpop.f32.mrb[15].mxu1 }
 0x25c   :  { %4526 = vmatprep.subr.bf16.mxu0 %v10478_v19  ;;  %v10515_v19 = vld [vmem:[#allocation5 + $0xc60] ss:$12 sps:$4 sm:$0xff]  }
 0x25f   :  { %4527 = vmatpush1.bf16.msra.mxu0 %v10476_v20  ;;  %v10520_v20 = vld [vmem:[#allocation5 + $0xc7c] ss:$12 sps:$4 sm:$0xff]  }
 0x260   :  { %4528 = vmatprep.subr.bf16.mxu0 %v10481_v21  ;;  %v4928_v21 = vadd.f32 %v9329_v17, %v4887_v13  ;;  %v10541_v17 = vld [vmem:[#allocation5 + $0xd24] ss:$12 sps:$4 sm:$0xff]  }
 0x263   :  { %4529 = vmatpush1.bf16.msra.mxu0 %v10479_v36  ;;  %v9332_v36 = vadd.f32 %v9331_v25, %v9330_v18  ;;  %v10539_v18 = vld [vmem:[#allocation5 + $0xd20] ss:$12 sps:$4 sm:$0xff]   ;;  %v10544_v25 = vld [vmem:[#allocation5 + $0xd3c] ss:$12 sps:$4 sm:$0xff]  }
 0x264   :  { %4530 = vmatprep.subr.bf16.mxu0 %v10484_v22  ;;  %v9349_v22 = vpop.f32.mrb[16].mxu1 }
 0x267   :  { %4531 = vmatpush1.bf16.msra.mxu0 %v10482_v23  ;;  %v9350_v23 = vpop.f32.mrb[17].mxu1 }
 0x268   :  { %4532 = vmatprep.subr.bf16.mxu0 %v10487_v24  ;;  %v4931_v24 = vadd.f32 %v9332_v36, %v4890_v6  ;;  %v10536_v6 = vld [vmem:[#allocation5 + $0xd08] ss:$12 sps:$4 sm:$0xff]  }
 0x269   :  { %v10547_v36 = vld [vmem:[#allocation5 + $0xd54] ss:$12 sps:$4 sm:$0xff]  }
 0x26b   :  { %4533 = vmatpush1.bf16.msra.mxu0 %v10485_v26  ;;  %v9351_v26 = vadd.f32 %v9350_v23, %v9349_v22 }
 0x26c   :  { %4534 = vmatprep.subr.bf16.mxu0 %v10490_v27  ;;  %v9352_v27 = vpop.f32.mrb[18].mxu1 }
 0x26f   :  { %4535 = vmatpush1.bf16.msra.mxu0 %v10488_v28  ;;  %v9353_v28 = vpop.f32.mrb[19].mxu1 }
 0x270   :  { %4536 = vmatprep.subr.bf16.mxu0 %v10493_v29  ;;  %v10518_v29 = vld [vmem:[#allocation5 + $0xc78] ss:$12 sps:$4 sm:$0xff]  }
 0x273   :  { %4537 = vmatpush1.bf16.msra.mxu0 %v10491_v30  ;;  %v10523_v30 = vld [vmem:[#allocation5 + $0xc94] ss:$12 sps:$4 sm:$0xff]  }
 0x274   :  { %4538 = vmatprep.subr.bf16.mxu0 %v10496_v31  ;;  %v4969_v31 = vadd.f32 %v9351_v26, %v4928_v21  ;;  %v10542_v21 = vld [vmem:[#allocation5 + $0xd38] ss:$12 sps:$4 sm:$0xff]  }
 0x277   :  { %4539 = vmatpush1.bf16.msra.mxu0 %v10494_v32  ;;  %v9354_v32 = vadd.f32 %v9353_v28, %v9352_v27  ;;  %v10545_v28 = vld [vmem:[#allocation5 + $0xd50] ss:$12 sps:$4 sm:$0xff]  }
 0x278   :  { %4540 = vmatprep.subr.bf16.mxu0 %v10499_v33  ;;  %v9371_v33 = vpop.f32.mrb[20].mxu1 }
 0x27b   :  { %4541 = vmatpush1.bf16.msra.mxu0 %v10497_v34  ;;  %v9372_v34 = vpop.f32.mrb[21].mxu1 }
 0x27c   :  { %4542 = vmatprep.subr.bf16.mxu0 %v10502_v35  ;;  %v4972_v35 = vadd.f32 %v9354_v32, %v4931_v24  ;;  %v10553_v32 = vld [vmem:[#allocation5 + $0xd84] ss:$12 sps:$4 sm:$0xff]  }
 0x27f   :  { %4543 = vmatpush1.bf16.msra.mxu0 %v10500_v37  ;;  %v9373_v37 = vadd.f32 %v9372_v34, %v9371_v33  ;;  %v10551_v33 = vld [vmem:[#allocation5 + $0xd80] ss:$12 sps:$4 sm:$0xff]   ;;  %v10556_v34 = vld [vmem:[#allocation5 + $0xd9c] ss:$12 sps:$4 sm:$0xff]  }
 0x280   :  { %4555 = vmatprep.subr.bf16.mxu0 %v10505_v38  ;;  %v9374_v38 = vpop.f32.mrb[22].mxu1 }
 0x281   :  { %v5010_v42 = vadd.f32 %v9373_v37, %v4969_v31  ;;  %v10548_v31 = vld [vmem:[#allocation5 + $0xd68] ss:$12 sps:$4 sm:$0xff]   ;;  %v10554_v37 = vld [vmem:[#allocation5 + $0xd98] ss:$12 sps:$4 sm:$0xff]  }
 0x282   :  { %4545 = vmatmul.mubr.bf16.vlgmr.msra.gmra.mrb[0].mxu0 %v11121_v49 }
 0x283   :  { %4556 = vmatpush1.bf16.msra.mxu0 %v10503_v39  ;;  %4587 = vmatprep.mubr.bf16.mxu0 %v11122_v53  ;;  %v9375_v39 = vpop.f32.mrb[23].mxu1  ;;  %v10529_v53 = vld [vmem:[#allocation5 + $0xcc4] ss:$12 sps:$4 sm:$0xff]  }
 0x284   :  { %4557 = vmatprep.subr.bf16.mxu0 %v10508_v40  ;;  %v10521_v40 = vld [vmem:[#allocation5 + $0xc90] ss:$12 sps:$4 sm:$0xff]   ;;  %v9376_v43 = vadd.f32 %v9375_v39, %v9374_v38  ;;  %v9393_v44 = vpop.f32.mrb[24].mxu1  ;;  %v10559_v38 = vld [vmem:[#allocation5 + $0xdb4] ss:$12 sps:$4 sm:$0xff]  }
 0x285   :  { %v9394_v46 = vpop.f32.mrb[25].mxu1  ;;  %v11124_v39 = vld [vmem:[#allocation2 + $0x4c] ss:$100 sps:$4 sm:$0xff]  }
 0x286   :  { %v5013_v47 = vadd.f32 %v9376_v43, %v4972_v35  ;;  %v9395_v49 = vadd.f32 %v9394_v46, %v9393_v44  ;;  %v9396_v50 = vpop.f32.mrb[26].mxu1  ;;  %v11123_v35 = vld [vmem:[#allocation2 + $0x40] ss:$100 sps:$4 sm:$0xff]   ;;  %v10565_v43 = vld [vmem:[#allocation5 + $0xde4] ss:$12 sps:$4 sm:$0xff]  }
 0x287   :  { %4558 = vmatpush1.bf16.msra.mxu0 %v10506_v51  ;;  %v9397_v51 = vpop.f32.mrb[27].mxu1  ;;  %v10563_v44 = vld [vmem:[#allocation5 + $0xde0] ss:$12 sps:$4 sm:$0xff]   ;;  %v10568_v46 = vld [vmem:[#allocation5 + $0xdfc] ss:$12 sps:$4 sm:$0xff]  }
 0x288   :  { %4559 = vmatprep.subr.bf16.mxu0 %v10511_v52  ;;  %v10524_v52 = vld [vmem:[#allocation5 + $0xca8] ss:$12 sps:$4 sm:$0xff]   ;;  %v5051_v56 = vadd.f32 %v9395_v49, %v5010_v42  ;;  %v9398_v57 = vadd.f32 %v9397_v51, %v9396_v50  ;;  %v9415_v58 = vpop.f32.mrb[28].mxu1  ;;  %v10566_v50 = vld [vmem:[#allocation5 + $0xdf8] ss:$12 sps:$4 sm:$0xff]  }
 0x289   :  { %v9416_v59 = vpop.f32.mrb[29].mxu1  ;;  %v10560_v42 = vld [vmem:[#allocation5 + $0xdc8] ss:$12 sps:$4 sm:$0xff]  }
 0x28a   :  { %v5054_v60 = vadd.f32 %v9398_v57, %v5013_v47  ;;  %v9417_v61 = vadd.f32 %v9416_v59, %v9415_v58  ;;  %v9418_v62 = vpop.f32.mrb[30].mxu1  ;;  %v10571_v51 = vld [vmem:[#allocation5 + $0xe14] ss:$12 sps:$4 sm:$0xff]   ;;  %v10569_v59 = vld [vmem:[#allocation5 + $0xe10] ss:$12 sps:$4 sm:$0xff]  }
 0x28b   :  { %4560 = vmatpush1.bf16.msra.mxu0 %v10509_v63  ;;  %v9419_v63 = vpop.f32.mrb[31].mxu1 }
 0x28c   :  { %4561 = vmatprep.subr.bf16.mxu0 %v10514_v0  ;;  %v10527_v0 = vld [vmem:[#allocation5 + $0xcc0] ss:$12 sps:$4 sm:$0xff]   ;;  %v5092_v2 = vadd.f32 %v9417_v61, %v5051_v56  ;;  %v9420_v3 = vadd.f32 %v9419_v63, %v9418_v62  ;;  %v9437_v4 = vpop.f32.mrb[32].mxu1  ;;  %v10572_v62 = vld [vmem:[#allocation5 + $0xe28] ss:$12 sps:$4 sm:$0xff]  }
 0x28d   :  { %v9438_v5 = vpop.f32.mrb[33].mxu1  ;;  %v10577_v63 = vld [vmem:[#allocation5 + $0xe44] ss:$12 sps:$4 sm:$0xff]  }
 0x28e   :  { %v5095_v7 = vadd.f32 %v9420_v3, %v5054_v60  ;;  %v9439_v8 = vadd.f32 %v9438_v5, %v9437_v4  ;;  %v9440_v9 = vpop.f32.mrb[34].mxu1  ;;  %v10574_v60 = vld [vmem:[#allocation5 + $0xe2c] ss:$12 sps:$4 sm:$0xff]   ;;  %v10583_v3 = vld [vmem:[#allocation5 + $0xe74] ss:$12 sps:$4 sm:$0xff]  }
 0x28f   :  { %4562 = vmatpush1.bf16.msra.mxu0 %v10512_v12  ;;  %v9441_v10 = vpop.f32.mrb[35].mxu1  ;;  %v10535_v12 = vld [vmem:[#allocation5 + $0xcf4] ss:$12 sps:$4 sm:$0xff]   ;;  %v10581_v4 = vld [vmem:[#allocation5 + $0xe70] ss:$12 sps:$4 sm:$0xff]  }
 0x290   :  { %4563 = vmatprep.subr.bf16.mxu0 %v10517_v54  ;;  %v5133_v54 = vadd.f32 %v9439_v8, %v5092_v2  ;;  %v9442_v13 = vadd.f32 %v9441_v10, %v9440_v9  ;;  %v10578_v2 = vld [vmem:[#allocation5 + $0xe58] ss:$12 sps:$4 sm:$0xff]   ;;  %v10587_v9 = vld [vmem:[#allocation5 + $0xea0] ss:$12 sps:$4 sm:$0xff]   ;;  %v10592_v10 = vld [vmem:[#allocation5 + $0xebc] ss:$12 sps:$4 sm:$0xff]  }
 0x291   :  { %v10586_v5 = vld [vmem:[#allocation5 + $0xe8c] ss:$12 sps:$4 sm:$0xff]   ;;  %v10589_v8 = vld [vmem:[#allocation5 + $0xea4] ss:$12 sps:$4 sm:$0xff]  }
 0x292   :  { %v5136_v14 = vadd.f32 %v9442_v13, %v5095_v7  ;;  %v10584_v7 = vld [vmem:[#allocation5 + $0xe88] ss:$12 sps:$4 sm:$0xff]  }
 0x293   :  { %4564 = vmatpush1.bf16.msra.mxu0 %v10515_v19 }
 0x294   :  { %4565 = vmatprep.subr.bf16.mxu0 %v10520_v20 }
 0x297   :  { %4566 = vmatpush1.bf16.msra.mxu0 %v10518_v29  ;;  %v10550_v29 = vld [vmem:[#allocation5 + $0xd6c] ss:$12 sps:$4 sm:$0xff]  }
 0x298   :  { %4567 = vmatprep.subr.bf16.mxu0 %v10523_v30 }
 0x29b   :  { %4568 = vmatpush1.bf16.msra.mxu0 %v10521_v40  ;;  %v10557_v40 = vld [vmem:[#allocation5 + $0xdb0] ss:$12 sps:$4 sm:$0xff]  }
 0x29c   :  { %4569 = vmatprep.subr.bf16.mxu0 %v10526_v41  ;;  %v10562_v41 = vld [vmem:[#allocation5 + $0xdcc] ss:$12 sps:$4 sm:$0xff]  }
 0x29f   :  { %4570 = vmatpush1.bf16.msra.mxu0 %v10524_v52 }
 0x2a0   :  { %4571 = vmatprep.subr.bf16.mxu0 %v10529_v53 }
 0x2a3   :  { %4572 = vmatpush1.bf16.msra.mxu0 %v10527_v0  ;;  %v10575_v0 = vld [vmem:[#allocation5 + $0xe40] ss:$12 sps:$4 sm:$0xff]  }
 0x2a4   :  { %4573 = vmatprep.subr.bf16.mxu0 %v10532_v1  ;;  %v10580_v1 = vld [vmem:[#allocation5 + $0xe5c] ss:$12 sps:$4 sm:$0xff]  }
 0x2a6   :  { %v9459_v19 = vpop.f32.mrb[36].mxu1 }
 0x2a7   :  { %4574 = vmatpush1.bf16.msra.mxu0 %v10530_v11  ;;  %v9460_v20 = vpop.f32.mrb[37].mxu1 }
 0x2a8   :  { %4575 = vmatprep.subr.bf16.mxu0 %v10535_v12  ;;  %v9461_v22 = vadd.f32 %v9460_v20, %v9459_v19  ;;  %v9462_v23 = vpop.f32.mrb[38].mxu1  ;;  %v10598_v19 = vld [vmem:[#allocation5 + $0xeec] ss:$12 sps:$4 sm:$0xff]   ;;  %v10596_v20 = vld [vmem:[#allocation5 + $0xee8] ss:$12 sps:$4 sm:$0xff]  }
 0x2a9   :  { %v9463_v24 = vpop.f32.mrb[39].mxu1 }
 0x2aa   :  { %v5174_v26 = vadd.f32 %v9461_v22, %v5133_v54  ;;  %v9464_v27 = vadd.f32 %v9463_v24, %v9462_v23  ;;  %v10590_v54 = vld [vmem:[#allocation5 + $0xeb8] ss:$12 sps:$4 sm:$0xff]   ;;  %v10604_v22 = vld [vmem:[#allocation5 + $0xf1c] ss:$12 sps:$4 sm:$0xff]  }
 0x2ab   :  { %4576 = vmatpush1.bf16.msra.mxu0 %v10533_v15  ;;  %v10595_v15 = vld [vmem:[#allocation5 + $0xed4] ss:$12 sps:$4 sm:$0xff]  }
 0x2ac   :  { %4577 = vmatprep.subr.bf16.mxu0 %v10538_v16  ;;  %v5177_v30 = vadd.f32 %v9464_v27, %v5136_v14  ;;  %v11125_v24 = vld [vmem:[#allocation2 + $0x48] ss:$100 sps:$4 sm:$0xff]  }
 0x2af   :  { %4578 = vmatpush1.bf16.msra.mxu0 %v10536_v6 }
 0x2b0   :  { %4579 = vmatprep.subr.bf16.mxu0 %v10541_v17 }
 0x2b3   :  { %4580 = vmatpush1.bf16.msra.mxu0 %v10539_v18  ;;  %v10593_v18 = vld [vmem:[#allocation5 + $0xed0] ss:$12 sps:$4 sm:$0xff]  }
 0x2b4   :  { %4581 = vmatprep.subr.bf16.mxu0 %v10544_v25 }
 0x2b7   :  { %4582 = vmatpush1.bf16.msra.mxu0 %v10542_v21  ;;  %v10601_v21 = vld [vmem:[#allocation5 + $0xf04] ss:$12 sps:$4 sm:$0xff]  }
 0x2b8   :  { %4583 = vmatprep.subr.bf16.mxu0 %v10547_v36  ;;  %v10599_v36 = vld [vmem:[#allocation5 + $0xf00] ss:$12 sps:$4 sm:$0xff]  }
 0x2bb   :  { %4584 = vmatpush1.bf16.msra.mxu0 %v10545_v28  ;;  %v10602_v28 = vld [vmem:[#allocation5 + $0xf18] ss:$12 sps:$4 sm:$0xff]  }
 0x2bc   :  { %4585 = vmatprep.subr.bf16.mxu0 %v10550_v29 }
 0x2bf   :  { %4586 = vmatpush1.bf16.msra.mxu0 %v10548_v31  ;;  %v10607_v31 = vld [vmem:[#allocation5 + $0xf34] ss:$12 sps:$4 sm:$0xff]  }
 0x2c0   :  { %4598 = vmatprep.subr.bf16.mxu0 %v10553_v32 }
 0x2c2   :  { %4588 = vmatmul.mubr.bf16.vlgmr.msra.gmra.mrb[0].mxu0 %v11123_v35 }
 0x2c3   :  { %4599 = vmatpush1.bf16.msra.mxu0 %v10551_v33  ;;  %4630 = vmatprep.mubr.bf16.mxu0 %v11124_v39 }
 0x2c4   :  { %4600 = vmatprep.subr.bf16.mxu0 %v10556_v34 }
 0x2c6   :  { %v9481_v47 = vpop.f32.mrb[40].mxu1 }
 0x2c7   :  { %4601 = vmatpush1.bf16.msra.mxu0 %v10554_v37  ;;  %v9482_v49 = vpop.f32.mrb[41].mxu1  ;;  %v10605_v37 = vld [vmem:[#allocation5 + $0xf30] ss:$12 sps:$4 sm:$0xff]  }
 0x2c8   :  { %4602 = vmatprep.subr.bf16.mxu0 %v10559_v38  ;;  %v9483_v52 = vadd.f32 %v9482_v49, %v9481_v47  ;;  %v9484_v53 = vpop.f32.mrb[42].mxu1  ;;  %v10610_v38 = vld [vmem:[#allocation5 + $0xf4c] ss:$12 sps:$4 sm:$0xff]  }
 0x2c9   :  { %v9485_v56 = vpop.f32.mrb[43].mxu1  ;;  %v10614_v47 = vld [vmem:[#allocation5 + $0xf78] ss:$12 sps:$4 sm:$0xff]   ;;  %v10712_v49 = vld [vmem:[#allocation8 + $0x1c] ss:$12 sps:$4 sm:$0xff]  }
 0x2ca   :  { %v5215_v57 = vadd.f32 %v9483_v52, %v5174_v26  ;;  %v9486_v58 = vadd.f32 %v9485_v56, %v9484_v53  ;;  %v10715_v52 = vld [vmem:[#allocation8 + $0x34] ss:$12 sps:$4 sm:$0xff]   ;;  %v10617_v53 = vld [vmem:[#allocation5 + $0xf90] ss:$12 sps:$4 sm:$0xff]  }
 0x2cb   :  { %4603 = vmatpush1.bf16.msra.mxu0 %v10557_v40  ;;  %v10608_v40 = vld [vmem:[#allocation5 + $0xf48] ss:$12 sps:$4 sm:$0xff]   ;;  %v10622_v56 = vld [vmem:[#allocation5 + $0xfac] ss:$12 sps:$4 sm:$0xff]  }
 0x2cc   :  { %4604 = vmatprep.subr.bf16.mxu0 %v10562_v41  ;;  %v5218_v61 = vadd.f32 %v9486_v58, %v5177_v30  ;;  %v11126_v30 = vld [vmem:[#allocation2 + $0x54] ss:$100 sps:$4 sm:$0xff]  }
 0x2cd   :  { %v10613_v41 = vld [vmem:[#allocation5 + $0xf64] ss:$12 sps:$4 sm:$0xff]  }
 0x2ce   :  { %v10718_v58 = vld [vmem:[#allocation8 + $0x4c] ss:$12 sps:$4 sm:$0xff]  }
 0x2cf   :  { %4605 = vmatpush1.bf16.msra.mxu0 %v10560_v42  ;;  %v10611_v42 = vld [vmem:[#allocation5 + $0xf60] ss:$12 sps:$4 sm:$0xff]  }
 0x2d0   :  { %4606 = vmatprep.subr.bf16.mxu0 %v10565_v43  ;;  %v10616_v43 = vld [vmem:[#allocation5 + $0xf7c] ss:$12 sps:$4 sm:$0xff]  }
 0x2d3   :  { %4607 = vmatpush1.bf16.msra.mxu0 %v10563_v44  ;;  %v10707_v44 = vld [vmem:[#allocation8] ss:$12 sps:$4 sm:$0xff]  }
 0x2d4   :  { %4608 = vmatprep.subr.bf16.mxu0 %v10568_v46  ;;  %v10709_v46 = vld [vmem:[#allocation8 + $0x4] ss:$12 sps:$4 sm:$0xff]  }
 0x2d5   :  { %5809 = vmatprep.subr.bf16.mxu1 %v10709_v46  ;;  %v10664_v46 = vld [vmem:[#allocation5 + $0x10fc] ss:$12 sps:$4 sm:$0xff]  }
 0x2d6   :  { %5810 = vmatpush1.bf16.msra.mxu1 %v10707_v44  ;;  %v10659_v44 = vld [vmem:[#allocation5 + $0x10e0] ss:$12 sps:$4 sm:$0xff]  }
 0x2d7   :  { %4609 = vmatpush1.bf16.msra.mxu0 %v10566_v50  ;;  %v10619_v50 = vld [vmem:[#allocation5 + $0xf94] ss:$12 sps:$4 sm:$0xff]   ;;  %5811 = vmatprep.subr.bf16.mxu1 %v10712_v49 }
 0x2d8   :  { %4610 = vmatprep.subr.bf16.mxu0 %v10571_v51  ;;  %v10710_v51 = vld [vmem:[#allocation8 + $0x18] ss:$12 sps:$4 sm:$0xff]   ;;  %v10667_v49 = vld [vmem:[#allocation5 + $0x1114] ss:$12 sps:$4 sm:$0xff]  }
 0x2da   :  { %5812 = vmatpush1.bf16.msra.mxu1 %v10710_v51  ;;  %v10670_v51 = vld [vmem:[#allocation5 + $0x112c] ss:$12 sps:$4 sm:$0xff]  }
 0x2db   :  { %4611 = vmatpush1.bf16.msra.mxu0 %v10569_v59  ;;  %5813 = vmatprep.subr.bf16.mxu1 %v10715_v52  ;;  %v10620_v59 = vld [vmem:[#allocation5 + $0xfa8] ss:$12 sps:$4 sm:$0xff]  }
 0x2dc   :  { %4612 = vmatprep.subr.bf16.mxu0 %v10574_v60  ;;  %v10625_v60 = vld [vmem:[#allocation5 + $0xfc4] ss:$12 sps:$4 sm:$0xff]   ;;  %v10668_v52 = vld [vmem:[#allocation5 + $0x1128] ss:$12 sps:$4 sm:$0xff]  }
 0x2df   :  { %4613 = vmatpush1.bf16.msra.mxu0 %v10572_v62  ;;  %v10721_v62 = vld [vmem:[#allocation8 + $0x64] ss:$12 sps:$4 sm:$0xff]  }
 0x2e0   :  { %4614 = vmatprep.subr.bf16.mxu0 %v10577_v63  ;;  %v10623_v63 = vld [vmem:[#allocation5 + $0xfc0] ss:$12 sps:$4 sm:$0xff]  }
 0x2e3   :  { %4615 = vmatpush1.bf16.msra.mxu0 %v10575_v0  ;;  %v10628_v0 = vld [vmem:[#allocation5 + $0xfdc] ss:$12 sps:$4 sm:$0xff]  }
 0x2e4   :  { %4616 = vmatprep.subr.bf16.mxu0 %v10580_v1  ;;  %v10719_v1 = vld [vmem:[#allocation8 + $0x60] ss:$12 sps:$4 sm:$0xff]  }
 0x2e6   :  { %v9503_v11 = vpop.f32.mrb[44].mxu1 }
 0x2e7   :  { %4617 = vmatpush1.bf16.msra.mxu0 %v10578_v2  ;;  %v9504_v12 = vpop.f32.mrb[45].mxu1  ;;  %v10724_v2 = vld [vmem:[#allocation8 + $0x7c] ss:$12 sps:$4 sm:$0xff]  }
 0x2e8   :  { %4618 = vmatprep.subr.bf16.mxu0 %v10583_v3  ;;  %v9505_v13 = vadd.f32 %v9504_v12, %v9503_v11  ;;  %v9506_v14 = vpop.f32.mrb[46].mxu1  ;;  %v10626_v3 = vld [vmem:[#allocation5 + $0xfd8] ss:$12 sps:$4 sm:$0xff]   ;;  %v10730_v11 = vld [vmem:[#allocation8 + $0xac] ss:$12 sps:$4 sm:$0xff]  }
 0x2e9   :  { %v9507_v16 = vpop.f32.mrb[47].mxu1  ;;  %v10632_v12 = vld [vmem:[#allocation5 + $0x1008] ss:$12 sps:$4 sm:$0xff]  }
 0x2ea   :  { %v9508_v6 = vadd.f32 %v9507_v16, %v9506_v14  ;;  %v5256_v17 = vadd.f32 %v9505_v13, %v5215_v57  ;;  %v10713_v57 = vld [vmem:[#allocation8 + $0x30] ss:$12 sps:$4 sm:$0xff]   ;;  %v10728_v13 = vld [vmem:[#allocation8 + $0xa8] ss:$12 sps:$4 sm:$0xff]   ;;  %v10640_v16 = vld [vmem:[#allocation5 + $0x103c] ss:$12 sps:$4 sm:$0xff]  }
 0x2eb   :  { %4619 = vmatpush1.bf16.msra.mxu0 %v10581_v4  ;;  %5814 = vmatpush1.bf16.msra.mxu1 %v10713_v57  ;;  %v10631_v4 = vld [vmem:[#allocation5 + $0xff4] ss:$12 sps:$4 sm:$0xff]   ;;  %v10676_v57 = vld [vmem:[#allocation5 + $0x115c] ss:$12 sps:$4 sm:$0xff]  }
 0x2ec   :  { %4620 = vmatprep.subr.bf16.mxu0 %v10586_v5  ;;  %v5259_v25 = vadd.f32 %v9508_v6, %v5218_v61  ;;  %v10716_v61 = vld [vmem:[#allocation8 + $0x48] ss:$12 sps:$4 sm:$0xff]   ;;  %5815 = vmatprep.subr.bf16.mxu1 %v10718_v58  ;;  %v10722_v5 = vld [vmem:[#allocation8 + $0x78] ss:$12 sps:$4 sm:$0xff]   ;;  %v10731_v6 = vld [vmem:[#allocation8 + $0xc0] ss:$12 sps:$4 sm:$0xff]  }
 0x2ed   :  { %v10733_v14 = vld [vmem:[#allocation8 + $0xc4] ss:$12 sps:$4 sm:$0xff]   ;;  %v10674_v58 = vld [vmem:[#allocation5 + $0x1158] ss:$12 sps:$4 sm:$0xff]  }
 0x2ef   :  { %4621 = vmatpush1.bf16.msra.mxu0 %v10584_v7  ;;  %5816 = vmatpush1.bf16.msra.mxu1 %v10716_v61  ;;  %v10727_v7 = vld [vmem:[#allocation8 + $0x94] ss:$12 sps:$4 sm:$0xff]  }
 0x2f0   :  { %4622 = vmatprep.subr.bf16.mxu0 %v10589_v8  ;;  %5817 = vmatprep.subr.bf16.mxu1 %v10721_v62  ;;  %v10629_v8 = vld [vmem:[#allocation5 + $0xff0] ss:$12 sps:$4 sm:$0xff]   ;;  %v10682_v61 = vld [vmem:[#allocation5 + $0x118c] ss:$12 sps:$4 sm:$0xff]   ;;  %v10680_v62 = vld [vmem:[#allocation5 + $0x1188] ss:$12 sps:$4 sm:$0xff]  }
 0x2f3   :  { %4623 = vmatpush1.bf16.msra.mxu0 %v10587_v9  ;;  %5818 = vmatpush1.bf16.msra.mxu1 %v10719_v1  ;;  %v10634_v9 = vld [vmem:[#allocation5 + $0x100c] ss:$12 sps:$4 sm:$0xff]   ;;  %v10688_v1 = vld [vmem:[#allocation5 + $0x11bc] ss:$12 sps:$4 sm:$0xff]  }
 0x2f4   :  { %4624 = vmatprep.subr.bf16.mxu0 %v10592_v10  ;;  %5819 = vmatprep.subr.bf16.mxu1 %v10724_v2  ;;  %v10725_v10 = vld [vmem:[#allocation8 + $0x90] ss:$12 sps:$4 sm:$0xff]   ;;  %v10686_v2 = vld [vmem:[#allocation5 + $0x11b8] ss:$12 sps:$4 sm:$0xff]  }
 0x2f6   :  { %v5296_v23 = vpop.f32.mrb[48].mxu1 }
 0x2f7   :  { %4625 = vmatpush1.bf16.msra.mxu0 %v10590_v54  ;;  %v5297_v26 = vadd.f32 %v5296_v23, %v5256_v17  ;;  %v9679_v27 = vpop.f32.mrb[49].mxu1  ;;  %5820 = vmatpush1.bf16.msra.mxu1 %v10722_v5  ;;  %v10637_v54 = vld [vmem:[#allocation5 + $0x1024] ss:$12 sps:$4 sm:$0xff]   ;;  %v10736_v17 = vld [vmem:[#allocation8 + $0xdc] ss:$12 sps:$4 sm:$0xff]  }
 0x2f8   :  { %4626 = vmatprep.subr.bf16.mxu0 %v10595_v15  ;;  %v5299_v29 = vpop.f32.mrb[50].mxu1  ;;  %5821 = vmatprep.subr.bf16.mxu1 %v10727_v7  ;;  %v10635_v15 = vld [vmem:[#allocation5 + $0x1020] ss:$12 sps:$4 sm:$0xff]   ;;  %v10742_v23 = vld [vmem:[#allocation8 + $0x10c] ss:$12 sps:$4 sm:$0xff]  }
 0x2f9   :  { %v5305_v32 = vmax.f32 %v5297_v26, 0.0  ;;  %v5300_v33 = vadd.f32 %v5299_v29, %v5259_v25  ;;  %v9680_v34 = vpop.f32.mrb[51].mxu1  ;;  %v10643_v25 = vld [vmem:[#allocation5 + $0x1054] ss:$12 sps:$4 sm:$0xff]   ;;  %v10649_v26 = vld [vmem:[#allocation5 + $0x1084] ss:$12 sps:$4 sm:$0xff]  }
 0x2fa   :  { %v10740_v27 = vld [vmem:[#allocation8 + $0x108] ss:$12 sps:$4 sm:$0xff]   ;;  %v10692_v7 = vld [vmem:[#allocation5 + $0x11e8] ss:$12 sps:$4 sm:$0xff]  }
 0x2fb   :  { %4627 = vmatpush1.bf16.msra.mxu0 %v10593_v18  ;;  %v5308_v35 = vmax.f32 %v5300_v33, 0.0  ;;  %5822 = vmatpush1.bf16.msra.mxu1 %v10725_v10  ;;  %v10638_v18 = vld [vmem:[#allocation5 + $0x1038] ss:$12 sps:$4 sm:$0xff]   ;;  %v10647_v29 = vld [vmem:[#allocation5 + $0x1080] ss:$12 sps:$4 sm:$0xff]  }
 0x2fc   :  { %4628 = vmatprep.subr.bf16.mxu0 %v10598_v19  ;;  %5823 = vmatprep.subr.bf16.mxu1 %v10730_v11  ;;  %v10734_v19 = vld [vmem:[#allocation8 + $0xd8] ss:$12 sps:$4 sm:$0xff]   ;;  %v10748_v33 = vld [vmem:[#allocation8 + $0x13c] ss:$12 sps:$4 sm:$0xff]   ;;  %v10650_v34 = vld [vmem:[#allocation5 + $0x1098] ss:$12 sps:$4 sm:$0xff]  }
 0x2fd   :  { %v11503_v39 = vpack.c.bf16 %v5308_v35, %v5305_v32  ;;  %v11127_v32 = vld [vmem:[#allocation2 + $0x50] ss:$100 sps:$4 sm:$0xff]   ;;  %v11128_v35 = vld [vmem:[#allocation2 + $0x5c] ss:$100 sps:$4 sm:$0xff]  }
 0x2fe   :  { %v10694_v5 = vld [vmem:[#allocation5 + $0x11ec] ss:$12 sps:$4 sm:$0xff]   ;;  %v10700_v10 = vld [vmem:[#allocation5 + $0x121c] ss:$12 sps:$4 sm:$0xff]   ;;  %v11129_v11 = vld [vmem:[#allocation2 + $0x58] ss:$100 sps:$4 sm:$0xff]  }
 0x2ff   :  { %4629 = vmatpush1.bf16.msra.mxu0 %v10596_v20  ;;  %5824 = vmatpush1.bf16.msra.mxu1 %v10728_v13  ;;  %v10739_v20 = vld [vmem:[#allocation8 + $0xf4] ss:$12 sps:$4 sm:$0xff]   ;;  %v10703_v13 = vld [vmem:[#allocation5 + $0x1234] ss:$12 sps:$4 sm:$0xff]  }
 0x300   :  { %4641 = vmatprep.subr.bf16.mxu0 %v10601_v21  ;;  %5825 = vmatprep.subr.bf16.mxu1 %v10733_v14  ;;  %v10641_v21 = vld [vmem:[#allocation5 + $0x1050] ss:$12 sps:$4 sm:$0xff]  }
 0x301   :  { %v10701_v14 = vld [vmem:[#allocation5 + $0x1230] ss:$12 sps:$4 sm:$0xff]  }
 0x302   :  { %4631 = vmatmul.mubr.bf16.vlgmr.msra.gmra.mrb[0].mxu0 %v11125_v24  ;;  %v10644_v24 = vld [vmem:[#allocation5 + $0x1068] ss:$12 sps:$4 sm:$0xff]  }
 0x303   :  { %4642 = vmatpush1.bf16.msra.mxu0 %v10599_v36  ;;  %4673 = vmatprep.mubr.bf16.mxu0 %v11126_v30  ;;  %v10646_v36 = vld [vmem:[#allocation5 + $0x106c] ss:$12 sps:$4 sm:$0xff]   ;;  %v10652_v30 = vld [vmem:[#allocation5 + $0x109c] ss:$12 sps:$4 sm:$0xff]  }
 0x304   :  { %4643 = vmatprep.subr.bf16.mxu0 %v10604_v22  ;;  %5826 = vmatpush1.bf16.msra.mxu1 %v10731_v6  ;;  %v10737_v22 = vld [vmem:[#allocation8 + $0xf0] ss:$12 sps:$4 sm:$0xff]   ;;  %v11130_v6 = vld [vmem:[#allocation2 + $0x60] ss:$100 sps:$4 sm:$0xff]  }
 0x305   :  { %5827 = vmatprep.subr.bf16.mxu1 %v10736_v17  ;;  %v10751_v17 = vld [vmem:[#allocation8 + $0x154] ss:$12 sps:$4 sm:$0xff]  }
 0x307   :  { %4644 = vmatpush1.bf16.msra.mxu0 %v10602_v28  ;;  %v10745_v28 = vld [vmem:[#allocation8 + $0x124] ss:$12 sps:$4 sm:$0xff]  }
 0x308   :  { %4645 = vmatprep.subr.bf16.mxu0 %v10607_v31  ;;  %5828 = vmatpush1.bf16.msra.mxu1 %v10734_v19  ;;  %v10743_v31 = vld [vmem:[#allocation8 + $0x120] ss:$12 sps:$4 sm:$0xff]   ;;  %v10752_v19 = vld [vmem:[#allocation8 + $0x168] ss:$12 sps:$4 sm:$0xff]  }
 0x309   :  { %5829 = vmatprep.subr.bf16.mxu1 %v10739_v20  ;;  %v10757_v20 = vld [vmem:[#allocation8 + $0x184] ss:$12 sps:$4 sm:$0xff]  }
 0x30b   :  { %4646 = vmatpush1.bf16.msra.mxu0 %v10605_v37  ;;  %v10655_v37 = vld [vmem:[#allocation5 + $0x10b4] ss:$12 sps:$4 sm:$0xff]  }
 0x30c   :  { %4647 = vmatprep.subr.bf16.mxu0 %v10610_v38  ;;  %5830 = vmatpush1.bf16.msra.mxu1 %v10737_v22  ;;  %v10746_v38 = vld [vmem:[#allocation8 + $0x138] ss:$12 sps:$4 sm:$0xff]   ;;  %v11131_v22 = vld [vmem:[#allocation7] sm:$0x7] }
 0x30d   :  { %5831 = vmatprep.subr.bf16.mxu1 %v10742_v23 }
 0x30f   :  { %4648 = vmatpush1.bf16.msra.mxu0 %v10608_v40  ;;  %v10653_v40 = vld [vmem:[#allocation5 + $0x10b0] ss:$12 sps:$4 sm:$0xff]  }
 0x310   :  { %4649 = vmatprep.subr.bf16.mxu0 %v10613_v41  ;;  %5832 = vmatpush1.bf16.msra.mxu1 %v10740_v27  ;;  %v10658_v41 = vld [vmem:[#allocation5 + $0x10cc] ss:$12 sps:$4 sm:$0xff]  }
 0x311   :  { %5833 = vmatprep.subr.bf16.mxu1 %v10745_v28 }
 0x313   :  { %4650 = vmatpush1.bf16.msra.mxu0 %v10611_v42  ;;  %v10656_v42 = vld [vmem:[#allocation5 + $0x10c8] ss:$12 sps:$4 sm:$0xff]  }
 0x314   :  { %4651 = vmatprep.subr.bf16.mxu0 %v10616_v43  ;;  %5834 = vmatpush1.bf16.msra.mxu1 %v10743_v31  ;;  %v10661_v43 = vld [vmem:[#allocation5 + $0x10e4] ss:$12 sps:$4 sm:$0xff]  }
 0x315   :  { %5835 = vmatprep.subr.bf16.mxu1 %v10748_v33 }
 0x317   :  { %4652 = vmatpush1.bf16.msra.mxu0 %v10614_v47  ;;  %v10662_v47 = vld [vmem:[#allocation5 + $0x10f8] ss:$12 sps:$4 sm:$0xff]  }
 0x318   :  { %4653 = vmatprep.subr.bf16.mxu0 %v10619_v50  ;;  %5836 = vmatpush1.bf16.msra.mxu1 %v10746_v38  ;;  %v10665_v50 = vld [vmem:[#allocation5 + $0x1110] ss:$12 sps:$4 sm:$0xff]  }
 0x319   :  { %5837 = vmatprep.subr.bf16.mxu1 %v10751_v17  ;;  %v10800_v17 = vld [vmem:[#allocation8 + $0x200] ss:$12 sps:$4 sm:$0xff]  }
 0x31b   :  { %4654 = vmatpush1.bf16.msra.mxu0 %v10617_v53  ;;  %v10673_v53 = vld [vmem:[#allocation5 + $0x1144] ss:$12 sps:$4 sm:$0xff]  }
 0x31c   :  { %4655 = vmatprep.subr.bf16.mxu0 %v10622_v56  ;;  %v10671_v56 = vld [vmem:[#allocation5 + $0x1140] ss:$12 sps:$4 sm:$0xff]  }
 0x31f   :  { %4656 = vmatpush1.bf16.msra.mxu0 %v10620_v59  ;;  %v10679_v59 = vld [vmem:[#allocation5 + $0x1174] ss:$12 sps:$4 sm:$0xff]  }
 0x320   :  { %4657 = vmatprep.subr.bf16.mxu0 %v10625_v60  ;;  %v10677_v60 = vld [vmem:[#allocation5 + $0x1170] ss:$12 sps:$4 sm:$0xff]  }
 0x323   :  { %4658 = vmatpush1.bf16.msra.mxu0 %v10623_v63  ;;  %v10685_v63 = vld [vmem:[#allocation5 + $0x11a4] ss:$12 sps:$4 sm:$0xff]  }
 0x324   :  { %4659 = vmatprep.subr.bf16.mxu0 %v10628_v0  ;;  %v10683_v0 = vld [vmem:[#allocation5 + $0x11a0] ss:$12 sps:$4 sm:$0xff]  }
 0x327   :  { %4660 = vmatpush1.bf16.msra.mxu0 %v10626_v3  ;;  %v10691_v3 = vld [vmem:[#allocation5 + $0x11d4] ss:$12 sps:$4 sm:$0xff]  }
 0x328   :  { %4661 = vmatprep.subr.bf16.mxu0 %v10631_v4  ;;  %v10689_v4 = vld [vmem:[#allocation5 + $0x11d0] ss:$12 sps:$4 sm:$0xff]  }
 0x32b   :  { %4662 = vmatpush1.bf16.msra.mxu0 %v10629_v8  ;;  %v10697_v8 = vld [vmem:[#allocation5 + $0x1204] ss:$12 sps:$4 sm:$0xff]  }
 0x32c   :  { %4663 = vmatprep.subr.bf16.mxu0 %v10634_v9  ;;  %v10695_v9 = vld [vmem:[#allocation5 + $0x1200] ss:$12 sps:$4 sm:$0xff]  }
 0x32f   :  { %4664 = vmatpush1.bf16.msra.mxu0 %v10632_v12  ;;  %v10698_v12 = vld [vmem:[#allocation5 + $0x1218] ss:$12 sps:$4 sm:$0xff]  }
 0x330   :  { %4665 = vmatprep.subr.bf16.mxu0 %v10637_v54  ;;  %v11335_v54 = vmov 0  }
 0x333   :  { %4666 = vmatpush1.bf16.msra.mxu0 %v10635_v15  ;;  %v10706_v15 = vld [vmem:[#allocation5 + $0x124c] ss:$12 sps:$4 sm:$0xff]  }
 0x334   :  { %4667 = vmatprep.subr.bf16.mxu0 %v10640_v16  ;;  %v10704_v16 = vld [vmem:[#allocation5 + $0x1248] ss:$12 sps:$4 sm:$0xff]  }
 0x337   :  { %4668 = vmatpush1.bf16.msra.mxu0 %v10638_v18  ;;  %v10749_v18 = vld [vmem:[#allocation8 + $0x150] ss:$12 sps:$4 sm:$0xff]  }
 0x338   :  { %4669 = vmatprep.subr.bf16.mxu0 %v10643_v25  ;;  %5838 = vmatpush1.bf16.msra.mxu1 %v10749_v18  ;;  %v10754_v25 = vld [vmem:[#allocation8 + $0x16c] ss:$12 sps:$4 sm:$0xff]  }
 0x339   :  { %5839 = vmatprep.subr.bf16.mxu1 %v10754_v25  ;;  %v10801_v18 = vld [vmem:[#allocation8 + $0x218] ss:$12 sps:$4 sm:$0xff]   ;;  %v10802_v25 = vld [vmem:[#allocation8 + $0x230] ss:$12 sps:$4 sm:$0xff]  }
 0x33b   :  { %4670 = vmatpush1.bf16.msra.mxu0 %v10641_v21  ;;  %v11508_v21 = vsub.s32 0, %v11497_v45 }
 0x33c   :  { %4671 = vmatprep.subr.bf16.mxu0 %v10646_v36  ;;  %5840 = vmatpush1.bf16.msra.mxu1 %v10752_v19  ;;  %v11511_v36 = vsub.s32 1, %v11497_v45  ;;  %v10805_v19 = vld [vmem:[#allocation8 + $0x244] ss:$12 sps:$4 sm:$0xff]  }
 0x33d   :  { %5852 = vmatprep.subr.bf16.mxu1 %v10757_v20  ;;  %v934_v23 = vrot.slane %v11131_v22, %v11508_v21  ;;  %v10803_v20 = vld [vmem:[#allocation8 + $0x240] ss:$12 sps:$4 sm:$0xff]  }
 0x33f   :  { %4672 = vmatpush1.bf16.msra.mxu0 %v10644_v24  ;;  %v938_v24 = vrot.slane %v11131_v22, %v11511_v36  ;;  %v10808_v22 = vld [vmem:[#allocation8 + $0x25c] ss:$12 sps:$4 sm:$0xff]  }
 0x340   :  { %4684 = vmatprep.subr.bf16.mxu0 %v10649_v26 }
 0x342   :  { %4674 = vmatmul.mubr.bf16.vlgmr.msra.gmra.mrb[0].mxu0 %v11127_v32 }
 0x343   :  { %4685 = vmatpush1.bf16.msra.mxu0 %v10647_v29  ;;  %4716 = vmatprep.mubr.bf16.mxu0 %v11128_v35 }
 0x344   :  { %4686 = vmatprep.subr.bf16.mxu0 %v10652_v30 }
 0x347   :  { %4687 = vmatpush1.bf16.msra.mxu0 %v10650_v34 }
 0x348   :  { %4688 = vmatprep.subr.bf16.mxu0 %v10655_v37 }
 0x34b   :  { %4689 = vmatpush1.bf16.msra.mxu0 %v10653_v40 }
 0x34c   :  { %4690 = vmatprep.subr.bf16.mxu0 %v10658_v41  ;;  %v10755_v41 = vld [vmem:[#allocation8 + $0x180] ss:$12 sps:$4 sm:$0xff]  }
 0x34f   :  { %4691 = vmatpush1.bf16.msra.mxu0 %v10656_v42  ;;  %v10760_v42 = vld [vmem:[#allocation8 + $0x19c] ss:$12 sps:$4 sm:$0xff]  }
 0x350   :  { %4692 = vmatprep.subr.bf16.mxu0 %v10661_v43  ;;  %v10758_v43 = vld [vmem:[#allocation8 + $0x198] ss:$12 sps:$4 sm:$0xff]  }
 0x353   :  { %4693 = vmatpush1.bf16.msra.mxu0 %v10659_v44  ;;  %v10763_v44 = vld [vmem:[#allocation8 + $0x1b4] ss:$12 sps:$4 sm:$0xff]  }
 0x354   :  { %4694 = vmatprep.subr.bf16.mxu0 %v10664_v46  ;;  %v10761_v46 = vld [vmem:[#allocation8 + $0x1b0] ss:$12 sps:$4 sm:$0xff]  }
 0x357   :  { %4695 = vmatpush1.bf16.msra.mxu0 %v10662_v47  ;;  %v10766_v47 = vld [vmem:[#allocation8 + $0x1cc] ss:$12 sps:$4 sm:$0xff]  }
 0x358   :  { %4696 = vmatprep.subr.bf16.mxu0 %v10667_v49  ;;  %v10764_v49 = vld [vmem:[#allocation8 + $0x1c8] ss:$12 sps:$4 sm:$0xff]  }
 0x35b   :  { %4697 = vmatpush1.bf16.msra.mxu0 %v10665_v50  ;;  %v10769_v50 = vld [vmem:[#allocation8 + $0x1e4] ss:$12 sps:$4 sm:$0xff]  }
 0x35c   :  { %4698 = vmatprep.subr.bf16.mxu0 %v10670_v51  ;;  %v10767_v51 = vld [vmem:[#allocation8 + $0x1e0] ss:$12 sps:$4 sm:$0xff]  }
 0x35f   :  { %4699 = vmatpush1.bf16.msra.mxu0 %v10668_v52  ;;  %v10772_v52 = vld [vmem:[#allocation8 + $0x1fc] ss:$12 sps:$4 sm:$0xff]  }
 0x360   :  { %4700 = vmatprep.subr.bf16.mxu0 %v10673_v53  ;;  %v10770_v53 = vld [vmem:[#allocation8 + $0x1f8] ss:$12 sps:$4 sm:$0xff]  }
 0x363   :  { %4701 = vmatpush1.bf16.msra.mxu0 %v10671_v56  ;;  %v10775_v56 = vld [vmem:[#allocation8 + $0x214] ss:$12 sps:$4 sm:$0xff]  }
 0x364   :  { %4702 = vmatprep.subr.bf16.mxu0 %v10676_v57  ;;  %v10773_v57 = vld [vmem:[#allocation8 + $0x210] ss:$12 sps:$4 sm:$0xff]  }
 0x367   :  { %4703 = vmatpush1.bf16.msra.mxu0 %v10674_v58  ;;  %v10778_v58 = vld [vmem:[#allocation8 + $0x22c] ss:$12 sps:$4 sm:$0xff]  }
 0x368   :  { %4704 = vmatprep.subr.bf16.mxu0 %v10679_v59  ;;  %v10776_v59 = vld [vmem:[#allocation8 + $0x228] ss:$12 sps:$4 sm:$0xff]  }
 0x36b   :  { %4705 = vmatpush1.bf16.msra.mxu0 %v10677_v60  ;;  %v10779_v60 = vld [vmem:[#allocation8 + $0xc8] ss:$12 sps:$4 sm:$0xff]  }
 0x36c   :  { %4706 = vmatprep.subr.bf16.mxu0 %v10682_v61  ;;  %v10780_v61 = vld [vmem:[#allocation8 + $0x8] ss:$12 sps:$4 sm:$0xff]  }
 0x36f   :  { %4707 = vmatpush1.bf16.msra.mxu0 %v10680_v62  ;;  %v10781_v62 = vld [vmem:[#allocation8 + $0xe0] ss:$12 sps:$4 sm:$0xff]  }
 0x370   :  { %4708 = vmatprep.subr.bf16.mxu0 %v10685_v63  ;;  %v10782_v63 = vld [vmem:[#allocation8 + $0x20] ss:$12 sps:$4 sm:$0xff]  }
 0x373   :  { %4709 = vmatpush1.bf16.msra.mxu0 %v10683_v0  ;;  %v10783_v0 = vld [vmem:[#allocation8 + $0xf8] ss:$12 sps:$4 sm:$0xff]  }
 0x374   :  { %4710 = vmatprep.subr.bf16.mxu0 %v10688_v1  ;;  %v10784_v1 = vld [vmem:[#allocation8 + $0x38] ss:$12 sps:$4 sm:$0xff]  }
 0x377   :  { %4711 = vmatpush1.bf16.msra.mxu0 %v10686_v2  ;;  %v10785_v2 = vld [vmem:[#allocation8 + $0x110] ss:$12 sps:$4 sm:$0xff]  }
 0x378   :  { %4712 = vmatprep.subr.bf16.mxu0 %v10691_v3  ;;  %v10786_v3 = vld [vmem:[#allocation8 + $0x50] ss:$12 sps:$4 sm:$0xff]  }
 0x37b   :  { %4713 = vmatpush1.bf16.msra.mxu0 %v10689_v4  ;;  %v10787_v4 = vld [vmem:[#allocation8 + $0x128] ss:$12 sps:$4 sm:$0xff]  }
 0x37c   :  { %4714 = vmatprep.subr.bf16.mxu0 %v10694_v5  ;;  %v10788_v5 = vld [vmem:[#allocation8 + $0x68] ss:$12 sps:$4 sm:$0xff]  }
 0x37f   :  { %4715 = vmatpush1.bf16.msra.mxu0 %v10692_v7  ;;  %v10789_v7 = vld [vmem:[#allocation8 + $0x140] ss:$12 sps:$4 sm:$0xff]  }
 0x380   :  { %4727 = vmatprep.subr.bf16.mxu0 %v10697_v8  ;;  %v10790_v8 = vld [vmem:[#allocation8 + $0x80] ss:$12 sps:$4 sm:$0xff]  }
 0x382   :  { %4717 = vmatmul.mubr.bf16.vlgmr.msra.gmra.mrb[0].mxu0 %v11129_v11  ;;  %v10793_v11 = vld [vmem:[#allocation8 + $0x170] ss:$12 sps:$4 sm:$0xff]  }
 0x383   :  { %4728 = vmatpush1.bf16.msra.mxu0 %v10695_v9  ;;  %4759 = vmatprep.mubr.bf16.mxu0 %v11335_v54  ;;  %v10791_v9 = vld [vmem:[#allocation8 + $0x158] ss:$12 sps:$4 sm:$0xff]  }
 0x384   :  { %4729 = vmatprep.subr.bf16.mxu0 %v10700_v10  ;;  %v10792_v10 = vld [vmem:[#allocation8 + $0x98] ss:$12 sps:$4 sm:$0xff]  }
 0x387   :  { %4730 = vmatpush1.bf16.msra.mxu0 %v10698_v12  ;;  %v10794_v12 = vld [vmem:[#allocation8 + $0xb0] ss:$12 sps:$4 sm:$0xff]  }
 0x388   :  { %4731 = vmatprep.subr.bf16.mxu0 %v10703_v13  ;;  %v10795_v13 = vld [vmem:[#allocation8 + $0x188] ss:$12 sps:$4 sm:$0xff]  }
 0x38b   :  { %4732 = vmatpush1.bf16.msra.mxu0 %v10701_v14  ;;  %v10796_v14 = vld [vmem:[#allocation8 + $0x1a0] ss:$12 sps:$4 sm:$0xff]  }
 0x38c   :  { %4733 = vmatprep.subr.bf16.mxu0 %v10706_v15  ;;  %v10797_v15 = vld [vmem:[#allocation8 + $0x1b8] ss:$12 sps:$4 sm:$0xff]  }
 0x38f   :  { %4734 = vmatpush1.bf16.msra.mxu0 %v10704_v16  ;;  %v10798_v16 = vld [vmem:[#allocation8 + $0x1d0] ss:$12 sps:$4 sm:$0xff]  }
 0x392   :  { %8930 = vmatmul.mubr.msk.bf16.vlgmr.msra.gmra.mrb[0].mxu0 %vm4207_vm1, %v11130_v6  ;;  %v10799_v6 = vld [vmem:[#allocation8 + $0x1e8] ss:$12 sps:$4 sm:$0xff]  }
 0x465   :  { %v4761_v26 = vpop.f32.mrb[0].mxu0 }
 0x466   :  { %v9781_v27 = vadd.f32 %v4761_v26, %v934_v23  ;;  %v4763_v28 = vpop.f32.mrb[1].mxu0  ;;  %v10809_v26 = vld [vmem:[#allocation8 + $0x270] ss:$12 sps:$4 sm:$0xff]  }
 0x467   :  { %v9782_v29 = vadd.f32 %v4763_v28, %v938_v24  ;;  %v4765_v30 = vpop.f32.mrb[2].mxu0  ;;  %v10812_v28 = vld [vmem:[#allocation8 + $0x288] ss:$12 sps:$4 sm:$0xff]  }
 0x468   :  { %v9783_v31 = vadd.f32 %v4765_v30, %v934_v23  ;;  %v4767_v32 = vpop.f32.mrb[3].mxu0  ;;  %v5303_v34 = vmax.f32 %v9781_v27, 0.0  ;;  %v10806_v23 = vld [vmem:[#allocation8 + $0x258] ss:$12 sps:$4 sm:$0xff]   ;;  %v10815_v30 = vld [vmem:[#allocation8 + $0x2a0] ss:$12 sps:$4 sm:$0xff]  }
 0x469   :  { %v9784_v33 = vadd.f32 %v4767_v32, %v938_v24  ;;  %v5304_v37 = vmax.f32 %v9782_v29, 0.0  ;;  %v10811_v24 = vld [vmem:[#allocation8 + $0x274] ss:$12 sps:$4 sm:$0xff]   ;;  %v10814_v27 = vld [vmem:[#allocation8 + $0x28c] ss:$12 sps:$4 sm:$0xff]  }
 0x46a   :  { %v5306_v35 = vmax.f32 %v9783_v31, 0.0  ;;  %v10817_v29 = vld [vmem:[#allocation8 + $0x2a4] ss:$12 sps:$4 sm:$0xff]   ;;  %v10820_v31 = vld [vmem:[#allocation8 + $0x2bc] ss:$12 sps:$4 sm:$0xff]  }
 0x46b   :  { %v5307_v38 = vmax.f32 %v9784_v33, 0.0  ;;  %v10818_v32 = vld [vmem:[#allocation8 + $0x2b8] ss:$12 sps:$4 sm:$0xff]   ;;  %v10821_v33 = vld [vmem:[#allocation8 + $0x2d0] ss:$12 sps:$4 sm:$0xff]  }
 0x46c   :  { %v11515_v40 = vpack.c.bf16 %v5306_v35, %v5303_v34  ;;  %v10826_v34 = vld [vmem:[#allocation8 + $0x2ec] ss:$12 sps:$4 sm:$0xff]   ;;  %v10824_v35 = vld [vmem:[#allocation8 + $0x2e8] ss:$12 sps:$4 sm:$0xff]  }
 0x46d   :  { %v5310_v45 = vpack.c.bf16 %v5307_v38, %v5304_v37  ;;  %v10829_v37 = vld [vmem:[#allocation8 + $0x304] ss:$12 sps:$4 sm:$0xff]   ;;  %v10827_v38 = vld [vmem:[#allocation8 + $0x300] ss:$12 sps:$4 sm:$0xff]  }
 0x46f   :  { %5841 = vmatprep.mubr.bf16.mxu1 %v5310_v45 }
 0x470   :  { %5842 = vmatmul.mubr.bf16.vlgmr.msra.gmra.mrb[52].mxu1 %v11515_v40 }
 0x471   :  { %5853 = vmatpush1.bf16.msra.mxu1 %v10755_v41  ;;  %5884 = vmatprep.mubr.bf16.mxu1 %v11335_v54  ;;  %v10835_v41 = vld [vmem:[#allocation8 + $0x334] ss:$12 sps:$4 sm:$0xff]  }
 0x472   :  { %5854 = vmatprep.subr.bf16.mxu1 %v10760_v42  ;;  %v10833_v42 = vld [vmem:[#allocation8 + $0x330] ss:$12 sps:$4 sm:$0xff]  }
 0x475   :  { %5855 = vmatpush1.bf16.msra.mxu1 %v10758_v43  ;;  %v10838_v43 = vld [vmem:[#allocation8 + $0x34c] ss:$12 sps:$4 sm:$0xff]  }
 0x476   :  { %5856 = vmatprep.subr.bf16.mxu1 %v10763_v44  ;;  %v10836_v44 = vld [vmem:[#allocation8 + $0x348] ss:$12 sps:$4 sm:$0xff]  }
 0x479   :  { %5857 = vmatpush1.bf16.msra.mxu1 %v10761_v46  ;;  %v10841_v46 = vld [vmem:[#allocation8 + $0x364] ss:$12 sps:$4 sm:$0xff]  }
 0x47a   :  { %5858 = vmatprep.subr.bf16.mxu1 %v10766_v47  ;;  %v10839_v47 = vld [vmem:[#allocation8 + $0x360] ss:$12 sps:$4 sm:$0xff]  }
 0x47d   :  { %5859 = vmatpush1.bf16.msra.mxu1 %v10764_v49  ;;  %v10844_v49 = vld [vmem:[#allocation8 + $0x37c] ss:$12 sps:$4 sm:$0xff]  }
 0x47e   :  { %5860 = vmatprep.subr.bf16.mxu1 %v10769_v50  ;;  %v10842_v50 = vld [vmem:[#allocation8 + $0x378] ss:$12 sps:$4 sm:$0xff]  }
 0x481   :  { %5861 = vmatpush1.bf16.msra.mxu1 %v10767_v51  ;;  %v10847_v51 = vld [vmem:[#allocation8 + $0x394] ss:$12 sps:$4 sm:$0xff]  }
 0x482   :  { %5862 = vmatprep.subr.bf16.mxu1 %v10772_v52  ;;  %v10845_v52 = vld [vmem:[#allocation8 + $0x390] ss:$12 sps:$4 sm:$0xff]  }
 0x485   :  { %5863 = vmatpush1.bf16.msra.mxu1 %v10770_v53  ;;  %v10850_v53 = vld [vmem:[#allocation8 + $0x3ac] ss:$12 sps:$4 sm:$0xff]  }
 0x486   :  { %5864 = vmatprep.subr.bf16.mxu1 %v10775_v56  ;;  %v10848_v56 = vld [vmem:[#allocation8 + $0x3a8] ss:$12 sps:$4 sm:$0xff]  }
 0x489   :  { %5865 = vmatpush1.bf16.msra.mxu1 %v10773_v57  ;;  %v10853_v57 = vld [vmem:[#allocation8 + $0x3c4] ss:$12 sps:$4 sm:$0xff]  }
 0x48a   :  { %5866 = vmatprep.subr.bf16.mxu1 %v10778_v58  ;;  %v11532_v58 = vld [vmem:[#allocation10] sm:$0x7] }
 0x48d   :  { %5867 = vmatpush1.bf16.msra.mxu1 %v10776_v59  ;;  %v5413_v59 = vrot.slane %v11532_v58, %v11508_v21 }
 0x48e   :  { %9514 = vmatprep.subr.bf16.mxu1 %v10779_v60  ;;  %v5417_v60 = vrot.slane %v11532_v58, %v11511_v36 }
 0x490   :  { %5885 = vmatmul.mubr.bf16.vlgmr.msra.gmra.mrb[52].mxu1 %v11503_v39 }
 0x491   :  { %9515 = vmatpush3.bf16.msra.mxu1 %v10780_v61  ;;  %5927 = vmatprep.mubr.bf16.mxu1 %v5310_v45  ;;  %v10830_v45 = vld [vmem:[#allocation8 + $0x318] ss:$12 sps:$4 sm:$0xff]  }
 0x492   :  { %9516 = vmatprep.subr.bf16.mxu1 %v10781_v62 }
 0x495   :  { %9517 = vmatpush3.bf16.msra.mxu1 %v10782_v63 }
 0x496   :  { %9518 = vmatprep.subr.bf16.mxu1 %v10783_v0 }
 0x499   :  { %9519 = vmatpush3.bf16.msra.mxu1 %v10784_v1 }
 0x49a   :  { %9520 = vmatprep.subr.bf16.mxu1 %v10785_v2 }
 0x49d   :  { %9521 = vmatpush3.bf16.msra.mxu1 %v10786_v3 }
 0x49e   :  { %9522 = vmatprep.subr.bf16.mxu1 %v10787_v4 }
 0x4a1   :  { %9523 = vmatpush3.bf16.msra.mxu1 %v10788_v5 }
 0x4a2   :  { %9524 = vmatprep.subr.bf16.mxu1 %v10789_v7 }
 0x4a5   :  { %9525 = vmatpush3.bf16.msra.mxu1 %v10790_v8 }
 0x4a6   :  { %9526 = vmatprep.subr.bf16.mxu1 %v10791_v9 }
 0x4a9   :  { %9527 = vmatpush3.bf16.msra.mxu1 %v10792_v10 }
 0x4aa   :  { %9528 = vmatprep.subr.bf16.mxu1 %v10793_v11 }
 0x4ad   :  { %9529 = vmatpush3.bf16.msra.mxu1 %v10794_v12  ;;  %v10851_v12 = vld [vmem:[#allocation8 + $0x3c0] ss:$12 sps:$4 sm:$0xff]  }
 0x4ae   :  { %9681 = vmatprep.subr.bf16.mxu1 %v11333_v48 }
 0x4b0   :  { %5928 = vmatmul.mubr.bf16.vlgmr.msra.gmra.mrb[56].mxu1 %v11515_v40  ;;  %v10832_v40 = vld [vmem:[#allocation8 + $0x31c] ss:$12 sps:$4 sm:$0xff]  }
 0x4b1   :  { %9682 = vmatpush3.bf16.msra.mxu1 %v10795_v13  ;;  %9697 = vmatprep.mubr.msk.bf16.mxu1 %vm11334_vm0, %v11333_v48  ;;  %v10856_v13 = vld [vmem:[#allocation8 + $0x3dc] ss:$12 sps:$4 sm:$0xff]  }
 0x4b2   :  { %9683 = vmatprep.subr.bf16.mxu1 %v11333_v48 }
 0x4b5   :  { %9684 = vmatpush3.bf16.msra.mxu1 %v10796_v14  ;;  %v10854_v14 = vld [vmem:[#allocation8 + $0x3d8] ss:$12 sps:$4 sm:$0xff]  }
 0x4b6   :  { %9685 = vmatprep.subr.bf16.mxu1 %v11333_v48 }
 0x4b9   :  { %9686 = vmatpush3.bf16.msra.mxu1 %v10797_v15  ;;  %v10859_v15 = vld [vmem:[#allocation8 + $0x3f4] ss:$12 sps:$4 sm:$0xff]  }
 0x4ba   :  { %9687 = vmatprep.subr.bf16.mxu1 %v11333_v48 }
 0x4bd   :  { %9688 = vmatpush3.bf16.msra.mxu1 %v10798_v16  ;;  %v10857_v16 = vld [vmem:[#allocation8 + $0x3f0] ss:$12 sps:$4 sm:$0xff]  }
 0x4be   :  { %9689 = vmatprep.subr.bf16.mxu1 %v11333_v48 }
 0x4c1   :  { %9690 = vmatpush3.bf16.msra.mxu1 %v10799_v6  ;;  %v10862_v6 = vld [vmem:[#allocation8 + $0x40c] ss:$12 sps:$4 sm:$0xff]  }
 0x4c2   :  { %9691 = vmatprep.subr.bf16.mxu1 %v11333_v48 }
 0x4c5   :  { %9692 = vmatpush3.bf16.msra.mxu1 %v10800_v17  ;;  %v10860_v17 = vld [vmem:[#allocation8 + $0x408] ss:$12 sps:$4 sm:$0xff]  }
 0x4c6   :  { %9693 = vmatprep.subr.bf16.mxu1 %v11333_v48 }
 0x4c9   :  { %9694 = vmatpush3.bf16.msra.mxu1 %v10801_v18  ;;  %v10865_v18 = vld [vmem:[#allocation8 + $0x424] ss:$12 sps:$4 sm:$0xff]  }
 0x4ca   :  { %9695 = vmatprep.subr.bf16.mxu1 %v11333_v48 }
 0x4cd   :  { %9696 = vmatpush3.bf16.msra.mxu1 %v10802_v25  ;;  %v10863_v25 = vld [vmem:[#allocation8 + $0x420] ss:$12 sps:$4 sm:$0xff]  }
 0x4ce   :  { %6485 = vmatprep.subr.bf16.mxu1 %v10805_v19  ;;  %v10868_v19 = vld [vmem:[#allocation8 + $0x43c] ss:$12 sps:$4 sm:$0xff]  }
 0x4d0   :  { %9698 = vmatmul.mubr.bf16.vlgmr.msra.gmra.mrb[60].mxu1 %v11503_v39  ;;  %v10823_v39 = vld [vmem:[#allocation8 + $0x2d4] ss:$12 sps:$4 sm:$0xff]  }
 0x4d1   :  { %6486 = vmatpush1.bf16.msra.mxu1 %v10803_v20  ;;  %v10866_v20 = vld [vmem:[#allocation8 + $0x438] ss:$12 sps:$4 sm:$0xff]  }
 0x4d2   :  { %6487 = vmatprep.subr.bf16.mxu1 %v10808_v22  ;;  %v10871_v22 = vld [vmem:[#allocation8 + $0x454] ss:$12 sps:$4 sm:$0xff]  }
 0x4d5   :  { %6488 = vmatpush1.bf16.msra.mxu1 %v10806_v23 }
 0x4d6   :  { %6489 = vmatprep.subr.bf16.mxu1 %v10811_v24  ;;  %v10869_v24 = vld [vmem:[#allocation8 + $0x450] ss:$12 sps:$4 sm:$0xff]  }
 0x4d9   :  { %6490 = vmatpush1.bf16.msra.mxu1 %v10809_v26 }
 0x4da   :  { %6491 = vmatprep.subr.bf16.mxu1 %v10814_v27  ;;  %v10874_v27 = vld [vmem:[#allocation8 + $0x46c] ss:$12 sps:$4 sm:$0xff]  }
 0x4dd   :  { %6492 = vmatpush1.bf16.msra.mxu1 %v10812_v28 }
 0x4de   :  { %6493 = vmatprep.subr.bf16.mxu1 %v10817_v29 }
 0x4e1   :  { %6494 = vmatpush1.bf16.msra.mxu1 %v10815_v30 }
 0x4e2   :  { %6495 = vmatprep.subr.bf16.mxu1 %v10820_v31 }
 0x4e5   :  { %6496 = vmatpush1.bf16.msra.mxu1 %v10818_v32  ;;  %v10872_v32 = vld [vmem:[#allocation8 + $0x468] ss:$12 sps:$4 sm:$0xff]  }
 0x4e6   :  { %6497 = vmatprep.subr.bf16.mxu1 %v10823_v39  ;;  %v10875_v39 = vld [vmem:[#allocation8 + $0x308] ss:$12 sps:$4 sm:$0xff]  }
 0x4e9   :  { %6498 = vmatpush1.bf16.msra.mxu1 %v10821_v33  ;;  %v10926_v33 = vld [vmem:[#allocation8 + $0x548] ss:$12 sps:$4 sm:$0xff]  }
 0x4ea   :  { %6499 = vmatprep.subr.bf16.mxu1 %v10826_v34  ;;  %9576 = vmatprep.subr.bf16.mxu0 %v10926_v33  ;;  %v10927_v34 = vld [vmem:[#allocation8 + $0x488] ss:$12 sps:$4 sm:$0xff]   ;;  %v10952_v33 = vld [vmem:[#allocation8 + $0x500] ss:$12 sps:$4 sm:$0xff]  }
 0x4eb   :  { %9577 = vmatpush3.bf16.msra.mxu0 %v10927_v34  ;;  %v10917_v34 = vld [vmem:[#allocation8 + $0x510] ss:$12 sps:$4 sm:$0xff]  }
 0x4ed   :  { %6500 = vmatpush1.bf16.msra.mxu1 %v10824_v35  ;;  %v10931_v35 = vld [vmem:[#allocation8 + $0x560] ss:$12 sps:$4 sm:$0xff]  }
 0x4ee   :  { %6501 = vmatprep.subr.bf16.mxu1 %v10829_v37  ;;  %9578 = vmatprep.subr.bf16.mxu0 %v10931_v35  ;;  %v10932_v37 = vld [vmem:[#allocation8 + $0x4a0] ss:$12 sps:$4 sm:$0xff]   ;;  %v10956_v35 = vld [vmem:[#allocation8 + $0x5d8] ss:$12 sps:$4 sm:$0xff]  }
 0x4ef   :  { %9579 = vmatpush3.bf16.msra.mxu0 %v10932_v37  ;;  %v10922_v37 = vld [vmem:[#allocation8 + $0x52c] ss:$12 sps:$4 sm:$0xff]  }
 0x4f1   :  { %6502 = vmatpush1.bf16.msra.mxu1 %v10827_v38  ;;  %v10936_v38 = vld [vmem:[#allocation8 + $0x578] ss:$12 sps:$4 sm:$0xff]  }
 0x4f2   :  { %6503 = vmatprep.subr.bf16.mxu1 %v10832_v40  ;;  %9580 = vmatprep.subr.bf16.mxu0 %v10936_v38  ;;  %v10937_v40 = vld [vmem:[#allocation8 + $0x4b8] ss:$12 sps:$4 sm:$0xff]  }
 0x4f3   :  { %9581 = vmatpush3.bf16.msra.mxu0 %v10937_v40  ;;  %v10957_v38 = vld [vmem:[#allocation8 + $0x518] ss:$12 sps:$4 sm:$0xff]   ;;  %v10920_v40 = vld [vmem:[#allocation8 + $0x528] ss:$12 sps:$4 sm:$0xff]  }
 0x4f5   :  { %6504 = vmatpush1.bf16.msra.mxu1 %v10830_v45  ;;  %v10941_v45 = vld [vmem:[#allocation8 + $0x590] ss:$12 sps:$4 sm:$0xff]  }
 0x4f6   :  { %6505 = vmatprep.subr.bf16.mxu1 %v10835_v41  ;;  %9582 = vmatprep.subr.bf16.mxu0 %v10941_v45  ;;  %v10942_v41 = vld [vmem:[#allocation8 + $0x4d0] ss:$12 sps:$4 sm:$0xff]  }
 0x4f7   :  { %9583 = vmatpush3.bf16.msra.mxu0 %v10942_v41  ;;  %v10961_v45 = vld [vmem:[#allocation8 + $0x5f0] ss:$12 sps:$4 sm:$0xff]  }
 0x4f8   :  { %v10925_v41 = vld [vmem:[#allocation8 + $0x544] ss:$12 sps:$4 sm:$0xff]  }
 0x4f9   :  { %6506 = vmatpush1.bf16.msra.mxu1 %v10833_v42  ;;  %v10946_v42 = vld [vmem:[#allocation8 + $0x5a8] ss:$12 sps:$4 sm:$0xff]  }
 0x4fa   :  { %6507 = vmatprep.subr.bf16.mxu1 %v10838_v43  ;;  %9584 = vmatprep.subr.bf16.mxu0 %v10946_v42  ;;  %v10947_v43 = vld [vmem:[#allocation8 + $0x4e8] ss:$12 sps:$4 sm:$0xff]   ;;  %v10962_v42 = vld [vmem:[#allocation8 + $0x530] ss:$12 sps:$4 sm:$0xff]  }
 0x4fb   :  { %9585 = vmatpush3.bf16.msra.mxu0 %v10947_v43  ;;  %v10923_v43 = vld [vmem:[#allocation8 + $0x540] ss:$12 sps:$4 sm:$0xff]  }
 0x4fd   :  { %6508 = vmatpush1.bf16.msra.mxu1 %v10836_v44  ;;  %v5421_v44 = vrot.slane %v11532_v58, %v11500_v55  ;;  %v10878_v58 = vld [vmem:[#allocation8 + $0x260] ss:$12 sps:$4 sm:$0xff]  }
 0x4fe   :  { %6509 = vmatprep.subr.bf16.mxu1 %v10841_v46  ;;  %v10951_v46 = vld [vmem:[#allocation8 + $0x5c0] ss:$12 sps:$4 sm:$0xff]  }
 0x4ff   :  { %9586 = vmatprep.subr.bf16.mxu0 %v10951_v46  ;;  %v10928_v46 = vld [vmem:[#allocation8 + $0x558] ss:$12 sps:$4 sm:$0xff]  }
 0x500   :  { %9587 = vmatpush3.bf16.msra.mxu0 %v10952_v33  ;;  %v10989_v33 = vld [vmem:[#allocation8 + $0x694] ss:$12 sps:$4 sm:$0xff]  }
 0x501   :  { %6510 = vmatpush1.bf16.msra.mxu1 %v10839_v47  ;;  %9588 = vmatprep.subr.bf16.mxu0 %v10956_v35  ;;  %v10987_v35 = vld [vmem:[#allocation8 + $0x690] ss:$12 sps:$4 sm:$0xff]  }
 0x502   :  { %6511 = vmatprep.subr.bf16.mxu1 %v10844_v49 }
 0x504   :  { %9589 = vmatpush3.bf16.msra.mxu0 %v10957_v38 }
 0x505   :  { %6512 = vmatpush1.bf16.msra.mxu1 %v10842_v50  ;;  %9590 = vmatprep.subr.bf16.mxu0 %v10961_v45 }
 0x506   :  { %6513 = vmatprep.subr.bf16.mxu1 %v10847_v51 }
 0x508   :  { %9591 = vmatpush3.bf16.msra.mxu0 %v10962_v42 }
 0x509   :  { %6514 = vmatpush1.bf16.msra.mxu1 %v10845_v52  ;;  %9721 = vmatprep.subr.bf16.mxu0 %v11333_v48 }
 0x50a   :  { %6515 = vmatprep.subr.bf16.mxu1 %v10850_v53 }
 0x50d   :  { %6516 = vmatpush1.bf16.msra.mxu1 %v10848_v56 }
 0x50e   :  { %6528 = vmatprep.subr.bf16.mxu1 %v10853_v57 }
 0x563   :  { %v5886_v61 = vpop.f32.mrb[52].mxu1 }
 0x564   :  { %v9785_v62 = vadd.f32 %v5886_v61, %v5413_v59  ;;  %v5888_v63 = vpop.f32.mrb[53].mxu1  ;;  %v10876_v61 = vld [vmem:[#allocation8 + $0x248] ss:$12 sps:$4 sm:$0xff]  }
 0x565   :  { %v9786_v0 = vadd.f32 %v5888_v63, %v5417_v60  ;;  %v5890_v1 = vpop.f32.mrb[54].mxu1  ;;  %v10877_v63 = vld [vmem:[#allocation8 + $0x320] ss:$12 sps:$4 sm:$0xff]  }
 0x566   :  { %v9787_v2 = vadd.f32 %v5890_v1, %v5413_v59  ;;  %v5892_v3 = vpop.f32.mrb[55].mxu1  ;;  %v5977_v5 = vmax.f32 %v9785_v62, 0.0  ;;  %v10880_v1 = vld [vmem:[#allocation8 + $0x278] ss:$12 sps:$4 sm:$0xff]  }
 0x567   :  { %v9788_v4 = vadd.f32 %v5892_v3, %v5417_v60  ;;  %v5978_v8 = vmax.f32 %v9786_v0, 0.0  ;;  %v10879_v0 = vld [vmem:[#allocation8 + $0x338] ss:$12 sps:$4 sm:$0xff]   ;;  %v10882_v3 = vld [vmem:[#allocation8 + $0x290] ss:$12 sps:$4 sm:$0xff]  }
 0x568   :  { %v5980_v7 = vmax.f32 %v9787_v2, 0.0  ;;  %v10881_v2 = vld [vmem:[#allocation8 + $0x350] ss:$12 sps:$4 sm:$0xff]  }
 0x569   :  { %v5981_v9 = vmax.f32 %v9788_v4, 0.0  ;;  %v10883_v4 = vld [vmem:[#allocation8 + $0x368] ss:$12 sps:$4 sm:$0xff]  }
 0x56a   :  { %v11538_v10 = vpack.c.bf16 %v5980_v7, %v5977_v5  ;;  %v10884_v5 = vld [vmem:[#allocation8 + $0x2a8] ss:$12 sps:$4 sm:$0xff]   ;;  %v10885_v7 = vld [vmem:[#allocation8 + $0x380] ss:$12 sps:$4 sm:$0xff]  }
 0x56b   :  { %v11540_v11 = vpack.c.bf16 %v5981_v9, %v5978_v8  ;;  %v10886_v8 = vld [vmem:[#allocation8 + $0x2c0] ss:$12 sps:$4 sm:$0xff]   ;;  %v10887_v9 = vld [vmem:[#allocation8 + $0x398] ss:$12 sps:$4 sm:$0xff]  }
 0x56d   :  { %6517 = vmatprep.mubr.bf16.mxu1 %v11540_v11 }
 0x56e   :  { %6518 = vmatmul.mubr.bf16.vlgmr.msra.gmra.mrb[64].mxu1 %v11538_v10 }
 0x56f   :  { %6529 = vmatpush1.bf16.msra.mxu1 %v10851_v12  ;;  %6560 = vmatprep.mubr.bf16.mxu1 %v11335_v54  ;;  %v10889_v12 = vld [vmem:[#allocation8 + $0x3b0] ss:$12 sps:$4 sm:$0xff]  }
 0x570   :  { %6530 = vmatprep.subr.bf16.mxu1 %v10856_v13  ;;  %v10890_v13 = vld [vmem:[#allocation8 + $0x2f0] ss:$12 sps:$4 sm:$0xff]  }
 0x573   :  { %6531 = vmatpush1.bf16.msra.mxu1 %v10854_v14  ;;  %v10891_v14 = vld [vmem:[#allocation8 + $0x3c8] ss:$12 sps:$4 sm:$0xff]  }
 0x574   :  { %6532 = vmatprep.subr.bf16.mxu1 %v10859_v15  ;;  %v10892_v15 = vld [vmem:[#allocation8 + $0x3e0] ss:$12 sps:$4 sm:$0xff]  }
 0x577   :  { %6533 = vmatpush1.bf16.msra.mxu1 %v10857_v16  ;;  %v10893_v16 = vld [vmem:[#allocation8 + $0x3f8] ss:$12 sps:$4 sm:$0xff]  }
 0x578   :  { %6534 = vmatprep.subr.bf16.mxu1 %v10862_v6  ;;  %v10894_v6 = vld [vmem:[#allocation8 + $0x410] ss:$12 sps:$4 sm:$0xff]  }
 0x57b   :  { %6535 = vmatpush1.bf16.msra.mxu1 %v10860_v17  ;;  %v10895_v17 = vld [vmem:[#allocation8 + $0x428] ss:$12 sps:$4 sm:$0xff]  }
 0x57c   :  { %6536 = vmatprep.subr.bf16.mxu1 %v10865_v18  ;;  %v10897_v18 = vld [vmem:[#allocation8 + $0x458] ss:$12 sps:$4 sm:$0xff]  }
 0x57f   :  { %6537 = vmatpush1.bf16.msra.mxu1 %v10863_v25  ;;  %v10898_v25 = vld [vmem:[#allocation8 + $0x470] ss:$12 sps:$4 sm:$0xff]  }
 0x580   :  { %6538 = vmatprep.subr.bf16.mxu1 %v10868_v19  ;;  %v10901_v19 = vld [vmem:[#allocation8 + $0x484] ss:$12 sps:$4 sm:$0xff]  }
 0x583   :  { %v9530_v23 = vpop.f32.mrb[56].mxu1  ;;  %6539 = vmatpush1.bf16.msra.mxu1 %v10866_v20  ;;  %v10899_v20 = vld [vmem:[#allocation8 + $0x480] ss:$12 sps:$4 sm:$0xff]  }
 0x584   :  { %v9531_v26 = vpop.f32.mrb[57].mxu1  ;;  %6540 = vmatprep.subr.bf16.mxu1 %v10871_v22  ;;  %v10904_v22 = vld [vmem:[#allocation8 + $0x49c] ss:$12 sps:$4 sm:$0xff]  }
 0x585   :  { %v9532_v28 = vadd.f32 %v9531_v26, %v9530_v23  ;;  %v9533_v29 = vpop.f32.mrb[58].mxu1  ;;  %v10902_v23 = vld [vmem:[#allocation8 + $0x498] ss:$12 sps:$4 sm:$0xff]   ;;  %v10905_v26 = vld [vmem:[#allocation8 + $0x4b0] ss:$12 sps:$4 sm:$0xff]  }
 0x586   :  { %v9534_v30 = vpop.f32.mrb[59].mxu1 }
 0x587   :  { %v9535_v31 = vadd.f32 %v9534_v30, %v9533_v29  ;;  %6541 = vmatpush1.bf16.msra.mxu1 %v10869_v24  ;;  %v5930_v47 = vadd.f32 %v9532_v28, %v5421_v44  ;;  %v10907_v24 = vld [vmem:[#allocation8 + $0x4b4] ss:$12 sps:$4 sm:$0xff]   ;;  %v10913_v29 = vld [vmem:[#allocation8 + $0x4e4] ss:$12 sps:$4 sm:$0xff]  }
 0x588   :  { %6542 = vmatprep.subr.bf16.mxu1 %v10874_v27  ;;  %v10910_v27 = vld [vmem:[#allocation8 + $0x4cc] ss:$12 sps:$4 sm:$0xff]   ;;  %v10908_v28 = vld [vmem:[#allocation8 + $0x4c8] ss:$12 sps:$4 sm:$0xff]  }
 0x589   :  { %v5933_v52 = vadd.f32 %v9535_v31, %v5421_v44  ;;  %v10911_v30 = vld [vmem:[#allocation8 + $0x4e0] ss:$12 sps:$4 sm:$0xff]   ;;  %v10916_v31 = vld [vmem:[#allocation8 + $0x4fc] ss:$12 sps:$4 sm:$0xff]  }
 0x58a   :  { %v10930_v44 = vld [vmem:[#allocation8 + $0x55c] ss:$12 sps:$4 sm:$0xff]  }
 0x58b   :  { %6543 = vmatpush1.bf16.msra.mxu1 %v10872_v32  ;;  %v10914_v32 = vld [vmem:[#allocation8 + $0x4f8] ss:$12 sps:$4 sm:$0xff]  }
 0x58c   :  { %9545 = vmatprep.subr.bf16.mxu1 %v10875_v39  ;;  %v10919_v39 = vld [vmem:[#allocation8 + $0x514] ss:$12 sps:$4 sm:$0xff]  }
 0x5a3   :  { %v5970_v49 = vpop.f32.mrb[60].mxu1 }
 0x5a4   :  { %v5971_v50 = vadd.f32 %v5970_v49, %v5930_v47  ;;  %v9699_v51 = vpop.f32.mrb[61].mxu1  ;;  %v10935_v47 = vld [vmem:[#allocation8 + $0x574] ss:$12 sps:$4 sm:$0xff]   ;;  %v10933_v49 = vld [vmem:[#allocation8 + $0x570] ss:$12 sps:$4 sm:$0xff]  }
 0x5a5   :  { %v5973_v53 = vpop.f32.mrb[62].mxu1  ;;  %v10938_v51 = vld [vmem:[#allocation8 + $0x588] ss:$12 sps:$4 sm:$0xff]  }
 0x5a6   :  { %v5974_v56 = vadd.f32 %v5973_v53, %v5933_v52  ;;  %v9700_v57 = vpop.f32.mrb[63].mxu1  ;;  %v5979_v59 = vmax.f32 %v5971_v50, 0.0  ;;  %v10940_v50 = vld [vmem:[#allocation8 + $0x58c] ss:$12 sps:$4 sm:$0xff]   ;;  %v10945_v52 = vld [vmem:[#allocation8 + $0x5a4] ss:$12 sps:$4 sm:$0xff]  }
 0x5a7   :  { %v10943_v53 = vld [vmem:[#allocation8 + $0x5a0] ss:$12 sps:$4 sm:$0xff]   ;;  %v10948_v57 = vld [vmem:[#allocation8 + $0x5b8] ss:$12 sps:$4 sm:$0xff]  }
 0x5a8   :  { %v5982_v60 = vmax.f32 %v5974_v56, 0.0  ;;  %v10950_v56 = vld [vmem:[#allocation8 + $0x5bc] ss:$12 sps:$4 sm:$0xff]  }
 0x5aa   :  { %v5985_v62 = vpack.c.bf16 %v5982_v60, %v5979_v59  ;;  %v10955_v59 = vld [vmem:[#allocation8 + $0x5d4] ss:$12 sps:$4 sm:$0xff]   ;;  %v10953_v60 = vld [vmem:[#allocation8 + $0x5d0] ss:$12 sps:$4 sm:$0xff]  }
 0x5ac   :  { %6561 = vmatmul.mubr.bf16.vlgmr.msra.gmra.mrb[64].mxu1 %v5985_v62 }
 0x5ad   :  { %9546 = vmatpush3.bf16.msra.mxu1 %v10876_v61  ;;  %6603 = vmatprep.mubr.bf16.mxu1 %v11540_v11  ;;  %v10888_v11 = vld [vmem:[#allocation8 + $0x2d8] ss:$12 sps:$4 sm:$0xff]  }
 0x5ae   :  { %9547 = vmatprep.subr.bf16.mxu1 %v10877_v63  ;;  %v10960_v61 = vld [vmem:[#allocation8 + $0x5ec] ss:$12 sps:$4 sm:$0xff]   ;;  %v10965_v63 = vld [vmem:[#allocation8 + $0x604] ss:$12 sps:$4 sm:$0xff]  }
 0x5b1   :  { %9548 = vmatpush3.bf16.msra.mxu1 %v10878_v58  ;;  %v11560_v58 = vld [vmem:[#allocation10 + $0x3] sm:$0x7] }
 0x5b2   :  { %9549 = vmatprep.subr.bf16.mxu1 %v10879_v0  ;;  %v6089_v0 = vrot.slane %v11560_v58, %v11508_v21 }
 0x5b5   :  { %9550 = vmatpush3.bf16.msra.mxu1 %v10880_v1  ;;  %v6093_v1 = vrot.slane %v11560_v58, %v11511_v36 }
 0x5b6   :  { %9551 = vmatprep.subr.bf16.mxu1 %v10881_v2 }
 0x5b9   :  { %9552 = vmatpush3.bf16.msra.mxu1 %v10882_v3 }
 0x5ba   :  { %9553 = vmatprep.subr.bf16.mxu1 %v10883_v4 }
 0x5bd   :  { %9554 = vmatpush3.bf16.msra.mxu1 %v10884_v5 }
 0x5be   :  { %9555 = vmatprep.subr.bf16.mxu1 %v10885_v7 }
 0x5c1   :  { %9556 = vmatpush3.bf16.msra.mxu1 %v10886_v8 }
 0x5c2   :  { %9557 = vmatprep.subr.bf16.mxu1 %v10887_v9 }
 0x5c5   :  { %9558 = vmatpush3.bf16.msra.mxu1 %v10888_v11 }
 0x5c6   :  { %9559 = vmatprep.subr.bf16.mxu1 %v10889_v12 }
 0x5c9   :  { %9560 = vmatpush3.bf16.msra.mxu1 %v10890_v13 }
 0x5ca   :  { %9701 = vmatprep.subr.bf16.mxu1 %v11333_v48 }
 0x5cc   :  { %6604 = vmatmul.mubr.bf16.vlgmr.msra.gmra.mrb[68].mxu1 %v11538_v10  ;;  %v10896_v10 = vld [vmem:[#allocation8 + $0x440] ss:$12 sps:$4 sm:$0xff]  }
 0x5cd   :  { %9702 = vmatpush3.bf16.msra.mxu1 %v10891_v14  ;;  %9717 = vmatprep.mubr.msk.bf16.mxu1 %vm11334_vm0, %v11333_v48 }
 0x5ce   :  { %9703 = vmatprep.subr.bf16.mxu1 %v11333_v48 }
 0x5d1   :  { %9704 = vmatpush3.bf16.msra.mxu1 %v10892_v15 }
 0x5d2   :  { %9705 = vmatprep.subr.bf16.mxu1 %v11333_v48 }
 0x5d5   :  { %9706 = vmatpush3.bf16.msra.mxu1 %v10893_v16 }
 0x5d6   :  { %9707 = vmatprep.subr.bf16.mxu1 %v11333_v48 }
 0x5d9   :  { %9708 = vmatpush3.bf16.msra.mxu1 %v10894_v6 }
 0x5da   :  { %9709 = vmatprep.subr.bf16.mxu1 %v11333_v48 }
 0x5dd   :  { %9710 = vmatpush3.bf16.msra.mxu1 %v10895_v17  ;;  %v10963_v17 = vld [vmem:[#allocation8 + $0x600] ss:$12 sps:$4 sm:$0xff]  }
 0x5de   :  { %9711 = vmatprep.subr.bf16.mxu1 %v11333_v48 }
 0x5e1   :  { %9712 = vmatpush3.bf16.msra.mxu1 %v10896_v10  ;;  %v10966_v10 = vld [vmem:[#allocation8 + $0x608] ss:$12 sps:$4 sm:$0xff]  }
 0x5e2   :  { %9713 = vmatprep.subr.bf16.mxu1 %v11333_v48 }
 0x5e5   :  { %9714 = vmatpush3.bf16.msra.mxu1 %v10897_v18  ;;  %v10969_v18 = vld [vmem:[#allocation8 + $0x61c] ss:$12 sps:$4 sm:$0xff]  }
 0x5e6   :  { %9715 = vmatprep.subr.bf16.mxu1 %v11333_v48 }
 0x5e9   :  { %9716 = vmatpush3.bf16.msra.mxu1 %v10898_v25  ;;  %v10967_v25 = vld [vmem:[#allocation8 + $0x618] ss:$12 sps:$4 sm:$0xff]  }
 0x5ea   :  { %7161 = vmatprep.subr.bf16.mxu1 %v10901_v19  ;;  %v10970_v19 = vld [vmem:[#allocation8 + $0x620] ss:$12 sps:$4 sm:$0xff]  }
 0x5ec   :  { %9718 = vmatmul.mubr.bf16.vlgmr.msra.gmra.mrb[72].mxu1 %v5985_v62  ;;  %v10958_v62 = vld [vmem:[#allocation8 + $0x5e8] ss:$12 sps:$4 sm:$0xff]  }
 0x5ed   :  { %7162 = vmatpush1.bf16.msra.mxu1 %v10899_v20  ;;  %v10973_v20 = vld [vmem:[#allocation8 + $0x634] ss:$12 sps:$4 sm:$0xff]  }
 0x5ee   :  { %7163 = vmatprep.subr.bf16.mxu1 %v10904_v22  ;;  %v10971_v22 = vld [vmem:[#allocation8 + $0x630] ss:$12 sps:$4 sm:$0xff]  }
 0x5f1   :  { %7164 = vmatpush1.bf16.msra.mxu1 %v10902_v23  ;;  %v10974_v23 = vld [vmem:[#allocation8 + $0x638] ss:$12 sps:$4 sm:$0xff]  }
 0x5f2   :  { %7165 = vmatprep.subr.bf16.mxu1 %v10907_v24  ;;  %v10977_v24 = vld [vmem:[#allocation8 + $0x64c] ss:$12 sps:$4 sm:$0xff]  }
 0x5f5   :  { %7166 = vmatpush1.bf16.msra.mxu1 %v10905_v26  ;;  %v10975_v26 = vld [vmem:[#allocation8 + $0x648] ss:$12 sps:$4 sm:$0xff]  }
 0x5f6   :  { %7167 = vmatprep.subr.bf16.mxu1 %v10910_v27  ;;  %v10978_v27 = vld [vmem:[#allocation8 + $0x650] ss:$12 sps:$4 sm:$0xff]  }
 0x5f9   :  { %7168 = vmatpush1.bf16.msra.mxu1 %v10908_v28  ;;  %v10981_v28 = vld [vmem:[#allocation8 + $0x664] ss:$12 sps:$4 sm:$0xff]  }
 0x5fa   :  { %7169 = vmatprep.subr.bf16.mxu1 %v10913_v29  ;;  %v10979_v29 = vld [vmem:[#allocation8 + $0x660] ss:$12 sps:$4 sm:$0xff]  }
 0x5fd   :  { %7170 = vmatpush1.bf16.msra.mxu1 %v10911_v30  ;;  %v10982_v30 = vld [vmem:[#allocation8 + $0x668] ss:$12 sps:$4 sm:$0xff]  }
 0x5fe   :  { %7171 = vmatprep.subr.bf16.mxu1 %v10916_v31  ;;  %v10985_v31 = vld [vmem:[#allocation8 + $0x67c] ss:$12 sps:$4 sm:$0xff]  }
 0x601   :  { %7172 = vmatpush1.bf16.msra.mxu1 %v10914_v32  ;;  %v10983_v32 = vld [vmem:[#allocation8 + $0x678] ss:$12 sps:$4 sm:$0xff]  }
 0x602   :  { %7173 = vmatprep.subr.bf16.mxu1 %v10919_v39  ;;  %v10986_v39 = vld [vmem:[#allocation8 + $0x680] ss:$12 sps:$4 sm:$0xff]  }
 0x605   :  { %7174 = vmatpush1.bf16.msra.mxu1 %v10917_v34 }
 0x606   :  { %7175 = vmatprep.subr.bf16.mxu1 %v10922_v37  ;;  %v10990_v37 = vld [vmem:[#allocation8 + $0x698] ss:$12 sps:$4 sm:$0xff]  }
 0x609   :  { %7176 = vmatpush1.bf16.msra.mxu1 %v10920_v40  ;;  %v10993_v40 = vld [vmem:[#allocation8 + $0x6ac] ss:$12 sps:$4 sm:$0xff]  }
 0x60a   :  { %7177 = vmatprep.subr.bf16.mxu1 %v10925_v41 }
 0x60d   :  { %7178 = vmatpush1.bf16.msra.mxu1 %v10923_v43 }
 0x60e   :  { %7179 = vmatprep.subr.bf16.mxu1 %v10930_v44  ;;  %v10991_v44 = vld [vmem:[#allocation8 + $0x6a8] ss:$12 sps:$4 sm:$0xff]  }
 0x611   :  { %7180 = vmatpush1.bf16.msra.mxu1 %v10928_v46  ;;  %v10994_v46 = vld [vmem:[#allocation8 + $0x6b0] ss:$12 sps:$4 sm:$0xff]  }
 0x612   :  { %7181 = vmatprep.subr.bf16.mxu1 %v10935_v47  ;;  %v6097_v47 = vrot.slane %v11560_v58, %v11500_v55  ;;  %v11003_v58 = vld [vmem:[#allocation8 + $0x6f4] ss:$12 sps:$4 sm:$0xff]  }
 0x615   :  { %7182 = vmatpush1.bf16.msra.mxu1 %v10933_v49 }
 0x616   :  { %7183 = vmatprep.subr.bf16.mxu1 %v10940_v50 }
 0x619   :  { %7184 = vmatpush1.bf16.msra.mxu1 %v10938_v51 }
 0x61a   :  { %7185 = vmatprep.subr.bf16.mxu1 %v10945_v52 }
 0x61d   :  { %7186 = vmatpush1.bf16.msra.mxu1 %v10943_v53 }
 0x61e   :  { %7187 = vmatprep.subr.bf16.mxu1 %v10950_v56 }
 0x621   :  { %7188 = vmatpush1.bf16.msra.mxu1 %v10948_v57 }
 0x622   :  { %7189 = vmatprep.subr.bf16.mxu1 %v10955_v59 }
 0x625   :  { %7190 = vmatpush1.bf16.msra.mxu1 %v10953_v60 }
 0x626   :  { %7191 = vmatprep.subr.bf16.mxu1 %v10960_v61 }
 0x629   :  { %7192 = vmatpush1.bf16.msra.mxu1 %v10958_v62 }
 0x62a   :  { %7204 = vmatprep.subr.bf16.mxu1 %v10965_v63  ;;  %v10995_v63 = vld [vmem:[#allocation8 + $0x6c0] ss:$12 sps:$4 sm:$0xff]  }
 0x67f   :  { %v6562_v2 = vpop.f32.mrb[64].mxu1 }
 0x680   :  { %v9789_v3 = vadd.f32 %v6562_v2, %v6089_v0  ;;  %v6564_v4 = vpop.f32.mrb[65].mxu1  ;;  %v10998_v2 = vld [vmem:[#allocation8 + $0x6d8] ss:$12 sps:$4 sm:$0xff]  }
 0x681   :  { %v9790_v5 = vadd.f32 %v6564_v4, %v6093_v1  ;;  %v6566_v7 = vpop.f32.mrb[66].mxu1  ;;  %v11023_v4 = vld [vmem:[#allocation8 + $0x6c8] ss:$12 sps:$4 sm:$0xff]  }
 0x682   :  { %v9791_v8 = vadd.f32 %v6566_v7, %v6089_v0  ;;  %v6568_v9 = vpop.f32.mrb[67].mxu1  ;;  %v6653_v12 = vmax.f32 %v9789_v3, 0.0  ;;  %v10997_v0 = vld [vmem:[#allocation8 + $0x6c4] ss:$12 sps:$4 sm:$0xff]   ;;  %v11022_v3 = vld [vmem:[#allocation8 + $0x788] ss:$12 sps:$4 sm:$0xff]  }
 0x683   :  { %v9792_v11 = vadd.f32 %v6568_v9, %v6093_v1  ;;  %v6654_v14 = vmax.f32 %v9790_v5, 0.0  ;;  %v11000_v1 = vld [vmem:[#allocation8 + $0x6dc] ss:$12 sps:$4 sm:$0xff]   ;;  %v11027_v7 = vld [vmem:[#allocation8 + $0x7a0] ss:$12 sps:$4 sm:$0xff]  }
 0x684   :  { %v6656_v13 = vmax.f32 %v9791_v8, 0.0  ;;  %v11001_v5 = vld [vmem:[#allocation8 + $0x6f0] ss:$12 sps:$4 sm:$0xff]   ;;  %v11006_v8 = vld [vmem:[#allocation8 + $0x70c] ss:$12 sps:$4 sm:$0xff]  }
 0x685   :  { %v6657_v15 = vmax.f32 %v9792_v11, 0.0  ;;  %v11028_v9 = vld [vmem:[#allocation8 + $0x6e0] ss:$12 sps:$4 sm:$0xff]   ;;  %v11032_v11 = vld [vmem:[#allocation8 + $0x7b8] ss:$12 sps:$4 sm:$0xff]  }
 0x686   :  { %v6659_v16 = vpack.c.bf16 %v6656_v13, %v6653_v12  ;;  %v11004_v12 = vld [vmem:[#allocation8 + $0x708] ss:$12 sps:$4 sm:$0xff]   ;;  %v11009_v13 = vld [vmem:[#allocation8 + $0x724] ss:$12 sps:$4 sm:$0xff]  }
 0x687   :  { %v6660_v6 = vpack.c.bf16 %v6657_v15, %v6654_v14  ;;  %v11033_v14 = vld [vmem:[#allocation8 + $0x6f8] ss:$12 sps:$4 sm:$0xff]   ;;  %v11037_v15 = vld [vmem:[#allocation8 + $0x7d0] ss:$12 sps:$4 sm:$0xff]  }
 0x689   :  { %7193 = vmatprep.mubr.bf16.mxu1 %v6660_v6  ;;  %7279 = vmatprep.mubr.bf16.mxu0 %v6660_v6  ;;  %v11012_v6 = vld [vmem:[#allocation8 + $0x73c] ss:$12 sps:$4 sm:$0xff]  }
 0x68a   :  { %7194 = vmatmul.mubr.bf16.vlgmr.msra.gmra.mrb[76].mxu1 %v6659_v16  ;;  %7280 = vmatmul.mubr.bf16.vlgmr.msra.gmra.mrb[4].mxu0 %v6659_v16  ;;  %v11007_v16 = vld [vmem:[#allocation8 + $0x720] ss:$12 sps:$4 sm:$0xff]  }
 0x68b   :  { %7205 = vmatpush1.bf16.msra.mxu1 %v10963_v17  ;;  %9722 = vmatpush3.bf16.msra.mxu0 %v10966_v10  ;;  %v11038_v17 = vld [vmem:[#allocation8 + $0x710] ss:$12 sps:$4 sm:$0xff]   ;;  %v11042_v10 = vld [vmem:[#allocation8 + $0x7e8] ss:$12 sps:$4 sm:$0xff]  }
 0x68c   :  { %7206 = vmatprep.subr.bf16.mxu1 %v10969_v18  ;;  %9723 = vmatprep.subr.bf16.mxu0 %v11333_v48  ;;  %v11010_v18 = vld [vmem:[#allocation8 + $0x738] ss:$12 sps:$4 sm:$0xff]  }
 0x68d   :  { %7236 = vmatprep.mubr.bf16.mxu1 %v11335_v54  ;;  %9737 = vmatprep.mubr.msk.bf16.mxu0 %vm11334_vm0, %v11333_v48 }
 0x68f   :  { %7207 = vmatpush1.bf16.msra.mxu1 %v10967_v25  ;;  %9724 = vmatpush3.bf16.msra.mxu0 %v10970_v19  ;;  %v11015_v25 = vld [vmem:[#allocation8 + $0x754] ss:$12 sps:$4 sm:$0xff]  }
 0x690   :  { %7208 = vmatprep.subr.bf16.mxu1 %v10973_v20  ;;  %9725 = vmatprep.subr.bf16.mxu0 %v11333_v48  ;;  %v11043_v19 = vld [vmem:[#allocation8 + $0x728] ss:$12 sps:$4 sm:$0xff]   ;;  %v11047_v20 = vld [vmem:[#allocation8 + $0x800] ss:$12 sps:$4 sm:$0xff]  }
 0x693   :  { %7209 = vmatpush1.bf16.msra.mxu1 %v10971_v22  ;;  %9726 = vmatpush3.bf16.msra.mxu0 %v10974_v23  ;;  %v11013_v22 = vld [vmem:[#allocation8 + $0x750] ss:$12 sps:$4 sm:$0xff]   ;;  %v11018_v23 = vld [vmem:[#allocation8 + $0x76c] ss:$12 sps:$4 sm:$0xff]  }
 0x694   :  { %7210 = vmatprep.subr.bf16.mxu1 %v10977_v24  ;;  %9727 = vmatprep.subr.bf16.mxu0 %v11333_v48  ;;  %v11048_v24 = vld [vmem:[#allocation8 + $0x740] ss:$12 sps:$4 sm:$0xff]  }
 0x697   :  { %7211 = vmatpush1.bf16.msra.mxu1 %v10975_v26  ;;  %9728 = vmatpush3.bf16.msra.mxu0 %v10978_v27  ;;  %v11016_v26 = vld [vmem:[#allocation8 + $0x768] ss:$12 sps:$4 sm:$0xff]   ;;  %v11021_v27 = vld [vmem:[#allocation8 + $0x784] ss:$12 sps:$4 sm:$0xff]  }
 0x698   :  { %7212 = vmatprep.subr.bf16.mxu1 %v10981_v28  ;;  %9729 = vmatprep.subr.bf16.mxu0 %v11333_v48  ;;  %v11019_v28 = vld [vmem:[#allocation8 + $0x780] ss:$12 sps:$4 sm:$0xff]  }
 0x69b   :  { %7213 = vmatpush1.bf16.msra.mxu1 %v10979_v29  ;;  %9730 = vmatpush3.bf16.msra.mxu0 %v10982_v30  ;;  %v11026_v29 = vld [vmem:[#allocation8 + $0x79c] ss:$12 sps:$4 sm:$0xff]   ;;  %v11024_v30 = vld [vmem:[#allocation8 + $0x798] ss:$12 sps:$4 sm:$0xff]  }
 0x69c   :  { %7214 = vmatprep.subr.bf16.mxu1 %v10985_v31  ;;  %9731 = vmatprep.subr.bf16.mxu0 %v11333_v48  ;;  %v11031_v31 = vld [vmem:[#allocation8 + $0x7b4] ss:$12 sps:$4 sm:$0xff]  }
 0x69f   :  { %v9561_v34 = vpop.f32.mrb[68].mxu1  ;;  %7215 = vmatpush1.bf16.msra.mxu1 %v10983_v32  ;;  %9732 = vmatpush3.bf16.msra.mxu0 %v10986_v39  ;;  %v11029_v32 = vld [vmem:[#allocation8 + $0x7b0] ss:$12 sps:$4 sm:$0xff]   ;;  %v11036_v39 = vld [vmem:[#allocation8 + $0x7cc] ss:$12 sps:$4 sm:$0xff]  }
 0x6a0   :  { %v9562_v38 = vpop.f32.mrb[69].mxu1  ;;  %7216 = vmatprep.subr.bf16.mxu1 %v10989_v33  ;;  %9733 = vmatprep.subr.bf16.mxu0 %v11333_v48  ;;  %v11034_v33 = vld [vmem:[#allocation8 + $0x7c8] ss:$12 sps:$4 sm:$0xff]  }
 0x6a1   :  { %v9563_v45 = vadd.f32 %v9562_v38, %v9561_v34  ;;  %v9564_v41 = vpop.f32.mrb[70].mxu1  ;;  %v11041_v34 = vld [vmem:[#allocation8 + $0x7e4] ss:$12 sps:$4 sm:$0xff]  }
 0x6a2   :  { %v9565_v42 = vpop.f32.mrb[71].mxu1  ;;  %v11044_v38 = vld [vmem:[#allocation8 + $0x7f8] ss:$12 sps:$4 sm:$0xff]  }
 0x6a3   :  { %v9566_v43 = vadd.f32 %v9565_v42, %v9564_v41  ;;  %7217 = vmatpush1.bf16.msra.mxu1 %v10987_v35  ;;  %9734 = vmatpush3.bf16.msra.mxu0 %v10990_v37  ;;  %v6606_v49 = vadd.f32 %v9563_v45, %v6097_v47  ;;  %v11039_v35 = vld [vmem:[#allocation8 + $0x7e0] ss:$12 sps:$4 sm:$0xff]   ;;  %v11046_v37 = vld [vmem:[#allocation8 + $0x7fc] ss:$12 sps:$4 sm:$0xff]   ;;  %v11052_v45 = vld [vmem:[#allocation8 + $0x818] ss:$12 sps:$4 sm:$0xff]  }
 0x6a4   :  { %7218 = vmatprep.subr.bf16.mxu1 %v10993_v40  ;;  %9735 = vmatprep.subr.bf16.mxu0 %v11333_v48  ;;  %v11051_v40 = vld [vmem:[#allocation8 + $0x814] ss:$12 sps:$4 sm:$0xff]   ;;  %v11049_v41 = vld [vmem:[#allocation8 + $0x810] ss:$12 sps:$4 sm:$0xff]   ;;  %v11053_v42 = vld [vmem:[#allocation8 + $0x758] ss:$12 sps:$4 sm:$0xff]  }
 0x6a5   :  { %v6609_v53 = vadd.f32 %v9566_v43, %v6097_v47  ;;  %v11056_v43 = vld [vmem:[#allocation8 + $0x82c] ss:$12 sps:$4 sm:$0xff]   ;;  %v11058_v47 = vld [vmem:[#allocation8 + $0x770] ss:$12 sps:$4 sm:$0xff]  }
 0x6a7   :  { %7219 = vmatpush1.bf16.msra.mxu1 %v10991_v44  ;;  %9736 = vmatpush3.bf16.msra.mxu0 %v10994_v46  ;;  %v11057_v44 = vld [vmem:[#allocation8 + $0x830] ss:$12 sps:$4 sm:$0xff]   ;;  %v11054_v46 = vld [vmem:[#allocation8 + $0x828] ss:$12 sps:$4 sm:$0xff]  }
 0x6a8   :  { %7837 = vmatprep.subr.bf16.mxu1 %v10997_v0  ;;  %9607 = vmatprep.subr.bf16.mxu0 %v11022_v3 }
 0x6bf   :  { %v6646_v50 = vpop.f32.mrb[72].mxu1 }
 0x6c0   :  { %v6647_v51 = vadd.f32 %v6646_v50, %v6606_v49  ;;  %v9719_v52 = vpop.f32.mrb[73].mxu1  ;;  %v11061_v49 = vld [vmem:[#allocation8 + $0x844] ss:$12 sps:$4 sm:$0xff]  }
 0x6c1   :  { %v6649_v56 = vpop.f32.mrb[74].mxu1 }
 0x6c2   :  { %v6650_v57 = vadd.f32 %v6649_v56, %v6609_v53  ;;  %v9720_v59 = vpop.f32.mrb[75].mxu1  ;;  %v6655_v60 = vmax.f32 %v6647_v51, 0.0 }
 0x6c3   :  { %v6760_v59 = vld [vmem:[#allocation10 + $0x6] sm:$0x7] }
 0x6c4   :  { %v6658_v61 = vmax.f32 %v6650_v57, 0.0 }
 0x6c6   :  { %v6661_v62 = vpack.c.bf16 %v6658_v61, %v6655_v60  ;;  %v6773_v60 = vrot.slane %v6760_v59, %v11500_v55  ;;  %v6765_v61 = vrot.slane %v6760_v59, %v11508_v21 }
 0x6c8   :  { %7237 = vmatmul.mubr.bf16.vlgmr.msra.gmra.mrb[76].mxu1 %v6661_v62  ;;  %9738 = vmatmul.mubr.bf16.vlgmr.msra.gmra.mrb[8].mxu0 %v6661_v62  ;;  %v6769_v62 = vrot.slane %v6760_v59, %v11511_v36  ;;  %v11099_v59 = vld [vmem:[#allocation11 + $0x10] sm:$0xff]  }
 0x6c9   :  { %7838 = vmatpush1.bf16.msra.mxu1 %v10995_v63  ;;  %9608 = vmatpush3.bf16.msra.mxu0 %v11023_v4 }
 0x6ca   :  { %7839 = vmatprep.subr.bf16.mxu1 %v11000_v1  ;;  %9609 = vmatprep.subr.bf16.mxu0 %v11027_v7 }
 0x6cd   :  { %7840 = vmatpush1.bf16.msra.mxu1 %v10998_v2  ;;  %9610 = vmatpush3.bf16.msra.mxu0 %v11028_v9 }
 0x6ce   :  { %7841 = vmatprep.subr.bf16.mxu1 %v11003_v58  ;;  %9611 = vmatprep.subr.bf16.mxu0 %v11032_v11 }
 0x6d1   :  { %7842 = vmatpush1.bf16.msra.mxu1 %v11001_v5  ;;  %9612 = vmatpush3.bf16.msra.mxu0 %v11033_v14 }
 0x6d2   :  { %7843 = vmatprep.subr.bf16.mxu1 %v11006_v8  ;;  %9613 = vmatprep.subr.bf16.mxu0 %v11037_v15 }
 0x6d5   :  { %7844 = vmatpush1.bf16.msra.mxu1 %v11004_v12  ;;  %9614 = vmatpush3.bf16.msra.mxu0 %v11038_v17 }
 0x6d6   :  { %7845 = vmatprep.subr.bf16.mxu1 %v11009_v13  ;;  %9615 = vmatprep.subr.bf16.mxu0 %v11042_v10 }
 0x6d9   :  { %7846 = vmatpush1.bf16.msra.mxu1 %v11007_v16  ;;  %9616 = vmatpush3.bf16.msra.mxu0 %v11043_v19 }
 0x6da   :  { %7847 = vmatprep.subr.bf16.mxu1 %v11012_v6  ;;  %9617 = vmatprep.subr.bf16.mxu0 %v11047_v20 }
 0x6dd   :  { %7848 = vmatpush1.bf16.msra.mxu1 %v11010_v18  ;;  %9618 = vmatpush3.bf16.msra.mxu0 %v11048_v24  ;;  %v11062_v24 = vld [vmem:[#allocation8 + $0x848] ss:$12 sps:$4 sm:$0xff]  }
 0x6de   :  { %7849 = vmatprep.subr.bf16.mxu1 %v11015_v25  ;;  %9619 = vmatprep.subr.bf16.mxu0 %v11052_v45  ;;  %v11085_v45 = vld [vmem:[#allocation8 + $0x8d4] ss:$12 sps:$4 sm:$0xff]  }
 0x6e1   :  { %7850 = vmatpush1.bf16.msra.mxu1 %v11013_v22  ;;  %9620 = vmatpush3.bf16.msra.mxu0 %v11053_v42  ;;  %v11086_v42 = vld [vmem:[#allocation8 + $0x8d8] ss:$12 sps:$4 sm:$0xff]  }
 0x6e2   :  { %7851 = vmatprep.subr.bf16.mxu1 %v11018_v23  ;;  %9621 = vmatprep.subr.bf16.mxu0 %v11057_v44  ;;  %v11059_v23 = vld [vmem:[#allocation8 + $0x840] ss:$12 sps:$4 sm:$0xff]   ;;  %v11087_v44 = vld [vmem:[#allocation8 + $0x8e8] ss:$12 sps:$4 sm:$0xff]  }
 0x6e5   :  { %7852 = vmatpush1.bf16.msra.mxu1 %v11016_v26  ;;  %9622 = vmatpush3.bf16.msra.mxu0 %v11058_v47  ;;  %v11065_v26 = vld [vmem:[#allocation8 + $0x85c] ss:$12 sps:$4 sm:$0xff]   ;;  %v11091_v47 = vld [vmem:[#allocation11 + $0x80] sm:$0xff]  }
 0x6e6   :  { %7853 = vmatprep.subr.bf16.mxu1 %v11021_v27  ;;  %9741 = vmatprep.subr.bf16.mxu0 %v11333_v48  ;;  %v11063_v27 = vld [vmem:[#allocation8 + $0x858] ss:$12 sps:$4 sm:$0xff]  }
 0x6e9   :  { %7854 = vmatpush1.bf16.msra.mxu1 %v11019_v28  ;;  %v11066_v28 = vld [vmem:[#allocation8 + $0x860] ss:$12 sps:$4 sm:$0xff]  }
 0x6ea   :  { %7855 = vmatprep.subr.bf16.mxu1 %v11026_v29  ;;  %v11069_v29 = vld [vmem:[#allocation8 + $0x874] ss:$12 sps:$4 sm:$0xff]  }
 0x6ed   :  { %7856 = vmatpush1.bf16.msra.mxu1 %v11024_v30  ;;  %v11067_v30 = vld [vmem:[#allocation8 + $0x870] ss:$12 sps:$4 sm:$0xff]  }
 0x6ee   :  { %7857 = vmatprep.subr.bf16.mxu1 %v11031_v31  ;;  %v11070_v31 = vld [vmem:[#allocation8 + $0x878] ss:$12 sps:$4 sm:$0xff]  }
 0x6f1   :  { %7858 = vmatpush1.bf16.msra.mxu1 %v11029_v32  ;;  %v11073_v32 = vld [vmem:[#allocation8 + $0x88c] ss:$12 sps:$4 sm:$0xff]  }
 0x6f2   :  { %7859 = vmatprep.subr.bf16.mxu1 %v11036_v39  ;;  %v11071_v39 = vld [vmem:[#allocation8 + $0x888] ss:$12 sps:$4 sm:$0xff]  }
 0x6f5   :  { %7860 = vmatpush1.bf16.msra.mxu1 %v11034_v33  ;;  %v11074_v33 = vld [vmem:[#allocation8 + $0x890] ss:$12 sps:$4 sm:$0xff]  }
 0x6f6   :  { %7861 = vmatprep.subr.bf16.mxu1 %v11041_v34  ;;  %v11077_v34 = vld [vmem:[#allocation8 + $0x8a4] ss:$12 sps:$4 sm:$0xff]  }
 0x6f9   :  { %7862 = vmatpush1.bf16.msra.mxu1 %v11039_v35  ;;  %v11078_v35 = vld [vmem:[#allocation8 + $0x8a8] ss:$12 sps:$4 sm:$0xff]  }
 0x6fa   :  { %7863 = vmatprep.subr.bf16.mxu1 %v11046_v37  ;;  %v11081_v37 = vld [vmem:[#allocation8 + $0x8bc] ss:$12 sps:$4 sm:$0xff]  }
 0x6fd   :  { %7864 = vmatpush1.bf16.msra.mxu1 %v11044_v38  ;;  %v11079_v38 = vld [vmem:[#allocation8 + $0x8b8] ss:$12 sps:$4 sm:$0xff]  }
 0x6fe   :  { %7865 = vmatprep.subr.bf16.mxu1 %v11051_v40  ;;  %v11082_v40 = vld [vmem:[#allocation8 + $0x8c0] ss:$12 sps:$4 sm:$0xff]  }
 0x701   :  { %7866 = vmatpush1.bf16.msra.mxu1 %v11049_v41  ;;  %v11083_v41 = vld [vmem:[#allocation8 + $0x8d0] ss:$12 sps:$4 sm:$0xff]  }
 0x702   :  { %7867 = vmatprep.subr.bf16.mxu1 %v11056_v43  ;;  %v11089_v43 = vld [vmem:[#allocation8 + $0x8ec] ss:$12 sps:$4 sm:$0xff]  }
 0x705   :  { %7868 = vmatpush1.bf16.msra.mxu1 %v11054_v46  ;;  %v11090_v46 = vld [vmem:[#allocation8 + $0x8f0] ss:$12 sps:$4 sm:$0xff]  }
 0x706   :  { %7880 = vmatprep.subr.bf16.mxu1 %v11061_v49  ;;  %v11092_v49 = vld [vmem:[#allocation11 + $0x40] sm:$0xff]  }
 0x75d   :  { %v9592_v50 = vpop.f32.mrb[4].mxu0 }
 0x75e   :  { %v9593_v51 = vpop.f32.mrb[5].mxu0 }
 0x75f   :  { %v9594_v52 = vadd.f32 %v9593_v51, %v9592_v50  ;;  %v9595_v53 = vpop.f32.mrb[6].mxu0  ;;  %v11093_v50 = vld [vmem:[#allocation11] sm:$0xff]   ;;  %v11095_v51 = vld [vmem:[#allocation11 + $0x48] sm:$0xff]  }
 0x760   :  { %v9596_v56 = vpop.f32.mrb[7].mxu0 }
 0x761   :  { %v9597_v57 = vadd.f32 %v9596_v56, %v9595_v53  ;;  %v7282_v63 = vadd.f32 %v9594_v52, %v6773_v60  ;;  %v11094_v52 = vld [vmem:[#allocation11 + $0x88] sm:$0xff]   ;;  %v11098_v56 = vld [vmem:[#allocation11 + $0x50] sm:$0xff]  }
 0x762   :  { %v11096_v53 = vld [vmem:[#allocation11 + $0x8] sm:$0xff]  }
 0x763   :  { %v7285_v5 = vadd.f32 %v9597_v57, %v6773_v60  ;;  %v11097_v57 = vld [vmem:[#allocation11 + $0x90] sm:$0xff]   ;;  %v11101_v60 = vld [vmem:[#allocation11 + $0x58] sm:$0xff]  }
 0x79b   :  { %v7238_v0 = vpop.f32.mrb[76].mxu1  ;;  %v7322_v1 = vpop.f32.mrb[8].mxu0 }
 0x79c   :  { %v9793_v2 = vadd.f32 %v7238_v0, %v6765_v61  ;;  %v7323_v58 = vadd.f32 %v7322_v1, %v7282_v63  ;;  %v7240_v3 = vpop.f32.mrb[77].mxu1  ;;  %v9739_v4 = vpop.f32.mrb[9].mxu0  ;;  %v11104_v63 = vld [vmem:[#allocation11 + $0x60] sm:$0xff]  }
 0x79d   :  { %v9794_v7 = vadd.f32 %v7240_v3, %v6769_v62  ;;  %v7242_v8 = vpop.f32.mrb[78].mxu1  ;;  %v7325_v9 = vpop.f32.mrb[10].mxu0  ;;  %v11103_v0 = vld [vmem:[#allocation11 + $0xa0] sm:$0xff]   ;;  %v11108_v3 = vld [vmem:[#allocation11 + $0x28] sm:$0xff]   ;;  %v11109_v4 = vld [vmem:[#allocation11 + $0xb0] sm:$0xff]  }
 0x79e   :  { %v9795_v11 = vadd.f32 %v7242_v8, %v6765_v61  ;;  %v7326_v12 = vadd.f32 %v7325_v9, %v7285_v5  ;;  %v7244_v13 = vpop.f32.mrb[79].mxu1  ;;  %v9740_v14 = vpop.f32.mrb[11].mxu0  ;;  %v7329_v16 = vmax.f32 %v9793_v2, 0.0  ;;  %v7331_v6 = vmax.f32 %v7323_v58, 0.0  ;;  %v11100_v61 = vld [vmem:[#allocation11 + $0x98] sm:$0xff]   ;;  %v11105_v1 = vld [vmem:[#allocation11 + $0x20] sm:$0xff]  }
 0x79f   :  { %v9796_v15 = vadd.f32 %v7244_v13, %v6769_v62  ;;  %v7330_v18 = vmax.f32 %v9794_v7, 0.0  ;;  %v11102_v62 = vld [vmem:[#allocation11 + $0x18] sm:$0xff]   ;;  %v11107_v2 = vld [vmem:[#allocation11 + $0x68] sm:$0xff]   ;;  %v11110_v5 = vld [vmem:[#allocation11 + $0x70] sm:$0xff]  }
 0x7a0   :  { %v7332_v17 = vmax.f32 %v9795_v11, 0.0  ;;  %v7334_v10 = vmax.f32 %v7326_v12, 0.0  ;;  %v11106_v58 = vld [vmem:[#allocation11 + $0xa8] sm:$0xff]   ;;  %v11111_v7 = vld [vmem:[#allocation11 + $0x30] sm:$0xff]   ;;  %v11112_v8 = vld [vmem:[#allocation11 + $0xb8] sm:$0xff]  }
 0x7a1   :  { %v7333_v25 = vmax.f32 %v9796_v15, 0.0  ;;  %v11113_v9 = vld [vmem:[#allocation11 + $0x78] sm:$0xff]  }
 0x7a2   :  { %v7335_v19 = vpack.c.bf16 %v7332_v17, %v7329_v16  ;;  %v7337_v20 = vpack.c.bf16 %v7334_v10, %v7331_v6  ;;  %v11114_v11 = vld [vmem:[#allocation11 + $0x38] sm:$0xff]  }
 0x7a3   :  { %v7336_v22 = vpack.c.bf16 %v7333_v25, %v7330_v18  ;;  %v7436_v17 = vld [vmem:[#allocation10 + $0x9] sm:$0x7] }
 0x7a4   :  { %v7449_v10 = vrot.slane %v7436_v17, %v11500_v55  ;;  %v7441_v18 = vrot.slane %v7436_v17, %v11508_v21 }
 0x7a5   :  { %7869 = vmatprep.mubr.bf16.mxu1 %v7336_v22  ;;  %7955 = vmatprep.mubr.bf16.mxu0 %v7336_v22 }
 0x7a6   :  { %7870 = vmatmul.mubr.bf16.vlgmr.msra.gmra.mrb[80].mxu1 %v7335_v19  ;;  %7956 = vmatmul.mubr.bf16.vlgmr.msra.gmra.mrb[12].mxu0 %v7335_v19 }
 0x7a7   :  { %7881 = vmatpush1.bf16.msra.mxu1 %v11059_v23  ;;  %9742 = vmatpush3.bf16.msra.mxu0 %v11062_v24 }
 0x7a8   :  { %7882 = vmatprep.subr.bf16.mxu1 %v11065_v26  ;;  %9743 = vmatprep.subr.bf16.mxu0 %v11333_v48 }
 0x7a9   :  { %7912 = vmatprep.mubr.bf16.mxu1 %v11335_v54  ;;  %9757 = vmatprep.mubr.msk.bf16.mxu0 %vm11334_vm0, %v11333_v48  ;;  %v11075_v54 = vld [vmem:[#allocation8 + $0x8a0] ss:$12 sps:$4 sm:$0xff]  }
 0x7ab   :  { %7883 = vmatpush1.bf16.msra.mxu1 %v11063_v27  ;;  %9744 = vmatpush3.bf16.msra.mxu0 %v11066_v28 }
 0x7ac   :  { %7884 = vmatprep.subr.bf16.mxu1 %v11069_v29  ;;  %9745 = vmatprep.subr.bf16.mxu0 %v11333_v48 }
 0x7af   :  { %7885 = vmatpush1.bf16.msra.mxu1 %v11067_v30  ;;  %9746 = vmatpush3.bf16.msra.mxu0 %v11070_v31 }
 0x7b0   :  { %7886 = vmatprep.subr.bf16.mxu1 %v11073_v32  ;;  %9747 = vmatprep.subr.bf16.mxu0 %v11333_v48 }
 0x7b3   :  { %7887 = vmatpush1.bf16.msra.mxu1 %v11071_v39  ;;  %9748 = vmatpush3.bf16.msra.mxu0 %v11074_v33 }
 0x7b4   :  { %7888 = vmatprep.subr.bf16.mxu1 %v11077_v34  ;;  %9749 = vmatprep.subr.bf16.mxu0 %v11333_v48 }
 0x7b7   :  { %7889 = vmatpush1.bf16.msra.mxu1 %v11075_v54  ;;  %9750 = vmatpush3.bf16.msra.mxu0 %v11078_v35 }
 0x7b8   :  { %7890 = vmatprep.subr.bf16.mxu1 %v11081_v37  ;;  %9751 = vmatprep.subr.bf16.mxu0 %v11333_v48 }
 0x7bb   :  { %7891 = vmatpush1.bf16.msra.mxu1 %v11079_v38  ;;  %9752 = vmatpush3.bf16.msra.mxu0 %v11082_v40 }
 0x7bc   :  { %7892 = vmatprep.subr.bf16.mxu1 %v11085_v45  ;;  %9753 = vmatprep.subr.bf16.mxu0 %v11333_v48 }
 0x7bf   :  { %7893 = vmatpush1.bf16.msra.mxu1 %v11083_v41  ;;  %9754 = vmatpush3.bf16.msra.mxu0 %v11086_v42 }
 0x7c0   :  { %7894 = vmatprep.subr.bf16.mxu1 %v11089_v43  ;;  %9755 = vmatprep.subr.bf16.mxu0 %v11333_v48 }
 0x7c3   :  { %7895 = vmatpush1.bf16.msra.mxu1 %v11087_v44  ;;  %9756 = vmatpush3.bf16.msra.mxu0 %v11090_v46  ;;  %v9220_v46 = vld [vmem:[#allocation13] ss:$0 sm:$0xff] }
 0x7c4   :  { %9761 = vmatprep.subr.bf16.mxu1 %v11333_v48  ;;  %9638 = vmatprep.subr.bf16.mxu0 %v11092_v49 }
 0x7c6   :  { %7913 = vmatmul.mubr.bf16.vlgmr.msra.gmra.mrb[80].mxu1 %v7337_v20  ;;  %9758 = vmatmul.mubr.bf16.vlgmr.msra.gmra.mrb[16].mxu0 %v7337_v20 }
 0x7c7   :  { %9777 = vmatprep.mubr.msk.bf16.mxu1 %vm11334_vm0, %v11333_v48  ;;  %9762 = vmatpush3.bf16.msra.mxu1 %v11091_v47 }
 0x7c8   :  { %9639 = vmatpush3.bf16.msra.mxu0 %v11093_v50  ;;  %9763 = vmatprep.subr.bf16.mxu1 %v11333_v48 }
 0x7c9   :  { %9640 = vmatprep.subr.bf16.mxu0 %v11095_v51 }
 0x7cb   :  { %9764 = vmatpush3.bf16.msra.mxu1 %v11094_v52 }
 0x7cc   :  { %9641 = vmatpush3.bf16.msra.mxu0 %v11096_v53  ;;  %9765 = vmatprep.subr.bf16.mxu1 %v11333_v48 }
 0x7cd   :  { %9642 = vmatprep.subr.bf16.mxu0 %v11098_v56 }
 0x7cf   :  { %9766 = vmatpush3.bf16.msra.mxu1 %v11097_v57 }
 0x7d0   :  { %9643 = vmatpush3.bf16.msra.mxu0 %v11099_v59  ;;  %9767 = vmatprep.subr.bf16.mxu1 %v11333_v48 }
 0x7d1   :  { %9644 = vmatprep.subr.bf16.mxu0 %v11101_v60 }
 0x7d3   :  { %9768 = vmatpush3.bf16.msra.mxu1 %v11100_v61 }
 0x7d4   :  { %9645 = vmatpush3.bf16.msra.mxu0 %v11102_v62  ;;  %9769 = vmatprep.subr.bf16.mxu1 %v11333_v48 }
 0x7d5   :  { %9646 = vmatprep.subr.bf16.mxu0 %v11104_v63 }
 0x7d7   :  { %9770 = vmatpush3.bf16.msra.mxu1 %v11103_v0 }
 0x7d8   :  { %9647 = vmatpush3.bf16.msra.mxu0 %v11105_v1  ;;  %9771 = vmatprep.subr.bf16.mxu1 %v11333_v48 }
 0x7d9   :  { %9648 = vmatprep.subr.bf16.mxu0 %v11107_v2 }
 0x7db   :  { %9772 = vmatpush3.bf16.msra.mxu1 %v11106_v58 }
 0x7dc   :  { %9773 = vmatprep.subr.bf16.mxu1 %v11333_v48  ;;  %9649 = vmatpush3.bf16.msra.mxu0 %v11108_v3 }
 0x7dd   :  { %9650 = vmatprep.subr.bf16.mxu0 %v11110_v5 }
 0x7df   :  { %9774 = vmatpush3.bf16.msra.mxu1 %v11109_v4 }
 0x7e0   :  { %9775 = vmatprep.subr.bf16.mxu1 %v11333_v48  ;;  %9651 = vmatpush3.bf16.msra.mxu0 %v11111_v7  ;;  %v7445_v48 = vrot.slane %v7436_v17, %v11511_v36 }
 0x7e1   :  { %9652 = vmatprep.subr.bf16.mxu0 %v11113_v9 }
 0x7e3   :  { %9776 = vmatpush3.bf16.msra.mxu1 %v11112_v8 }
 0x7e4   :  { %9653 = vmatpush3.bf16.msra.mxu0 %v11114_v11 }
 0x879   :  { %v9623_v12 = vpop.f32.mrb[12].mxu0 }
 0x87a   :  { %v9624_v13 = vpop.f32.mrb[13].mxu0 }
 0x87b   :  { %v9625_v14 = vadd.f32 %v9624_v13, %v9623_v12  ;;  %v9626_v15 = vpop.f32.mrb[14].mxu0 }
 0x87c   :  { %v9627_v16 = vpop.f32.mrb[15].mxu0 }
 0x87d   :  { %v9628_v6 = vadd.f32 %v9627_v16, %v9626_v15  ;;  %v7958_v25 = vadd.f32 %v9625_v14, %v7449_v10 }
 0x87f   :  { %v7961_v27 = vadd.f32 %v9628_v6, %v7449_v10 }
 0x899   :  { %v7914_v19 = vpop.f32.mrb[80].mxu1  ;;  %v7998_v20 = vpop.f32.mrb[16].mxu0 }
 0x89a   :  { %v9797_v22 = vadd.f32 %v7914_v19, %v7441_v18  ;;  %v7999_v23 = vadd.f32 %v7998_v20, %v7958_v25  ;;  %v7916_v24 = vpop.f32.mrb[81].mxu1  ;;  %v9759_v26 = vpop.f32.mrb[17].mxu0 }
 0x89b   :  { %v9798_v28 = vadd.f32 %v7916_v24, %v7445_v48  ;;  %v7918_v29 = vpop.f32.mrb[82].mxu1  ;;  %v8001_v30 = vpop.f32.mrb[18].mxu0 }
 0x89c   :  { %v9799_v31 = vadd.f32 %v7918_v29, %v7441_v18  ;;  %v8002_v32 = vadd.f32 %v8001_v30, %v7961_v27  ;;  %v7920_v39 = vpop.f32.mrb[83].mxu1  ;;  %v9760_v33 = vpop.f32.mrb[19].mxu0  ;;  %v8005_v34 = vmax.f32 %v9797_v22, 0.0  ;;  %v8007_v21 = vmax.f32 %v7999_v23, 0.0 }
 0x89d   :  { %v9800_v55 = vadd.f32 %v7920_v39, %v7445_v48  ;;  %v8006_v35 = vmax.f32 %v9798_v28, 0.0 }
 0x89e   :  { %v8008_v54 = vmax.f32 %v9799_v31, 0.0  ;;  %v8010_v36 = vmax.f32 %v8002_v32, 0.0 }
 0x89f   :  { %v8009_v37 = vmax.f32 %v9800_v55, 0.0 }
 0x8a0   :  { %v8011_v38 = vpack.c.bf16 %v8008_v54, %v8005_v34  ;;  %v8013_v40 = vpack.c.bf16 %v8010_v36, %v8007_v21 }
 0x8a1   :  { %v8012_v45 = vpack.c.bf16 %v8009_v37, %v8006_v35 }
 0x8a2   :  { %9778 = vmatmul.mubr.bf16.vlgmr.msra.gmra.mrb[84].mxu1 %v8013_v40 }
 0x8a3   :  { %8245 = vmatprep.mubr.bf16.mxu0 %v8012_v45 }
 0x8a4   :  { %8246 = vmatmul.mubr.bf16.vlgmr.msra.gmra.mrb[20].mxu0 %v8011_v38 }
 0x975   :  { %v8288_v41 = vpop.f32.mrb[84].mxu1 }
 0x976   :  { %v9779_v42 = vpop.f32.mrb[85].mxu1 }
 0x977   :  { %v9654_v43 = vpop.f32.mrb[20].mxu0  ;;  %v8291_v44 = vpop.f32.mrb[86].mxu1 }
 0x978   :  { %v9655_v47 = vpop.f32.mrb[21].mxu0  ;;  %v9780_v49 = vpop.f32.mrb[87].mxu1 }
 0x979   :  { %v9656_v50 = vadd.f32 %v9655_v47, %v9654_v43  ;;  %v9657_v51 = vpop.f32.mrb[22].mxu0 }
 0x97a   :  { %v9658_v52 = vpop.f32.mrb[23].mxu0 }
 0x97b   :  { %v8248_v53 = vadd.f32 %v9656_v50, %v9220_v46  ;;  %v9659_v56 = vadd.f32 %v9658_v52, %v9657_v51 }
 0x97d   :  { %v8289_v57 = vadd.f32 %v8288_v41, %v8248_v53  ;;  %v8251_v59 = vadd.f32 %v9659_v56, %v9220_v46 }
 0x97f   :  { %8295 = vst [vmem:[#allocation14] sm:$0xff] %v8289_v57  ;;  %v8292_v60 = vadd.f32 %v8291_v44, %v8251_v59 }
 0x981   :  { %8296 = vst [vmem:[#allocation14 + $0x8] sm:$0xff] %v8292_v60 }
 0x982   :  { %11297 = shalt.err (!%p11294_p4)
}
 0x983   :  { %s11298_s19 = scalar_lea.hbm %s11624_s7, 256 }
 0x984   :  { %p11299_p5 = scmp.ne.s32.totalorder %s11624_s7, %s11298_s19  ;;  %p11302_p6 = scmp.lt.u32.totalorder %s11298_s19, %s11624_s7 }
 0x986   :  { %p11304_p7 = pnand %p11302_p6, %p11299_p5 }
 0x988   :  { %11307 = shalt.err (!%p11304_p7)
}
 0x989   :  { %s11337_s24 = smov 128   ;;  %s11338_s26 = smov 8  }
 0x98a   :  { %8308 = dma.vmem_to_hbm [thread:$0]  %s8303_s0, 256, %s11624_s7, [#allocation4], %s11337_s24, %s11337_s24, %s11338_s26  }
 0x98b   :  { %11316 = dma.done.wait [#allocation4], 256  }
 0x98c   :  { %11317 = vsyncadd [#allocation4], 4294967040 }
 0x98d   :  { %8312 = vsyncpa [#allocation3], 1 }
 0x98e   :  { %8313 = vsyncpa [#allocation6], 1 }
 0x98f   :  { %8314 = vsyncpa [#allocation9], 1 }
 0x990   :  { %8315 = vsyncpa [#allocation12], 1 }
 0x991   :  { %8316 = vsyncpa [#allocation4], 1 }

</bundles_post_ra>
